<compile_context>
chip_gen: v5e
topology: v5e:2x2
jax: 0.10.0
libtpu: 0.0.40
codegen_flags: <defaults>
</compile_context>

<pallas_src>
import jax
import jax.numpy as jnp
from jax.experimental import pallas as pl
from jax.experimental.pallas import tpu as pltpu

_VMEM = pl.BlockSpec(memory_space=pltpu.MemorySpace.VMEM)


# ------------------------------ Pallas kernel ------------------------------- #

def _tgcn_fused_kernel(a_ref, x_ref, s0_ref, wih_ref, whh_ref, bih_ref,
                       bhh_ref, wl_ref, bl_ref, out_ref):
    """Entire TGCN forward in one kernel (everything VMEM-resident).

    a_ref   [N, N]    row-normalized adjacency
    x_ref   [S, N, B] inputs, pre-transposed so nodes sit on sublanes
    s0_ref  [B, N, H] initial hidden state (PyTorch layout)
    wih_ref [1, 3H]   GRUCell weight_ih.T (num_features == 1)
    whh_ref [H, 3H]   GRUCell weight_hh.T
    bih_ref [1, 3H]   GRUCell bias_ih
    bhh_ref [1, 3H]   GRUCell bias_hh
    wl_ref  [P, H]    final linear weight (PyTorch layout)
    bl_ref  [P, 1]    final linear bias (column vector)
    out_ref [B, P, N] prediction, already in the permuted output layout
    """
    S, N, B = x_ref.shape
    H = whh_ref.shape[0]
    H3 = 3 * H

    a = a_ref[...]                                          # [N, N]
    whh = whh_ref[...]                                      # [H, 3H]
    wl = wl_ref[...]                                        # [P, H]
    bl = bl_ref[...]                                        # [P, 1]
    # Hoist the sublane broadcasts of the tiny row vectors out of the recurrence.
    wih = jnp.broadcast_to(wih_ref[...], (N, H3))
    bih = jnp.broadcast_to(bih_ref[...], (N, H3))
    bhh = jnp.broadcast_to(bhh_ref[...], (N, H3))

    # Per-batch hidden state: [N, H] (nodes on sublanes, GRU units on lanes).
    hs = [s0_ref[b] for b in range(B)]

    for t in range(S):                                      # static, unrolled recurrence
        xt = x_ref[t]                                       # [N, B]
        ax = jnp.dot(a, xt, preferred_element_type=jnp.float32)        # graph-mixed input
        new_hs = []
        for b in range(B):
            # graph-mix the hidden state over the node axis (this mixed state is
            # both the GRUCell hidden input and the "h" in the GRU update).
            h = jnp.dot(a, hs[b], preferred_element_type=jnp.float32)  # [N, H]
            gi = ax[:, b:b + 1] * wih + bih                 # [N, 3H]  (F == 1)
            gh = jnp.dot(h, whh, preferred_element_type=jnp.float32) + bhh
            r = jax.nn.sigmoid(gi[:, 0:H] + gh[:, 0:H])
            z = jax.nn.sigmoid(gi[:, H:2 * H] + gh[:, H:2 * H])
            n = jnp.tanh(gi[:, 2 * H:H3] + r * gh[:, 2 * H:H3])
            new_hs.append((1.0 - z) * n + z * h)
        hs = new_hs

    # Fused epilogue: final linear + output permute.  out[b] = W_l @ h_b.T + b_l
    for b in range(B):
        proj = jax.lax.dot_general(wl, hs[b], (((1,), (1,)), ((), ())),
                                   preferred_element_type=jnp.float32)  # [P, N]
        out_ref[b] = (proj + bl).astype(out_ref.dtype)


# --------------------------------- wrapper ---------------------------------- #

@jax.jit
def tgcn_forward(params, a_hat, x_seq, state):
    """TGCN forward. x_seq: [seq, B, N], state: [B, N, H] -> [B, pre_len, N]."""
    S, B, N = x_seq.shape
    H = state.shape[2]
    P = params["wl"].shape[0]
    F = params["w_ih"].shape[1]
    if F != 1:
        # The PyTorch forward's Ax.reshape(-1, num_features) only matches the
        # GRUCell hidden batch when num_features == 1.
        raise ValueError("TGCN forward requires num_features == 1")

    x_nb = jnp.transpose(x_seq, (0, 2, 1))                  # [S, N, B], one-time prep
    # TODO(synk): for large batch, split the batch over v7x's two TensorCores via
    # a leading "parallel" grid axis; a single fused launch is optimal at B=2.
    return pl.pallas_call(
        _tgcn_fused_kernel,
        out_shape=jax.ShapeDtypeStruct((B, P, N), jnp.float32),
        in_specs=[_VMEM] * 9,
        out_specs=_VMEM,
    )(a_hat, x_nb, state,
      params["w_ih"].T, params["w_hh"].T,
      params["b_ih"].reshape(1, 3 * H), params["b_hh"].reshape(1, 3 * H),
      params["wl"], params["bl"].reshape(P, 1))


# ---------------------------- pure-JAX reference ----------------------------- #

def _gru_cell_ref(x, h, w_ih, w_hh, b_ih, b_hh):
    gi = x @ w_ih.T + b_ih
    gh = h @ w_hh.T + b_hh
    i_r, i_z, i_n = jnp.split(gi, 3, axis=1)
    h_r, h_z, h_n = jnp.split(gh, 3, axis=1)
    r = jax.nn.sigmoid(i_r + h_r)
    z = jax.nn.sigmoid(i_z + h_z)
    n = jnp.tanh(i_n + r * h_n)
    return (1.0 - z) * n + z * h


def tgcn_ref(params, a_hat, x_seq, state):
    B, N, H = state.shape
    F = params["w_ih"].shape[1]
    P = params["wl"].shape[0]
    for i in range(x_seq.shape[0]):
        ax = jnp.einsum('ij,jk->ki', a_hat, x_seq[i].T)                        # [B, N]
        st = jnp.einsum('ij,jkl->kil', a_hat, jnp.transpose(state, (1, 0, 2)))  # [B, N, H]
        h = _gru_cell_ref(ax.reshape(-1, F), st.reshape(-1, H),
                          params["w_ih"], params["w_hh"],
                          params["b_ih"], params["b_hh"])
        state = h.reshape(-1, N, H)
    out = state.reshape(-1, H) @ params["wl"].T + params["bl"]
    out = out.reshape(-1, N, P)
    return jnp.transpose(out, (0, 2, 1))


# ----------------------------------- main ------------------------------------ #

if __name__ == "__main__":
    # num_features must be 1 for the spec's forward to be shape-consistent
    # (Ax.reshape(-1, num_features) must match the GRUCell hidden batch B*N).
    num_nodes, num_features, gru_units, seq_len, pre_len = 16, 1, 32, 8, 4
    batch = 2

    key = jax.random.PRNGKey(0)
    ks = jax.random.split(key, 9)

    def uinit(k, shape, fan_in):
        bound = 1.0 / (fan_in ** 0.5)
        return jax.random.uniform(k, shape, jnp.float32, -bound, bound)

    # nn.GRUCell / nn.Linear parameters in PyTorch layouts.
    params = {
        "w_ih": uinit(ks[0], (3 * gru_units, num_features), gru_units),
        "w_hh": uinit(ks[1], (3 * gru_units, gru_units), gru_units),
        "b_ih": uinit(ks[2], (3 * gru_units,), gru_units),
        "b_hh": uinit(ks[3], (3 * gru_units,), gru_units),
        "wl":   uinit(ks[4], (pre_len, gru_units), gru_units),
        "bl":   uinit(ks[5], (pre_len,), gru_units),
    }

    # Row-normalized adjacency with self loops.
    adj = jax.random.uniform(ks[6], (num_nodes, num_nodes), jnp.float32)
    adj = adj + jnp.eye(num_nodes, dtype=jnp.float32)
    a_hat = adj / adj.sum(axis=1, keepdims=True)

    x_seq = jax.random.normal(ks[7], (seq_len, batch, num_nodes), jnp.float32)
    state = jax.random.normal(ks[8], (batch, num_nodes, gru_units), jnp.float32)

    out = jax.block_until_ready(tgcn_forward(params, a_hat, x_seq, state))
    ref = jax.block_until_ready(tgcn_ref(params, a_hat, x_seq, state))

    assert out.shape == (batch, pre_len, num_nodes), out.shape
    if not jnp.allclose(out, ref, atol=2e-4, rtol=2e-4):
        raise AssertionError("Pallas TGCN output mismatch vs pure-JAX reference")
    print("KERNEL_OK")
</pallas_src>

<mosaic_0001>
module attributes {stable_mosaic.version = 11 : i64} {
  func.func @_tgcn_fused_kernel(%arg0: memref<16x16xf32, #tpu.memory_space<vmem>>, %arg1: memref<8x16x2xf32, #tpu.memory_space<vmem>>, %arg2: memref<2x16x32xf32, #tpu.memory_space<vmem>>, %arg3: memref<1x96xf32, #tpu.memory_space<vmem>>, %arg4: memref<32x96xf32, #tpu.memory_space<vmem>>, %arg5: memref<1x96xf32, #tpu.memory_space<vmem>>, %arg6: memref<1x96xf32, #tpu.memory_space<vmem>>, %arg7: memref<4x32xf32, #tpu.memory_space<vmem>>, %arg8: memref<4x1xf32, #tpu.memory_space<vmem>>, %arg9: memref<2x4x16xf32, #tpu.memory_space<vmem>>) attributes {dimension_semantics = [], scalar_prefetch = 0 : i64, scratch_operands = 0 : i64, tpu.core_type = #tpu.core_type<tc>} {
    %c0 = arith.constant 0 : index
    %c0_0 = arith.constant 0 : index
    %0 = vector.load %arg0[%c0, %c0_0] : memref<16x16xf32, #tpu.memory_space<vmem>>, vector<16x16xf32>
    %c0_1 = arith.constant 0 : index
    %c0_2 = arith.constant 0 : index
    %1 = vector.load %arg4[%c0_1, %c0_2] : memref<32x96xf32, #tpu.memory_space<vmem>>, vector<32x96xf32>
    %c0_3 = arith.constant 0 : index
    %c0_4 = arith.constant 0 : index
    %2 = vector.load %arg7[%c0_3, %c0_4] : memref<4x32xf32, #tpu.memory_space<vmem>>, vector<4x32xf32>
    %c0_5 = arith.constant 0 : index
    %c0_6 = arith.constant 0 : index
    %3 = vector.load %arg8[%c0_5, %c0_6] : memref<4x1xf32, #tpu.memory_space<vmem>>, vector<4x1xf32>
    %c0_7 = arith.constant 0 : index
    %c0_8 = arith.constant 0 : index
    %4 = vector.load %arg3[%c0_7, %c0_8] : memref<1x96xf32, #tpu.memory_space<vmem>>, vector<1x96xf32>
    %5 = vector.shape_cast %4 : vector<1x96xf32> to vector<1x96xf32>
    %6 = vector.broadcast %5 : vector<1x96xf32> to vector<16x96xf32>
    %c0_9 = arith.constant 0 : index
    %c0_10 = arith.constant 0 : index
    %7 = vector.load %arg5[%c0_9, %c0_10] : memref<1x96xf32, #tpu.memory_space<vmem>>, vector<1x96xf32>
    %8 = vector.shape_cast %7 : vector<1x96xf32> to vector<1x96xf32>
    %9 = vector.broadcast %8 : vector<1x96xf32> to vector<16x96xf32>
    %c0_11 = arith.constant 0 : index
    %c0_12 = arith.constant 0 : index
    %10 = vector.load %arg6[%c0_11, %c0_12] : memref<1x96xf32, #tpu.memory_space<vmem>>, vector<1x96xf32>
    %11 = vector.shape_cast %10 : vector<1x96xf32> to vector<1x96xf32>
    %12 = vector.broadcast %11 : vector<1x96xf32> to vector<16x96xf32>
    %c0_13 = arith.constant 0 : index
    %c0_14 = arith.constant 0 : index
    %c0_15 = arith.constant 0 : index
    %13 = vector.load %arg2[%c0_13, %c0_14, %c0_15] : memref<2x16x32xf32, #tpu.memory_space<vmem>>, vector<1x16x32xf32>
    %14 = vector.shape_cast %13 : vector<1x16x32xf32> to vector<16x32xf32>
    %c1 = arith.constant 1 : index
    %c0_16 = arith.constant 0 : index
    %c0_17 = arith.constant 0 : index
    %15 = vector.load %arg2[%c1, %c0_16, %c0_17] : memref<2x16x32xf32, #tpu.memory_space<vmem>>, vector<1x16x32xf32>
    %16 = vector.shape_cast %15 : vector<1x16x32xf32> to vector<16x32xf32>
    %c0_18 = arith.constant 0 : index
    %c0_19 = arith.constant 0 : index
    %c0_20 = arith.constant 0 : index
    %17 = vector.load %arg1[%c0_18, %c0_19, %c0_20] : memref<8x16x2xf32, #tpu.memory_space<vmem>>, vector<1x16x2xf32>
    %18 = vector.shape_cast %17 : vector<1x16x2xf32> to vector<16x2xf32>
    %cst = arith.constant dense<0.000000e+00> : vector<16x2xf32>
    %19 = tpu.matmul %0, %18, %cst {dimension_numbers = #tpu.dot_dimension_numbers<[1], [0], [0], [1], [0, 0, 1, 1], [], []>} : vector<16x16xf32>, vector<16x2xf32>, vector<16x2xf32> -> vector<16x2xf32>
    %cst_21 = arith.constant dense<0.000000e+00> : vector<16x32xf32>
    %20 = tpu.matmul %0, %14, %cst_21 {dimension_numbers = #tpu.dot_dimension_numbers<[1], [0], [0], [1], [0, 0, 1, 1], [], []>} : vector<16x16xf32>, vector<16x32xf32>, vector<16x32xf32> -> vector<16x32xf32>
    %21 = vector.extract_strided_slice %19 {offsets = [0, 0], sizes = [16, 1], strides = [1, 1]} : vector<16x2xf32> to vector<16x1xf32>
    %22 = vector.broadcast %21 : vector<16x1xf32> to vector<16x96xf32>
    %23 = arith.mulf %22, %6 : vector<16x96xf32>
    %24 = arith.addf %23, %9 : vector<16x96xf32>
    %cst_22 = arith.constant dense<0.000000e+00> : vector<16x96xf32>
    %25 = tpu.matmul %20, %1, %cst_22 {dimension_numbers = #tpu.dot_dimension_numbers<[1], [0], [0], [1], [0, 0, 1, 1], [], []>} : vector<16x32xf32>, vector<32x96xf32>, vector<16x96xf32> -> vector<16x96xf32>
    %26 = arith.addf %25, %12 : vector<16x96xf32>
    %27 = vector.extract_strided_slice %24 {offsets = [0, 0], sizes = [16, 32], strides = [1, 1]} : vector<16x96xf32> to vector<16x32xf32>
    %28 = vector.extract_strided_slice %26 {offsets = [0, 0], sizes = [16, 32], strides = [1, 1]} : vector<16x96xf32> to vector<16x32xf32>
    %29 = arith.addf %27, %28 : vector<16x32xf32>
    %30 = arith.negf %29 : vector<16x32xf32>
    %31 = math.exp %30 : vector<16x32xf32>
    %cst_23 = arith.constant 1.000000e+00 : f32
    %32 = vector.broadcast %cst_23 : f32 to vector<16x32xf32>
    %33 = arith.addf %32, %31 : vector<16x32xf32>
    %34 = arith.divf %32, %33 : vector<16x32xf32>
    %35 = vector.extract_strided_slice %24 {offsets = [0, 32], sizes = [16, 32], strides = [1, 1]} : vector<16x96xf32> to vector<16x32xf32>
    %36 = vector.extract_strided_slice %26 {offsets = [0, 32], sizes = [16, 32], strides = [1, 1]} : vector<16x96xf32> to vector<16x32xf32>
    %37 = arith.addf %35, %36 : vector<16x32xf32>
    %38 = arith.negf %37 : vector<16x32xf32>
    %39 = math.exp %38 : vector<16x32xf32>
    %cst_24 = arith.constant 1.000000e+00 : f32
    %40 = vector.broadcast %cst_24 : f32 to vector<16x32xf32>
    %41 = arith.addf %40, %39 : vector<16x32xf32>
    %42 = arith.divf %40, %41 : vector<16x32xf32>
    %43 = vector.extract_strided_slice %24 {offsets = [0, 64], sizes = [16, 32], strides = [1, 1]} : vector<16x96xf32> to vector<16x32xf32>
    %44 = vector.extract_strided_slice %26 {offsets = [0, 64], sizes = [16, 32], strides = [1, 1]} : vector<16x96xf32> to vector<16x32xf32>
    %45 = arith.mulf %34, %44 : vector<16x32xf32>
    %46 = arith.addf %43, %45 : vector<16x32xf32>
    %47 = math.tanh %46 : vector<16x32xf32>
    %cst_25 = arith.constant 1.000000e+00 : f32
    %48 = vector.broadcast %cst_25 : f32 to vector<16x32xf32>
    %49 = arith.subf %48, %42 : vector<16x32xf32>
    %50 = arith.mulf %49, %47 : vector<16x32xf32>
    %51 = arith.mulf %42, %20 : vector<16x32xf32>
    %52 = arith.addf %50, %51 : vector<16x32xf32>
    %cst_26 = arith.constant dense<0.000000e+00> : vector<16x32xf32>
    %53 = tpu.matmul %0, %16, %cst_26 {dimension_numbers = #tpu.dot_dimension_numbers<[1], [0], [0], [1], [0, 0, 1, 1], [], []>} : vector<16x16xf32>, vector<16x32xf32>, vector<16x32xf32> -> vector<16x32xf32>
    %54 = vector.extract_strided_slice %19 {offsets = [0, 1], sizes = [16, 1], strides = [1, 1]} : vector<16x2xf32> to vector<16x1xf32>
    %55 = vector.broadcast %54 : vector<16x1xf32> to vector<16x96xf32>
    %56 = arith.mulf %55, %6 : vector<16x96xf32>
    %57 = arith.addf %56, %9 : vector<16x96xf32>
    %cst_27 = arith.constant dense<0.000000e+00> : vector<16x96xf32>
    %58 = tpu.matmul %53, %1, %cst_27 {dimension_numbers = #tpu.dot_dimension_numbers<[1], [0], [0], [1], [0, 0, 1, 1], [], []>} : vector<16x32xf32>, vector<32x96xf32>, vector<16x96xf32> -> vector<16x96xf32>
    %59 = arith.addf %58, %12 : vector<16x96xf32>
    %60 = vector.extract_strided_slice %57 {offsets = [0, 0], sizes = [16, 32], strides = [1, 1]} : vector<16x96xf32> to vector<16x32xf32>
    %61 = vector.extract_strided_slice %59 {offsets = [0, 0], sizes = [16, 32], strides = [1, 1]} : vector<16x96xf32> to vector<16x32xf32>
    %62 = arith.addf %60, %61 : vector<16x32xf32>
    %63 = arith.negf %62 : vector<16x32xf32>
    %64 = math.exp %63 : vector<16x32xf32>
    %cst_28 = arith.constant 1.000000e+00 : f32
    %65 = vector.broadcast %cst_28 : f32 to vector<16x32xf32>
    %66 = arith.addf %65, %64 : vector<16x32xf32>
    %67 = arith.divf %65, %66 : vector<16x32xf32>
    %68 = vector.extract_strided_slice %57 {offsets = [0, 32], sizes = [16, 32], strides = [1, 1]} : vector<16x96xf32> to vector<16x32xf32>
    %69 = vector.extract_strided_slice %59 {offsets = [0, 32], sizes = [16, 32], strides = [1, 1]} : vector<16x96xf32> to vector<16x32xf32>
    %70 = arith.addf %68, %69 : vector<16x32xf32>
    %71 = arith.negf %70 : vector<16x32xf32>
    %72 = math.exp %71 : vector<16x32xf32>
    %cst_29 = arith.constant 1.000000e+00 : f32
    %73 = vector.broadcast %cst_29 : f32 to vector<16x32xf32>
    %74 = arith.addf %73, %72 : vector<16x32xf32>
    %75 = arith.divf %73, %74 : vector<16x32xf32>
    %76 = vector.extract_strided_slice %57 {offsets = [0, 64], sizes = [16, 32], strides = [1, 1]} : vector<16x96xf32> to vector<16x32xf32>
    %77 = vector.extract_strided_slice %59 {offsets = [0, 64], sizes = [16, 32], strides = [1, 1]} : vector<16x96xf32> to vector<16x32xf32>
    %78 = arith.mulf %67, %77 : vector<16x32xf32>
    %79 = arith.addf %76, %78 : vector<16x32xf32>
    %80 = math.tanh %79 : vector<16x32xf32>
    %cst_30 = arith.constant 1.000000e+00 : f32
    %81 = vector.broadcast %cst_30 : f32 to vector<16x32xf32>
    %82 = arith.subf %81, %75 : vector<16x32xf32>
    %83 = arith.mulf %82, %80 : vector<16x32xf32>
    %84 = arith.mulf %75, %53 : vector<16x32xf32>
    %85 = arith.addf %83, %84 : vector<16x32xf32>
    %c1_31 = arith.constant 1 : index
    %c0_32 = arith.constant 0 : index
    %c0_33 = arith.constant 0 : index
    %86 = vector.load %arg1[%c1_31, %c0_32, %c0_33] : memref<8x16x2xf32, #tpu.memory_space<vmem>>, vector<1x16x2xf32>
    %87 = vector.shape_cast %86 : vector<1x16x2xf32> to vector<16x2xf32>
    %cst_34 = arith.constant dense<0.000000e+00> : vector<16x2xf32>
    %88 = tpu.matmul %0, %87, %cst_34 {dimension_numbers = #tpu.dot_dimension_numbers<[1], [0], [0], [1], [0, 0, 1, 1], [], []>} : vector<16x16xf32>, vector<16x2xf32>, vector<16x2xf32> -> vector<16x2xf32>
    %cst_35 = arith.constant dense<0.000000e+00> : vector<16x32xf32>
    %89 = tpu.matmul %0, %52, %cst_35 {dimension_numbers = #tpu.dot_dimension_numbers<[1], [0], [0], [1], [0, 0, 1, 1], [], []>} : vector<16x16xf32>, vector<16x32xf32>, vector<16x32xf32> -> vector<16x32xf32>
    %90 = vector.extract_strided_slice %88 {offsets = [0, 0], sizes = [16, 1], strides = [1, 1]} : vector<16x2xf32> to vector<16x1xf32>
    %91 = vector.broadcast %90 : vector<16x1xf32> to vector<16x96xf32>
    %92 = arith.mulf %91, %6 : vector<16x96xf32>
    %93 = arith.addf %92, %9 : vector<16x96xf32>
    %cst_36 = arith.constant dense<0.000000e+00> : vector<16x96xf32>
    %94 = tpu.matmul %89, %1, %cst_36 {dimension_numbers = #tpu.dot_dimension_numbers<[1], [0], [0], [1], [0, 0, 1, 1], [], []>} : vector<16x32xf32>, vector<32x96xf32>, vector<16x96xf32> -> vector<16x96xf32>
    %95 = arith.addf %94, %12 : vector<16x96xf32>
    %96 = vector.extract_strided_slice %93 {offsets = [0, 0], sizes = [16, 32], strides = [1, 1]} : vector<16x96xf32> to vector<16x32xf32>
    %97 = vector.extract_strided_slice %95 {offsets = [0, 0], sizes = [16, 32], strides = [1, 1]} : vector<16x96xf32> to vector<16x32xf32>
    %98 = arith.addf %96, %97 : vector<16x32xf32>
    %99 = arith.negf %98 : vector<16x32xf32>
    %100 = math.exp %99 : vector<16x32xf32>
    %cst_37 = arith.constant 1.000000e+00 : f32
    %101 = vector.broadcast %cst_37 : f32 to vector<16x32xf32>
    %102 = arith.addf %101, %100 : vector<16x32xf32>
    %103 = arith.divf %101, %102 : vector<16x32xf32>
    %104 = vector.extract_strided_slice %93 {offsets = [0, 32], sizes = [16, 32], strides = [1, 1]} : vector<16x96xf32> to vector<16x32xf32>
    %105 = vector.extract_strided_slice %95 {offsets = [0, 32], sizes = [16, 32], strides = [1, 1]} : vector<16x96xf32> to vector<16x32xf32>
    %106 = arith.addf %104, %105 : vector<16x32xf32>
    %107 = arith.negf %106 : vector<16x32xf32>
    %108 = math.exp %107 : vector<16x32xf32>
    %cst_38 = arith.constant 1.000000e+00 : f32
    %109 = vector.broadcast %cst_38 : f32 to vector<16x32xf32>
    %110 = arith.addf %109, %108 : vector<16x32xf32>
    %111 = arith.divf %109, %110 : vector<16x32xf32>
    %112 = vector.extract_strided_slice %93 {offsets = [0, 64], sizes = [16, 32], strides = [1, 1]} : vector<16x96xf32> to vector<16x32xf32>
    %113 = vector.extract_strided_slice %95 {offsets = [0, 64], sizes = [16, 32], strides = [1, 1]} : vector<16x96xf32> to vector<16x32xf32>
    %114 = arith.mulf %103, %113 : vector<16x32xf32>
    %115 = arith.addf %112, %114 : vector<16x32xf32>
    %116 = math.tanh %115 : vector<16x32xf32>
    %cst_39 = arith.constant 1.000000e+00 : f32
    %117 = vector.broadcast %cst_39 : f32 to vector<16x32xf32>
    %118 = arith.subf %117, %111 : vector<16x32xf32>
    %119 = arith.mulf %118, %116 : vector<16x32xf32>
    %120 = arith.mulf %111, %89 : vector<16x32xf32>
    %121 = arith.addf %119, %120 : vector<16x32xf32>
    %cst_40 = arith.constant dense<0.000000e+00> : vector<16x32xf32>
    %122 = tpu.matmul %0, %85, %cst_40 {dimension_numbers = #tpu.dot_dimension_numbers<[1], [0], [0], [1], [0, 0, 1, 1], [], []>} : vector<16x16xf32>, vector<16x32xf32>, vector<16x32xf32> -> vector<16x32xf32>
    %123 = vector.extract_strided_slice %88 {offsets = [0, 1], sizes = [16, 1], strides = [1, 1]} : vector<16x2xf32> to vector<16x1xf32>
    %124 = vector.broadcast %123 : vector<16x1xf32> to vector<16x96xf32>
    %125 = arith.mulf %124, %6 : vector<16x96xf32>
    %126 = arith.addf %125, %9 : vector<16x96xf32>
    %cst_41 = arith.constant dense<0.000000e+00> : vector<16x96xf32>
    %127 = tpu.matmul %122, %1, %cst_41 {dimension_numbers = #tpu.dot_dimension_numbers<[1], [0], [0], [1], [0, 0, 1, 1], [], []>} : vector<16x32xf32>, vector<32x96xf32>, vector<16x96xf32> -> vector<16x96xf32>
    %128 = arith.addf %127, %12 : vector<16x96xf32>
    %129 = vector.extract_strided_slice %126 {offsets = [0, 0], sizes = [16, 32], strides = [1, 1]} : vector<16x96xf32> to vector<16x32xf32>
    %130 = vector.extract_strided_slice %128 {offsets = [0, 0], sizes = [16, 32], strides = [1, 1]} : vector<16x96xf32> to vector<16x32xf32>
    %131 = arith.addf %129, %130 : vector<16x32xf32>
    %132 = arith.negf %131 : vector<16x32xf32>
    %133 = math.exp %132 : vector<16x32xf32>
    %cst_42 = arith.constant 1.000000e+00 : f32
    %134 = vector.broadcast %cst_42 : f32 to vector<16x32xf32>
    %135 = arith.addf %134, %133 : vector<16x32xf32>
    %136 = arith.divf %134, %135 : vector<16x32xf32>
    %137 = vector.extract_strided_slice %126 {offsets = [0, 32], sizes = [16, 32], strides = [1, 1]} : vector<16x96xf32> to vector<16x32xf32>
    %138 = vector.extract_strided_slice %128 {offsets = [0, 32], sizes = [16, 32], strides = [1, 1]} : vector<16x96xf32> to vector<16x32xf32>
    %139 = arith.addf %137, %138 : vector<16x32xf32>
    %140 = arith.negf %139 : vector<16x32xf32>
    %141 = math.exp %140 : vector<16x32xf32>
    %cst_43 = arith.constant 1.000000e+00 : f32
    %142 = vector.broadcast %cst_43 : f32 to vector<16x32xf32>
    %143 = arith.addf %142, %141 : vector<16x32xf32>
    %144 = arith.divf %142, %143 : vector<16x32xf32>
    %145 = vector.extract_strided_slice %126 {offsets = [0, 64], sizes = [16, 32], strides = [1, 1]} : vector<16x96xf32> to vector<16x32xf32>
    %146 = vector.extract_strided_slice %128 {offsets = [0, 64], sizes = [16, 32], strides = [1, 1]} : vector<16x96xf32> to vector<16x32xf32>
    %147 = arith.mulf %136, %146 : vector<16x32xf32>
    %148 = arith.addf %145, %147 : vector<16x32xf32>
    %149 = math.tanh %148 : vector<16x32xf32>
    %cst_44 = arith.constant 1.000000e+00 : f32
    %150 = vector.broadcast %cst_44 : f32 to vector<16x32xf32>
    %151 = arith.subf %150, %144 : vector<16x32xf32>
    %152 = arith.mulf %151, %149 : vector<16x32xf32>
    %153 = arith.mulf %144, %122 : vector<16x32xf32>
    %154 = arith.addf %152, %153 : vector<16x32xf32>
    %c2 = arith.constant 2 : index
    %c0_45 = arith.constant 0 : index
    %c0_46 = arith.constant 0 : index
    %155 = vector.load %arg1[%c2, %c0_45, %c0_46] : memref<8x16x2xf32, #tpu.memory_space<vmem>>, vector<1x16x2xf32>
    %156 = vector.shape_cast %155 : vector<1x16x2xf32> to vector<16x2xf32>
    %cst_47 = arith.constant dense<0.000000e+00> : vector<16x2xf32>
    %157 = tpu.matmul %0, %156, %cst_47 {dimension_numbers = #tpu.dot_dimension_numbers<[1], [0], [0], [1], [0, 0, 1, 1], [], []>} : vector<16x16xf32>, vector<16x2xf32>, vector<16x2xf32> -> vector<16x2xf32>
    %cst_48 = arith.constant dense<0.000000e+00> : vector<16x32xf32>
    %158 = tpu.matmul %0, %121, %cst_48 {dimension_numbers = #tpu.dot_dimension_numbers<[1], [0], [0], [1], [0, 0, 1, 1], [], []>} : vector<16x16xf32>, vector<16x32xf32>, vector<16x32xf32> -> vector<16x32xf32>
    %159 = vector.extract_strided_slice %157 {offsets = [0, 0], sizes = [16, 1], strides = [1, 1]} : vector<16x2xf32> to vector<16x1xf32>
    %160 = vector.broadcast %159 : vector<16x1xf32> to vector<16x96xf32>
    %161 = arith.mulf %160, %6 : vector<16x96xf32>
    %162 = arith.addf %161, %9 : vector<16x96xf32>
    %cst_49 = arith.constant dense<0.000000e+00> : vector<16x96xf32>
    %163 = tpu.matmul %158, %1, %cst_49 {dimension_numbers = #tpu.dot_dimension_numbers<[1], [0], [0], [1], [0, 0, 1, 1], [], []>} : vector<16x32xf32>, vector<32x96xf32>, vector<16x96xf32> -> vector<16x96xf32>
    %164 = arith.addf %163, %12 : vector<16x96xf32>
    %165 = vector.extract_strided_slice %162 {offsets = [0, 0], sizes = [16, 32], strides = [1, 1]} : vector<16x96xf32> to vector<16x32xf32>
    %166 = vector.extract_strided_slice %164 {offsets = [0, 0], sizes = [16, 32], strides = [1, 1]} : vector<16x96xf32> to vector<16x32xf32>
    %167 = arith.addf %165, %166 : vector<16x32xf32>
    %168 = arith.negf %167 : vector<16x32xf32>
    %169 = math.exp %168 : vector<16x32xf32>
    %cst_50 = arith.constant 1.000000e+00 : f32
    %170 = vector.broadcast %cst_50 : f32 to vector<16x32xf32>
    %171 = arith.addf %170, %169 : vector<16x32xf32>
    %172 = arith.divf %170, %171 : vector<16x32xf32>
    %173 = vector.extract_strided_slice %162 {offsets = [0, 32], sizes = [16, 32], strides = [1, 1]} : vector<16x96xf32> to vector<16x32xf32>
    %174 = vector.extract_strided_slice %164 {offsets = [0, 32], sizes = [16, 32], strides = [1, 1]} : vector<16x96xf32> to vector<16x32xf32>
    %175 = arith.addf %173, %174 : vector<16x32xf32>
    %176 = arith.negf %175 : vector<16x32xf32>
    %177 = math.exp %176 : vector<16x32xf32>
    %cst_51 = arith.constant 1.000000e+00 : f32
    %178 = vector.broadcast %cst_51 : f32 to vector<16x32xf32>
    %179 = arith.addf %178, %177 : vector<16x32xf32>
    %180 = arith.divf %178, %179 : vector<16x32xf32>
    %181 = vector.extract_strided_slice %162 {offsets = [0, 64], sizes = [16, 32], strides = [1, 1]} : vector<16x96xf32> to vector<16x32xf32>
    %182 = vector.extract_strided_slice %164 {offsets = [0, 64], sizes = [16, 32], strides = [1, 1]} : vector<16x96xf32> to vector<16x32xf32>
    %183 = arith.mulf %172, %182 : vector<16x32xf32>
    %184 = arith.addf %181, %183 : vector<16x32xf32>
    %185 = math.tanh %184 : vector<16x32xf32>
    %cst_52 = arith.constant 1.000000e+00 : f32
    %186 = vector.broadcast %cst_52 : f32 to vector<16x32xf32>
    %187 = arith.subf %186, %180 : vector<16x32xf32>
    %188 = arith.mulf %187, %185 : vector<16x32xf32>
    %189 = arith.mulf %180, %158 : vector<16x32xf32>
    %190 = arith.addf %188, %189 : vector<16x32xf32>
    %cst_53 = arith.constant dense<0.000000e+00> : vector<16x32xf32>
    %191 = tpu.matmul %0, %154, %cst_53 {dimension_numbers = #tpu.dot_dimension_numbers<[1], [0], [0], [1], [0, 0, 1, 1], [], []>} : vector<16x16xf32>, vector<16x32xf32>, vector<16x32xf32> -> vector<16x32xf32>
    %192 = vector.extract_strided_slice %157 {offsets = [0, 1], sizes = [16, 1], strides = [1, 1]} : vector<16x2xf32> to vector<16x1xf32>
    %193 = vector.broadcast %192 : vector<16x1xf32> to vector<16x96xf32>
    %194 = arith.mulf %193, %6 : vector<16x96xf32>
    %195 = arith.addf %194, %9 : vector<16x96xf32>
    %cst_54 = arith.constant dense<0.000000e+00> : vector<16x96xf32>
    %196 = tpu.matmul %191, %1, %cst_54 {dimension_numbers = #tpu.dot_dimension_numbers<[1], [0], [0], [1], [0, 0, 1, 1], [], []>} : vector<16x32xf32>, vector<32x96xf32>, vector<16x96xf32> -> vector<16x96xf32>
    %197 = arith.addf %196, %12 : vector<16x96xf32>
    %198 = vector.extract_strided_slice %195 {offsets = [0, 0], sizes = [16, 32], strides = [1, 1]} : vector<16x96xf32> to vector<16x32xf32>
    %199 = vector.extract_strided_slice %197 {offsets = [0, 0], sizes = [16, 32], strides = [1, 1]} : vector<16x96xf32> to vector<16x32xf32>
    %200 = arith.addf %198, %199 : vector<16x32xf32>
    %201 = arith.negf %200 : vector<16x32xf32>
    %202 = math.exp %201 : vector<16x32xf32>
    %cst_55 = arith.constant 1.000000e+00 : f32
    %203 = vector.broadcast %cst_55 : f32 to vector<16x32xf32>
    %204 = arith.addf %203, %202 : vector<16x32xf32>
    %205 = arith.divf %203, %204 : vector<16x32xf32>
    %206 = vector.extract_strided_slice %195 {offsets = [0, 32], sizes = [16, 32], strides = [1, 1]} : vector<16x96xf32> to vector<16x32xf32>
    %207 = vector.extract_strided_slice %197 {offsets = [0, 32], sizes = [16, 32], strides = [1, 1]} : vector<16x96xf32> to vector<16x32xf32>
    %208 = arith.addf %206, %207 : vector<16x32xf32>
    %209 = arith.negf %208 : vector<16x32xf32>
    %210 = math.exp %209 : vector<16x32xf32>
    %cst_56 = arith.constant 1.000000e+00 : f32
    %211 = vector.broadcast %cst_56 : f32 to vector<16x32xf32>
    %212 = arith.addf %211, %210 : vector<16x32xf32>
    %213 = arith.divf %211, %212 : vector<16x32xf32>
    %214 = vector.extract_strided_slice %195 {offsets = [0, 64], sizes = [16, 32], strides = [1, 1]} : vector<16x96xf32> to vector<16x32xf32>
    %215 = vector.extract_strided_slice %197 {offsets = [0, 64], sizes = [16, 32], strides = [1, 1]} : vector<16x96xf32> to vector<16x32xf32>
    %216 = arith.mulf %205, %215 : vector<16x32xf32>
    %217 = arith.addf %214, %216 : vector<16x32xf32>
    %218 = math.tanh %217 : vector<16x32xf32>
    %cst_57 = arith.constant 1.000000e+00 : f32
    %219 = vector.broadcast %cst_57 : f32 to vector<16x32xf32>
    %220 = arith.subf %219, %213 : vector<16x32xf32>
    %221 = arith.mulf %220, %218 : vector<16x32xf32>
    %222 = arith.mulf %213, %191 : vector<16x32xf32>
    %223 = arith.addf %221, %222 : vector<16x32xf32>
    %c3 = arith.constant 3 : index
    %c0_58 = arith.constant 0 : index
    %c0_59 = arith.constant 0 : index
    %224 = vector.load %arg1[%c3, %c0_58, %c0_59] : memref<8x16x2xf32, #tpu.memory_space<vmem>>, vector<1x16x2xf32>
    %225 = vector.shape_cast %224 : vector<1x16x2xf32> to vector<16x2xf32>
    %cst_60 = arith.constant dense<0.000000e+00> : vector<16x2xf32>
    %226 = tpu.matmul %0, %225, %cst_60 {dimension_numbers = #tpu.dot_dimension_numbers<[1], [0], [0], [1], [0, 0, 1, 1], [], []>} : vector<16x16xf32>, vector<16x2xf32>, vector<16x2xf32> -> vector<16x2xf32>
    %cst_61 = arith.constant dense<0.000000e+00> : vector<16x32xf32>
    %227 = tpu.matmul %0, %190, %cst_61 {dimension_numbers = #tpu.dot_dimension_numbers<[1], [0], [0], [1], [0, 0, 1, 1], [], []>} : vector<16x16xf32>, vector<16x32xf32>, vector<16x32xf32> -> vector<16x32xf32>
    %228 = vector.extract_strided_slice %226 {offsets = [0, 0], sizes = [16, 1], strides = [1, 1]} : vector<16x2xf32> to vector<16x1xf32>
    %229 = vector.broadcast %228 : vector<16x1xf32> to vector<16x96xf32>
    %230 = arith.mulf %229, %6 : vector<16x96xf32>
    %231 = arith.addf %230, %9 : vector<16x96xf32>
    %cst_62 = arith.constant dense<0.000000e+00> : vector<16x96xf32>
    %232 = tpu.matmul %227, %1, %cst_62 {dimension_numbers = #tpu.dot_dimension_numbers<[1], [0], [0], [1], [0, 0, 1, 1], [], []>} : vector<16x32xf32>, vector<32x96xf32>, vector<16x96xf32> -> vector<16x96xf32>
    %233 = arith.addf %232, %12 : vector<16x96xf32>
    %234 = vector.extract_strided_slice %231 {offsets = [0, 0], sizes = [16, 32], strides = [1, 1]} : vector<16x96xf32> to vector<16x32xf32>
    %235 = vector.extract_strided_slice %233 {offsets = [0, 0], sizes = [16, 32], strides = [1, 1]} : vector<16x96xf32> to vector<16x32xf32>
    %236 = arith.addf %234, %235 : vector<16x32xf32>
    %237 = arith.negf %236 : vector<16x32xf32>
    %238 = math.exp %237 : vector<16x32xf32>
    %cst_63 = arith.constant 1.000000e+00 : f32
    %239 = vector.broadcast %cst_63 : f32 to vector<16x32xf32>
    %240 = arith.addf %239, %238 : vector<16x32xf32>
    %241 = arith.divf %239, %240 : vector<16x32xf32>
    %242 = vector.extract_strided_slice %231 {offsets = [0, 32], sizes = [16, 32], strides = [1, 1]} : vector<16x96xf32> to vector<16x32xf32>
    %243 = vector.extract_strided_slice %233 {offsets = [0, 32], sizes = [16, 32], strides = [1, 1]} : vector<16x96xf32> to vector<16x32xf32>
    %244 = arith.addf %242, %243 : vector<16x32xf32>
    %245 = arith.negf %244 : vector<16x32xf32>
    %246 = math.exp %245 : vector<16x32xf32>
    %cst_64 = arith.constant 1.000000e+00 : f32
    %247 = vector.broadcast %cst_64 : f32 to vector<16x32xf32>
    %248 = arith.addf %247, %246 : vector<16x32xf32>
    %249 = arith.divf %247, %248 : vector<16x32xf32>
    %250 = vector.extract_strided_slice %231 {offsets = [0, 64], sizes = [16, 32], strides = [1, 1]} : vector<16x96xf32> to vector<16x32xf32>
    %251 = vector.extract_strided_slice %233 {offsets = [0, 64], sizes = [16, 32], strides = [1, 1]} : vector<16x96xf32> to vector<16x32xf32>
    %252 = arith.mulf %241, %251 : vector<16x32xf32>
    %253 = arith.addf %250, %252 : vector<16x32xf32>
    %254 = math.tanh %253 : vector<16x32xf32>
    %cst_65 = arith.constant 1.000000e+00 : f32
    %255 = vector.broadcast %cst_65 : f32 to vector<16x32xf32>
    %256 = arith.subf %255, %249 : vector<16x32xf32>
    %257 = arith.mulf %256, %254 : vector<16x32xf32>
    %258 = arith.mulf %249, %227 : vector<16x32xf32>
    %259 = arith.addf %257, %258 : vector<16x32xf32>
    %cst_66 = arith.constant dense<0.000000e+00> : vector<16x32xf32>
    %260 = tpu.matmul %0, %223, %cst_66 {dimension_numbers = #tpu.dot_dimension_numbers<[1], [0], [0], [1], [0, 0, 1, 1], [], []>} : vector<16x16xf32>, vector<16x32xf32>, vector<16x32xf32> -> vector<16x32xf32>
    %261 = vector.extract_strided_slice %226 {offsets = [0, 1], sizes = [16, 1], strides = [1, 1]} : vector<16x2xf32> to vector<16x1xf32>
    %262 = vector.broadcast %261 : vector<16x1xf32> to vector<16x96xf32>
    %263 = arith.mulf %262, %6 : vector<16x96xf32>
    %264 = arith.addf %263, %9 : vector<16x96xf32>
    %cst_67 = arith.constant dense<0.000000e+00> : vector<16x96xf32>
    %265 = tpu.matmul %260, %1, %cst_67 {dimension_numbers = #tpu.dot_dimension_numbers<[1], [0], [0], [1], [0, 0, 1, 1], [], []>} : vector<16x32xf32>, vector<32x96xf32>, vector<16x96xf32> -> vector<16x96xf32>
    %266 = arith.addf %265, %12 : vector<16x96xf32>
    %267 = vector.extract_strided_slice %264 {offsets = [0, 0], sizes = [16, 32], strides = [1, 1]} : vector<16x96xf32> to vector<16x32xf32>
    %268 = vector.extract_strided_slice %266 {offsets = [0, 0], sizes = [16, 32], strides = [1, 1]} : vector<16x96xf32> to vector<16x32xf32>
    %269 = arith.addf %267, %268 : vector<16x32xf32>
    %270 = arith.negf %269 : vector<16x32xf32>
    %271 = math.exp %270 : vector<16x32xf32>
    %cst_68 = arith.constant 1.000000e+00 : f32
    %272 = vector.broadcast %cst_68 : f32 to vector<16x32xf32>
    %273 = arith.addf %272, %271 : vector<16x32xf32>
    %274 = arith.divf %272, %273 : vector<16x32xf32>
    %275 = vector.extract_strided_slice %264 {offsets = [0, 32], sizes = [16, 32], strides = [1, 1]} : vector<16x96xf32> to vector<16x32xf32>
    %276 = vector.extract_strided_slice %266 {offsets = [0, 32], sizes = [16, 32], strides = [1, 1]} : vector<16x96xf32> to vector<16x32xf32>
    %277 = arith.addf %275, %276 : vector<16x32xf32>
    %278 = arith.negf %277 : vector<16x32xf32>
    %279 = math.exp %278 : vector<16x32xf32>
    %cst_69 = arith.constant 1.000000e+00 : f32
    %280 = vector.broadcast %cst_69 : f32 to vector<16x32xf32>
    %281 = arith.addf %280, %279 : vector<16x32xf32>
    %282 = arith.divf %280, %281 : vector<16x32xf32>
    %283 = vector.extract_strided_slice %264 {offsets = [0, 64], sizes = [16, 32], strides = [1, 1]} : vector<16x96xf32> to vector<16x32xf32>
    %284 = vector.extract_strided_slice %266 {offsets = [0, 64], sizes = [16, 32], strides = [1, 1]} : vector<16x96xf32> to vector<16x32xf32>
    %285 = arith.mulf %274, %284 : vector<16x32xf32>
    %286 = arith.addf %283, %285 : vector<16x32xf32>
    %287 = math.tanh %286 : vector<16x32xf32>
    %cst_70 = arith.constant 1.000000e+00 : f32
    %288 = vector.broadcast %cst_70 : f32 to vector<16x32xf32>
    %289 = arith.subf %288, %282 : vector<16x32xf32>
    %290 = arith.mulf %289, %287 : vector<16x32xf32>
    %291 = arith.mulf %282, %260 : vector<16x32xf32>
    %292 = arith.addf %290, %291 : vector<16x32xf32>
    %c4 = arith.constant 4 : index
    %c0_71 = arith.constant 0 : index
    %c0_72 = arith.constant 0 : index
    %293 = vector.load %arg1[%c4, %c0_71, %c0_72] : memref<8x16x2xf32, #tpu.memory_space<vmem>>, vector<1x16x2xf32>
    %294 = vector.shape_cast %293 : vector<1x16x2xf32> to vector<16x2xf32>
    %cst_73 = arith.constant dense<0.000000e+00> : vector<16x2xf32>
    %295 = tpu.matmul %0, %294, %cst_73 {dimension_numbers = #tpu.dot_dimension_numbers<[1], [0], [0], [1], [0, 0, 1, 1], [], []>} : vector<16x16xf32>, vector<16x2xf32>, vector<16x2xf32> -> vector<16x2xf32>
    %cst_74 = arith.constant dense<0.000000e+00> : vector<16x32xf32>
    %296 = tpu.matmul %0, %259, %cst_74 {dimension_numbers = #tpu.dot_dimension_numbers<[1], [0], [0], [1], [0, 0, 1, 1], [], []>} : vector<16x16xf32>, vector<16x32xf32>, vector<16x32xf32> -> vector<16x32xf32>
    %297 = vector.extract_strided_slice %295 {offsets = [0, 0], sizes = [16, 1], strides = [1, 1]} : vector<16x2xf32> to vector<16x1xf32>
    %298 = vector.broadcast %297 : vector<16x1xf32> to vector<16x96xf32>
    %299 = arith.mulf %298, %6 : vector<16x96xf32>
    %300 = arith.addf %299, %9 : vector<16x96xf32>
    %cst_75 = arith.constant dense<0.000000e+00> : vector<16x96xf32>
    %301 = tpu.matmul %296, %1, %cst_75 {dimension_numbers = #tpu.dot_dimension_numbers<[1], [0], [0], [1], [0, 0, 1, 1], [], []>} : vector<16x32xf32>, vector<32x96xf32>, vector<16x96xf32> -> vector<16x96xf32>
    %302 = arith.addf %301, %12 : vector<16x96xf32>
    %303 = vector.extract_strided_slice %300 {offsets = [0, 0], sizes = [16, 32], strides = [1, 1]} : vector<16x96xf32> to vector<16x32xf32>
    %304 = vector.extract_strided_slice %302 {offsets = [0, 0], sizes = [16, 32], strides = [1, 1]} : vector<16x96xf32> to vector<16x32xf32>
    %305 = arith.addf %303, %304 : vector<16x32xf32>
    %306 = arith.negf %305 : vector<16x32xf32>
    %307 = math.exp %306 : vector<16x32xf32>
    %cst_76 = arith.constant 1.000000e+00 : f32
    %308 = vector.broadcast %cst_76 : f32 to vector<16x32xf32>
    %309 = arith.addf %308, %307 : vector<16x32xf32>
    %310 = arith.divf %308, %309 : vector<16x32xf32>
    %311 = vector.extract_strided_slice %300 {offsets = [0, 32], sizes = [16, 32], strides = [1, 1]} : vector<16x96xf32> to vector<16x32xf32>
    %312 = vector.extract_strided_slice %302 {offsets = [0, 32], sizes = [16, 32], strides = [1, 1]} : vector<16x96xf32> to vector<16x32xf32>
    %313 = arith.addf %311, %312 : vector<16x32xf32>
    %314 = arith.negf %313 : vector<16x32xf32>
    %315 = math.exp %314 : vector<16x32xf32>
    %cst_77 = arith.constant 1.000000e+00 : f32
    %316 = vector.broadcast %cst_77 : f32 to vector<16x32xf32>
    %317 = arith.addf %316, %315 : vector<16x32xf32>
    %318 = arith.divf %316, %317 : vector<16x32xf32>
    %319 = vector.extract_strided_slice %300 {offsets = [0, 64], sizes = [16, 32], strides = [1, 1]} : vector<16x96xf32> to vector<16x32xf32>
    %320 = vector.extract_strided_slice %302 {offsets = [0, 64], sizes = [16, 32], strides = [1, 1]} : vector<16x96xf32> to vector<16x32xf32>
    %321 = arith.mulf %310, %320 : vector<16x32xf32>
    %322 = arith.addf %319, %321 : vector<16x32xf32>
    %323 = math.tanh %322 : vector<16x32xf32>
    %cst_78 = arith.constant 1.000000e+00 : f32
    %324 = vector.broadcast %cst_78 : f32 to vector<16x32xf32>
    %325 = arith.subf %324, %318 : vector<16x32xf32>
    %326 = arith.mulf %325, %323 : vector<16x32xf32>
    %327 = arith.mulf %318, %296 : vector<16x32xf32>
    %328 = arith.addf %326, %327 : vector<16x32xf32>
    %cst_79 = arith.constant dense<0.000000e+00> : vector<16x32xf32>
    %329 = tpu.matmul %0, %292, %cst_79 {dimension_numbers = #tpu.dot_dimension_numbers<[1], [0], [0], [1], [0, 0, 1, 1], [], []>} : vector<16x16xf32>, vector<16x32xf32>, vector<16x32xf32> -> vector<16x32xf32>
    %330 = vector.extract_strided_slice %295 {offsets = [0, 1], sizes = [16, 1], strides = [1, 1]} : vector<16x2xf32> to vector<16x1xf32>
    %331 = vector.broadcast %330 : vector<16x1xf32> to vector<16x96xf32>
    %332 = arith.mulf %331, %6 : vector<16x96xf32>
    %333 = arith.addf %332, %9 : vector<16x96xf32>
    %cst_80 = arith.constant dense<0.000000e+00> : vector<16x96xf32>
    %334 = tpu.matmul %329, %1, %cst_80 {dimension_numbers = #tpu.dot_dimension_numbers<[1], [0], [0], [1], [0, 0, 1, 1], [], []>} : vector<16x32xf32>, vector<32x96xf32>, vector<16x96xf32> -> vector<16x96xf32>
    %335 = arith.addf %334, %12 : vector<16x96xf32>
    %336 = vector.extract_strided_slice %333 {offsets = [0, 0], sizes = [16, 32], strides = [1, 1]} : vector<16x96xf32> to vector<16x32xf32>
    %337 = vector.extract_strided_slice %335 {offsets = [0, 0], sizes = [16, 32], strides = [1, 1]} : vector<16x96xf32> to vector<16x32xf32>
    %338 = arith.addf %336, %337 : vector<16x32xf32>
    %339 = arith.negf %338 : vector<16x32xf32>
    %340 = math.exp %339 : vector<16x32xf32>
    %cst_81 = arith.constant 1.000000e+00 : f32
    %341 = vector.broadcast %cst_81 : f32 to vector<16x32xf32>
    %342 = arith.addf %341, %340 : vector<16x32xf32>
    %343 = arith.divf %341, %342 : vector<16x32xf32>
    %344 = vector.extract_strided_slice %333 {offsets = [0, 32], sizes = [16, 32], strides = [1, 1]} : vector<16x96xf32> to vector<16x32xf32>
    %345 = vector.extract_strided_slice %335 {offsets = [0, 32], sizes = [16, 32], strides = [1, 1]} : vector<16x96xf32> to vector<16x32xf32>
    %346 = arith.addf %344, %345 : vector<16x32xf32>
    %347 = arith.negf %346 : vector<16x32xf32>
    %348 = math.exp %347 : vector<16x32xf32>
    %cst_82 = arith.constant 1.000000e+00 : f32
    %349 = vector.broadcast %cst_82 : f32 to vector<16x32xf32>
    %350 = arith.addf %349, %348 : vector<16x32xf32>
    %351 = arith.divf %349, %350 : vector<16x32xf32>
    %352 = vector.extract_strided_slice %333 {offsets = [0, 64], sizes = [16, 32], strides = [1, 1]} : vector<16x96xf32> to vector<16x32xf32>
    %353 = vector.extract_strided_slice %335 {offsets = [0, 64], sizes = [16, 32], strides = [1, 1]} : vector<16x96xf32> to vector<16x32xf32>
    %354 = arith.mulf %343, %353 : vector<16x32xf32>
    %355 = arith.addf %352, %354 : vector<16x32xf32>
    %356 = math.tanh %355 : vector<16x32xf32>
    %cst_83 = arith.constant 1.000000e+00 : f32
    %357 = vector.broadcast %cst_83 : f32 to vector<16x32xf32>
    %358 = arith.subf %357, %351 : vector<16x32xf32>
    %359 = arith.mulf %358, %356 : vector<16x32xf32>
    %360 = arith.mulf %351, %329 : vector<16x32xf32>
    %361 = arith.addf %359, %360 : vector<16x32xf32>
    %c5 = arith.constant 5 : index
    %c0_84 = arith.constant 0 : index
    %c0_85 = arith.constant 0 : index
    %362 = vector.load %arg1[%c5, %c0_84, %c0_85] : memref<8x16x2xf32, #tpu.memory_space<vmem>>, vector<1x16x2xf32>
    %363 = vector.shape_cast %362 : vector<1x16x2xf32> to vector<16x2xf32>
    %cst_86 = arith.constant dense<0.000000e+00> : vector<16x2xf32>
    %364 = tpu.matmul %0, %363, %cst_86 {dimension_numbers = #tpu.dot_dimension_numbers<[1], [0], [0], [1], [0, 0, 1, 1], [], []>} : vector<16x16xf32>, vector<16x2xf32>, vector<16x2xf32> -> vector<16x2xf32>
    %cst_87 = arith.constant dense<0.000000e+00> : vector<16x32xf32>
    %365 = tpu.matmul %0, %328, %cst_87 {dimension_numbers = #tpu.dot_dimension_numbers<[1], [0], [0], [1], [0, 0, 1, 1], [], []>} : vector<16x16xf32>, vector<16x32xf32>, vector<16x32xf32> -> vector<16x32xf32>
    %366 = vector.extract_strided_slice %364 {offsets = [0, 0], sizes = [16, 1], strides = [1, 1]} : vector<16x2xf32> to vector<16x1xf32>
    %367 = vector.broadcast %366 : vector<16x1xf32> to vector<16x96xf32>
    %368 = arith.mulf %367, %6 : vector<16x96xf32>
    %369 = arith.addf %368, %9 : vector<16x96xf32>
    %cst_88 = arith.constant dense<0.000000e+00> : vector<16x96xf32>
    %370 = tpu.matmul %365, %1, %cst_88 {dimension_numbers = #tpu.dot_dimension_numbers<[1], [0], [0], [1], [0, 0, 1, 1], [], []>} : vector<16x32xf32>, vector<32x96xf32>, vector<16x96xf32> -> vector<16x96xf32>
    %371 = arith.addf %370, %12 : vector<16x96xf32>
    %372 = vector.extract_strided_slice %369 {offsets = [0, 0], sizes = [16, 32], strides = [1, 1]} : vector<16x96xf32> to vector<16x32xf32>
    %373 = vector.extract_strided_slice %371 {offsets = [0, 0], sizes = [16, 32], strides = [1, 1]} : vector<16x96xf32> to vector<16x32xf32>
    %374 = arith.addf %372, %373 : vector<16x32xf32>
    %375 = arith.negf %374 : vector<16x32xf32>
    %376 = math.exp %375 : vector<16x32xf32>
    %cst_89 = arith.constant 1.000000e+00 : f32
    %377 = vector.broadcast %cst_89 : f32 to vector<16x32xf32>
    %378 = arith.addf %377, %376 : vector<16x32xf32>
    %379 = arith.divf %377, %378 : vector<16x32xf32>
    %380 = vector.extract_strided_slice %369 {offsets = [0, 32], sizes = [16, 32], strides = [1, 1]} : vector<16x96xf32> to vector<16x32xf32>
    %381 = vector.extract_strided_slice %371 {offsets = [0, 32], sizes = [16, 32], strides = [1, 1]} : vector<16x96xf32> to vector<16x32xf32>
    %382 = arith.addf %380, %381 : vector<16x32xf32>
    %383 = arith.negf %382 : vector<16x32xf32>
    %384 = math.exp %383 : vector<16x32xf32>
    %cst_90 = arith.constant 1.000000e+00 : f32
    %385 = vector.broadcast %cst_90 : f32 to vector<16x32xf32>
    %386 = arith.addf %385, %384 : vector<16x32xf32>
    %387 = arith.divf %385, %386 : vector<16x32xf32>
    %388 = vector.extract_strided_slice %369 {offsets = [0, 64], sizes = [16, 32], strides = [1, 1]} : vector<16x96xf32> to vector<16x32xf32>
    %389 = vector.extract_strided_slice %371 {offsets = [0, 64], sizes = [16, 32], strides = [1, 1]} : vector<16x96xf32> to vector<16x32xf32>
    %390 = arith.mulf %379, %389 : vector<16x32xf32>
    %391 = arith.addf %388, %390 : vector<16x32xf32>
    %392 = math.tanh %391 : vector<16x32xf32>
    %cst_91 = arith.constant 1.000000e+00 : f32
    %393 = vector.broadcast %cst_91 : f32 to vector<16x32xf32>
    %394 = arith.subf %393, %387 : vector<16x32xf32>
    %395 = arith.mulf %394, %392 : vector<16x32xf32>
    %396 = arith.mulf %387, %365 : vector<16x32xf32>
    %397 = arith.addf %395, %396 : vector<16x32xf32>
    %cst_92 = arith.constant dense<0.000000e+00> : vector<16x32xf32>
    %398 = tpu.matmul %0, %361, %cst_92 {dimension_numbers = #tpu.dot_dimension_numbers<[1], [0], [0], [1], [0, 0, 1, 1], [], []>} : vector<16x16xf32>, vector<16x32xf32>, vector<16x32xf32> -> vector<16x32xf32>
    %399 = vector.extract_strided_slice %364 {offsets = [0, 1], sizes = [16, 1], strides = [1, 1]} : vector<16x2xf32> to vector<16x1xf32>
    %400 = vector.broadcast %399 : vector<16x1xf32> to vector<16x96xf32>
    %401 = arith.mulf %400, %6 : vector<16x96xf32>
    %402 = arith.addf %401, %9 : vector<16x96xf32>
    %cst_93 = arith.constant dense<0.000000e+00> : vector<16x96xf32>
    %403 = tpu.matmul %398, %1, %cst_93 {dimension_numbers = #tpu.dot_dimension_numbers<[1], [0], [0], [1], [0, 0, 1, 1], [], []>} : vector<16x32xf32>, vector<32x96xf32>, vector<16x96xf32> -> vector<16x96xf32>
    %404 = arith.addf %403, %12 : vector<16x96xf32>
    %405 = vector.extract_strided_slice %402 {offsets = [0, 0], sizes = [16, 32], strides = [1, 1]} : vector<16x96xf32> to vector<16x32xf32>
    %406 = vector.extract_strided_slice %404 {offsets = [0, 0], sizes = [16, 32], strides = [1, 1]} : vector<16x96xf32> to vector<16x32xf32>
    %407 = arith.addf %405, %406 : vector<16x32xf32>
    %408 = arith.negf %407 : vector<16x32xf32>
    %409 = math.exp %408 : vector<16x32xf32>
    %cst_94 = arith.constant 1.000000e+00 : f32
    %410 = vector.broadcast %cst_94 : f32 to vector<16x32xf32>
    %411 = arith.addf %410, %409 : vector<16x32xf32>
    %412 = arith.divf %410, %411 : vector<16x32xf32>
    %413 = vector.extract_strided_slice %402 {offsets = [0, 32], sizes = [16, 32], strides = [1, 1]} : vector<16x96xf32> to vector<16x32xf32>
    %414 = vector.extract_strided_slice %404 {offsets = [0, 32], sizes = [16, 32], strides = [1, 1]} : vector<16x96xf32> to vector<16x32xf32>
    %415 = arith.addf %413, %414 : vector<16x32xf32>
    %416 = arith.negf %415 : vector<16x32xf32>
    %417 = math.exp %416 : vector<16x32xf32>
    %cst_95 = arith.constant 1.000000e+00 : f32
    %418 = vector.broadcast %cst_95 : f32 to vector<16x32xf32>
    %419 = arith.addf %418, %417 : vector<16x32xf32>
    %420 = arith.divf %418, %419 : vector<16x32xf32>
    %421 = vector.extract_strided_slice %402 {offsets = [0, 64], sizes = [16, 32], strides = [1, 1]} : vector<16x96xf32> to vector<16x32xf32>
    %422 = vector.extract_strided_slice %404 {offsets = [0, 64], sizes = [16, 32], strides = [1, 1]} : vector<16x96xf32> to vector<16x32xf32>
    %423 = arith.mulf %412, %422 : vector<16x32xf32>
    %424 = arith.addf %421, %423 : vector<16x32xf32>
    %425 = math.tanh %424 : vector<16x32xf32>
    %cst_96 = arith.constant 1.000000e+00 : f32
    %426 = vector.broadcast %cst_96 : f32 to vector<16x32xf32>
    %427 = arith.subf %426, %420 : vector<16x32xf32>
    %428 = arith.mulf %427, %425 : vector<16x32xf32>
    %429 = arith.mulf %420, %398 : vector<16x32xf32>
    %430 = arith.addf %428, %429 : vector<16x32xf32>
    %c6 = arith.constant 6 : index
    %c0_97 = arith.constant 0 : index
    %c0_98 = arith.constant 0 : index
    %431 = vector.load %arg1[%c6, %c0_97, %c0_98] : memref<8x16x2xf32, #tpu.memory_space<vmem>>, vector<1x16x2xf32>
    %432 = vector.shape_cast %431 : vector<1x16x2xf32> to vector<16x2xf32>
    %cst_99 = arith.constant dense<0.000000e+00> : vector<16x2xf32>
    %433 = tpu.matmul %0, %432, %cst_99 {dimension_numbers = #tpu.dot_dimension_numbers<[1], [0], [0], [1], [0, 0, 1, 1], [], []>} : vector<16x16xf32>, vector<16x2xf32>, vector<16x2xf32> -> vector<16x2xf32>
    %cst_100 = arith.constant dense<0.000000e+00> : vector<16x32xf32>
    %434 = tpu.matmul %0, %397, %cst_100 {dimension_numbers = #tpu.dot_dimension_numbers<[1], [0], [0], [1], [0, 0, 1, 1], [], []>} : vector<16x16xf32>, vector<16x32xf32>, vector<16x32xf32> -> vector<16x32xf32>
    %435 = vector.extract_strided_slice %433 {offsets = [0, 0], sizes = [16, 1], strides = [1, 1]} : vector<16x2xf32> to vector<16x1xf32>
    %436 = vector.broadcast %435 : vector<16x1xf32> to vector<16x96xf32>
    %437 = arith.mulf %436, %6 : vector<16x96xf32>
    %438 = arith.addf %437, %9 : vector<16x96xf32>
    %cst_101 = arith.constant dense<0.000000e+00> : vector<16x96xf32>
    %439 = tpu.matmul %434, %1, %cst_101 {dimension_numbers = #tpu.dot_dimension_numbers<[1], [0], [0], [1], [0, 0, 1, 1], [], []>} : vector<16x32xf32>, vector<32x96xf32>, vector<16x96xf32> -> vector<16x96xf32>
    %440 = arith.addf %439, %12 : vector<16x96xf32>
    %441 = vector.extract_strided_slice %438 {offsets = [0, 0], sizes = [16, 32], strides = [1, 1]} : vector<16x96xf32> to vector<16x32xf32>
    %442 = vector.extract_strided_slice %440 {offsets = [0, 0], sizes = [16, 32], strides = [1, 1]} : vector<16x96xf32> to vector<16x32xf32>
    %443 = arith.addf %441, %442 : vector<16x32xf32>
    %444 = arith.negf %443 : vector<16x32xf32>
    %445 = math.exp %444 : vector<16x32xf32>
    %cst_102 = arith.constant 1.000000e+00 : f32
    %446 = vector.broadcast %cst_102 : f32 to vector<16x32xf32>
    %447 = arith.addf %446, %445 : vector<16x32xf32>
    %448 = arith.divf %446, %447 : vector<16x32xf32>
    %449 = vector.extract_strided_slice %438 {offsets = [0, 32], sizes = [16, 32], strides = [1, 1]} : vector<16x96xf32> to vector<16x32xf32>
    %450 = vector.extract_strided_slice %440 {offsets = [0, 32], sizes = [16, 32], strides = [1, 1]} : vector<16x96xf32> to vector<16x32xf32>
    %451 = arith.addf %449, %450 : vector<16x32xf32>
    %452 = arith.negf %451 : vector<16x32xf32>
    %453 = math.exp %452 : vector<16x32xf32>
    %cst_103 = arith.constant 1.000000e+00 : f32
    %454 = vector.broadcast %cst_103 : f32 to vector<16x32xf32>
    %455 = arith.addf %454, %453 : vector<16x32xf32>
    %456 = arith.divf %454, %455 : vector<16x32xf32>
    %457 = vector.extract_strided_slice %438 {offsets = [0, 64], sizes = [16, 32], strides = [1, 1]} : vector<16x96xf32> to vector<16x32xf32>
    %458 = vector.extract_strided_slice %440 {offsets = [0, 64], sizes = [16, 32], strides = [1, 1]} : vector<16x96xf32> to vector<16x32xf32>
    %459 = arith.mulf %448, %458 : vector<16x32xf32>
    %460 = arith.addf %457, %459 : vector<16x32xf32>
    %461 = math.tanh %460 : vector<16x32xf32>
    %cst_104 = arith.constant 1.000000e+00 : f32
    %462 = vector.broadcast %cst_104 : f32 to vector<16x32xf32>
    %463 = arith.subf %462, %456 : vector<16x32xf32>
    %464 = arith.mulf %463, %461 : vector<16x32xf32>
    %465 = arith.mulf %456, %434 : vector<16x32xf32>
    %466 = arith.addf %464, %465 : vector<16x32xf32>
    %cst_105 = arith.constant dense<0.000000e+00> : vector<16x32xf32>
    %467 = tpu.matmul %0, %430, %cst_105 {dimension_numbers = #tpu.dot_dimension_numbers<[1], [0], [0], [1], [0, 0, 1, 1], [], []>} : vector<16x16xf32>, vector<16x32xf32>, vector<16x32xf32> -> vector<16x32xf32>
    %468 = vector.extract_strided_slice %433 {offsets = [0, 1], sizes = [16, 1], strides = [1, 1]} : vector<16x2xf32> to vector<16x1xf32>
    %469 = vector.broadcast %468 : vector<16x1xf32> to vector<16x96xf32>
    %470 = arith.mulf %469, %6 : vector<16x96xf32>
    %471 = arith.addf %470, %9 : vector<16x96xf32>
    %cst_106 = arith.constant dense<0.000000e+00> : vector<16x96xf32>
    %472 = tpu.matmul %467, %1, %cst_106 {dimension_numbers = #tpu.dot_dimension_numbers<[1], [0], [0], [1], [0, 0, 1, 1], [], []>} : vector<16x32xf32>, vector<32x96xf32>, vector<16x96xf32> -> vector<16x96xf32>
    %473 = arith.addf %472, %12 : vector<16x96xf32>
    %474 = vector.extract_strided_slice %471 {offsets = [0, 0], sizes = [16, 32], strides = [1, 1]} : vector<16x96xf32> to vector<16x32xf32>
    %475 = vector.extract_strided_slice %473 {offsets = [0, 0], sizes = [16, 32], strides = [1, 1]} : vector<16x96xf32> to vector<16x32xf32>
    %476 = arith.addf %474, %475 : vector<16x32xf32>
    %477 = arith.negf %476 : vector<16x32xf32>
    %478 = math.exp %477 : vector<16x32xf32>
    %cst_107 = arith.constant 1.000000e+00 : f32
    %479 = vector.broadcast %cst_107 : f32 to vector<16x32xf32>
    %480 = arith.addf %479, %478 : vector<16x32xf32>
    %481 = arith.divf %479, %480 : vector<16x32xf32>
    %482 = vector.extract_strided_slice %471 {offsets = [0, 32], sizes = [16, 32], strides = [1, 1]} : vector<16x96xf32> to vector<16x32xf32>
    %483 = vector.extract_strided_slice %473 {offsets = [0, 32], sizes = [16, 32], strides = [1, 1]} : vector<16x96xf32> to vector<16x32xf32>
    %484 = arith.addf %482, %483 : vector<16x32xf32>
    %485 = arith.negf %484 : vector<16x32xf32>
    %486 = math.exp %485 : vector<16x32xf32>
    %cst_108 = arith.constant 1.000000e+00 : f32
    %487 = vector.broadcast %cst_108 : f32 to vector<16x32xf32>
    %488 = arith.addf %487, %486 : vector<16x32xf32>
    %489 = arith.divf %487, %488 : vector<16x32xf32>
    %490 = vector.extract_strided_slice %471 {offsets = [0, 64], sizes = [16, 32], strides = [1, 1]} : vector<16x96xf32> to vector<16x32xf32>
    %491 = vector.extract_strided_slice %473 {offsets = [0, 64], sizes = [16, 32], strides = [1, 1]} : vector<16x96xf32> to vector<16x32xf32>
    %492 = arith.mulf %481, %491 : vector<16x32xf32>
    %493 = arith.addf %490, %492 : vector<16x32xf32>
    %494 = math.tanh %493 : vector<16x32xf32>
    %cst_109 = arith.constant 1.000000e+00 : f32
    %495 = vector.broadcast %cst_109 : f32 to vector<16x32xf32>
    %496 = arith.subf %495, %489 : vector<16x32xf32>
    %497 = arith.mulf %496, %494 : vector<16x32xf32>
    %498 = arith.mulf %489, %467 : vector<16x32xf32>
    %499 = arith.addf %497, %498 : vector<16x32xf32>
    %c7 = arith.constant 7 : index
    %c0_110 = arith.constant 0 : index
    %c0_111 = arith.constant 0 : index
    %500 = vector.load %arg1[%c7, %c0_110, %c0_111] : memref<8x16x2xf32, #tpu.memory_space<vmem>>, vector<1x16x2xf32>
    %501 = vector.shape_cast %500 : vector<1x16x2xf32> to vector<16x2xf32>
    %cst_112 = arith.constant dense<0.000000e+00> : vector<16x2xf32>
    %502 = tpu.matmul %0, %501, %cst_112 {dimension_numbers = #tpu.dot_dimension_numbers<[1], [0], [0], [1], [0, 0, 1, 1], [], []>} : vector<16x16xf32>, vector<16x2xf32>, vector<16x2xf32> -> vector<16x2xf32>
    %cst_113 = arith.constant dense<0.000000e+00> : vector<16x32xf32>
    %503 = tpu.matmul %0, %466, %cst_113 {dimension_numbers = #tpu.dot_dimension_numbers<[1], [0], [0], [1], [0, 0, 1, 1], [], []>} : vector<16x16xf32>, vector<16x32xf32>, vector<16x32xf32> -> vector<16x32xf32>
    %504 = vector.extract_strided_slice %502 {offsets = [0, 0], sizes = [16, 1], strides = [1, 1]} : vector<16x2xf32> to vector<16x1xf32>
    %505 = vector.broadcast %504 : vector<16x1xf32> to vector<16x96xf32>
    %506 = arith.mulf %505, %6 : vector<16x96xf32>
    %507 = arith.addf %506, %9 : vector<16x96xf32>
    %cst_114 = arith.constant dense<0.000000e+00> : vector<16x96xf32>
    %508 = tpu.matmul %503, %1, %cst_114 {dimension_numbers = #tpu.dot_dimension_numbers<[1], [0], [0], [1], [0, 0, 1, 1], [], []>} : vector<16x32xf32>, vector<32x96xf32>, vector<16x96xf32> -> vector<16x96xf32>
    %509 = arith.addf %508, %12 : vector<16x96xf32>
    %510 = vector.extract_strided_slice %507 {offsets = [0, 0], sizes = [16, 32], strides = [1, 1]} : vector<16x96xf32> to vector<16x32xf32>
    %511 = vector.extract_strided_slice %509 {offsets = [0, 0], sizes = [16, 32], strides = [1, 1]} : vector<16x96xf32> to vector<16x32xf32>
    %512 = arith.addf %510, %511 : vector<16x32xf32>
    %513 = arith.negf %512 : vector<16x32xf32>
    %514 = math.exp %513 : vector<16x32xf32>
    %cst_115 = arith.constant 1.000000e+00 : f32
    %515 = vector.broadcast %cst_115 : f32 to vector<16x32xf32>
    %516 = arith.addf %515, %514 : vector<16x32xf32>
    %517 = arith.divf %515, %516 : vector<16x32xf32>
    %518 = vector.extract_strided_slice %507 {offsets = [0, 32], sizes = [16, 32], strides = [1, 1]} : vector<16x96xf32> to vector<16x32xf32>
    %519 = vector.extract_strided_slice %509 {offsets = [0, 32], sizes = [16, 32], strides = [1, 1]} : vector<16x96xf32> to vector<16x32xf32>
    %520 = arith.addf %518, %519 : vector<16x32xf32>
    %521 = arith.negf %520 : vector<16x32xf32>
    %522 = math.exp %521 : vector<16x32xf32>
    %cst_116 = arith.constant 1.000000e+00 : f32
    %523 = vector.broadcast %cst_116 : f32 to vector<16x32xf32>
    %524 = arith.addf %523, %522 : vector<16x32xf32>
    %525 = arith.divf %523, %524 : vector<16x32xf32>
    %526 = vector.extract_strided_slice %507 {offsets = [0, 64], sizes = [16, 32], strides = [1, 1]} : vector<16x96xf32> to vector<16x32xf32>
    %527 = vector.extract_strided_slice %509 {offsets = [0, 64], sizes = [16, 32], strides = [1, 1]} : vector<16x96xf32> to vector<16x32xf32>
    %528 = arith.mulf %517, %527 : vector<16x32xf32>
    %529 = arith.addf %526, %528 : vector<16x32xf32>
    %530 = math.tanh %529 : vector<16x32xf32>
    %cst_117 = arith.constant 1.000000e+00 : f32
    %531 = vector.broadcast %cst_117 : f32 to vector<16x32xf32>
    %532 = arith.subf %531, %525 : vector<16x32xf32>
    %533 = arith.mulf %532, %530 : vector<16x32xf32>
    %534 = arith.mulf %525, %503 : vector<16x32xf32>
    %535 = arith.addf %533, %534 : vector<16x32xf32>
    %cst_118 = arith.constant dense<0.000000e+00> : vector<16x32xf32>
    %536 = tpu.matmul %0, %499, %cst_118 {dimension_numbers = #tpu.dot_dimension_numbers<[1], [0], [0], [1], [0, 0, 1, 1], [], []>} : vector<16x16xf32>, vector<16x32xf32>, vector<16x32xf32> -> vector<16x32xf32>
    %537 = vector.extract_strided_slice %502 {offsets = [0, 1], sizes = [16, 1], strides = [1, 1]} : vector<16x2xf32> to vector<16x1xf32>
    %538 = vector.broadcast %537 : vector<16x1xf32> to vector<16x96xf32>
    %539 = arith.mulf %538, %6 : vector<16x96xf32>
    %540 = arith.addf %539, %9 : vector<16x96xf32>
    %cst_119 = arith.constant dense<0.000000e+00> : vector<16x96xf32>
    %541 = tpu.matmul %536, %1, %cst_119 {dimension_numbers = #tpu.dot_dimension_numbers<[1], [0], [0], [1], [0, 0, 1, 1], [], []>} : vector<16x32xf32>, vector<32x96xf32>, vector<16x96xf32> -> vector<16x96xf32>
    %542 = arith.addf %541, %12 : vector<16x96xf32>
    %543 = vector.extract_strided_slice %540 {offsets = [0, 0], sizes = [16, 32], strides = [1, 1]} : vector<16x96xf32> to vector<16x32xf32>
    %544 = vector.extract_strided_slice %542 {offsets = [0, 0], sizes = [16, 32], strides = [1, 1]} : vector<16x96xf32> to vector<16x32xf32>
    %545 = arith.addf %543, %544 : vector<16x32xf32>
    %546 = arith.negf %545 : vector<16x32xf32>
    %547 = math.exp %546 : vector<16x32xf32>
    %cst_120 = arith.constant 1.000000e+00 : f32
    %548 = vector.broadcast %cst_120 : f32 to vector<16x32xf32>
    %549 = arith.addf %548, %547 : vector<16x32xf32>
    %550 = arith.divf %548, %549 : vector<16x32xf32>
    %551 = vector.extract_strided_slice %540 {offsets = [0, 32], sizes = [16, 32], strides = [1, 1]} : vector<16x96xf32> to vector<16x32xf32>
    %552 = vector.extract_strided_slice %542 {offsets = [0, 32], sizes = [16, 32], strides = [1, 1]} : vector<16x96xf32> to vector<16x32xf32>
    %553 = arith.addf %551, %552 : vector<16x32xf32>
    %554 = arith.negf %553 : vector<16x32xf32>
    %555 = math.exp %554 : vector<16x32xf32>
    %cst_121 = arith.constant 1.000000e+00 : f32
    %556 = vector.broadcast %cst_121 : f32 to vector<16x32xf32>
    %557 = arith.addf %556, %555 : vector<16x32xf32>
    %558 = arith.divf %556, %557 : vector<16x32xf32>
    %559 = vector.extract_strided_slice %540 {offsets = [0, 64], sizes = [16, 32], strides = [1, 1]} : vector<16x96xf32> to vector<16x32xf32>
    %560 = vector.extract_strided_slice %542 {offsets = [0, 64], sizes = [16, 32], strides = [1, 1]} : vector<16x96xf32> to vector<16x32xf32>
    %561 = arith.mulf %550, %560 : vector<16x32xf32>
    %562 = arith.addf %559, %561 : vector<16x32xf32>
    %563 = math.tanh %562 : vector<16x32xf32>
    %cst_122 = arith.constant 1.000000e+00 : f32
    %564 = vector.broadcast %cst_122 : f32 to vector<16x32xf32>
    %565 = arith.subf %564, %558 : vector<16x32xf32>
    %566 = arith.mulf %565, %563 : vector<16x32xf32>
    %567 = arith.mulf %558, %536 : vector<16x32xf32>
    %568 = arith.addf %566, %567 : vector<16x32xf32>
    %cst_123 = arith.constant dense<0.000000e+00> : vector<4x16xf32>
    %569 = tpu.matmul %2, %535, %cst_123 {dimension_numbers = #tpu.dot_dimension_numbers<[1], [1], [0], [0], [0, 0, 1, 0], [], []>} : vector<4x32xf32>, vector<16x32xf32>, vector<4x16xf32> -> vector<4x16xf32>
    %570 = vector.broadcast %3 : vector<4x1xf32> to vector<4x16xf32>
    %571 = arith.addf %569, %570 : vector<4x16xf32>
    %c0_124 = arith.constant 0 : index
    %c0_125 = arith.constant 0 : index
    %c0_126 = arith.constant 0 : index
    %572 = vector.load %arg9[%c0_124, %c0_125, %c0_126] : memref<2x4x16xf32, #tpu.memory_space<vmem>>, vector<1x4x16xf32>
    %573 = vector.shape_cast %572 : vector<1x4x16xf32> to vector<4x16xf32>
    %574 = vector.shape_cast %571 : vector<4x16xf32> to vector<1x4x16xf32>
    tpu.vector_store %arg9[%c0_124, %c0_125, %c0_126], %574 {strides = array<i32>} : memref<2x4x16xf32, #tpu.memory_space<vmem>>, vector<1x4x16xf32>,
    %cst_127 = arith.constant dense<0.000000e+00> : vector<4x16xf32>
    %575 = tpu.matmul %2, %568, %cst_127 {dimension_numbers = #tpu.dot_dimension_numbers<[1], [1], [0], [0], [0, 0, 1, 0], [], []>} : vector<4x32xf32>, vector<16x32xf32>, vector<4x16xf32> -> vector<4x16xf32>
    %576 = vector.broadcast %3 : vector<4x1xf32> to vector<4x16xf32>
    %577 = arith.addf %575, %576 : vector<4x16xf32>
    %c1_128 = arith.constant 1 : index
    %c0_129 = arith.constant 0 : index
    %c0_130 = arith.constant 0 : index
    %578 = vector.load %arg9[%c1_128, %c0_129, %c0_130] : memref<2x4x16xf32, #tpu.memory_space<vmem>>, vector<1x4x16xf32>
    %579 = vector.shape_cast %578 : vector<1x4x16xf32> to vector<4x16xf32>
    %580 = vector.shape_cast %577 : vector<4x16xf32> to vector<1x4x16xf32>
    tpu.vector_store %arg9[%c1_128, %c0_129, %c0_130], %580 {strides = array<i32>} : memref<2x4x16xf32, #tpu.memory_space<vmem>>, vector<1x4x16xf32>,
    return
  }
}

</mosaic_0001>

<bundles_post_ra>
// kernel: tgcn_forward.1
= control target key start
LH: loop header
LB: loop body
LE: loop exit
PB: predicated region body
PF: predicated region fallthrough
CT: control target
= control target key end

     0   :  { %vm60_vm0 = vcmask 130048   ;;  %s4417_s0 = inlined_call_operand.vmem [shape: f32[16,16], index: 0, kind: input, shape index: {}]   ;;  %s4418_s1 = inlined_call_operand.vmem [shape: f32[8,16,2], index: 1, kind: input, shape index: {}]   ;;  %s4419_s2 = inlined_call_operand.vmem [shape: f32[2,16,32], index: 2, kind: input, shape index: {}]   ;;  %s4420_s3 = inlined_call_operand.vmem [shape: f32[1,96], index: 3, kind: input, shape index: {}]   ;;  %s4421_s4 = inlined_call_operand.vmem [shape: f32[32,96], index: 4, kind: input, shape index: {}]   ;;  %s4422_s5 = inlined_call_operand.vmem [shape: f32[1,96], index: 5, kind: input, shape index: {}]   ;;  %s4423_s6 = inlined_call_operand.vmem [shape: f32[1,96], index: 6, kind: input, shape index: {}]   ;;  %s4424_s7 = inlined_call_operand.vmem [shape: f32[4,32], index: 7, kind: input, shape index: {}]   ;;  %s4425_s8 = inlined_call_operand.vmem [shape: f32[4,1], index: 8, kind: input, shape index: {}]   ;;  %s4426_s9 = inlined_call_operand.hbm [shape: f32[2,4,16], index: 9, kind: output, shape index: {}]  }
   0x1   :  { %v54_v0 = vld [vmem:[%s4419_s2 + $0x8] sm:$0xff]  ;;  %v2860_v1 = vld [vmem:[%s4419_s2 + $0x18] sm:$0xff]  ;;  %v53_v2 = vld [vmem:[%s4419_s2] sm:$0xff] }
   0x2   :  { %104 = vmatpush.msra.mxu1 %v54_v0  ;;  %255 = vmatpush.msra.mxu3 %v2860_v1  ;;  %v2859_v3 = vld [vmem:[%s4419_s2 + $0x10] sm:$0xff]  ;;  %v3403_v4 = vld [vmem:[%s4417_s0] sm:$0xff]  ;;  %v59_v5 = vld [vmem:[%s4418_s1 + $0x8] sm:$0xff] }
   0x3   :  { %81 = vmatpush.msra.mxu0 %v59_v5  ;;  %v58_v6 = vld [vmem:[%s4418_s1] sm:$0xff]  ;;  %v3414_v7 = vld [vmem:[%s4421_s4 + $0x18] sm:$0xff]  ;;  %v3419_v8 = vld [vmem:[%s4421_s4 + $0x10] sm:$0xff] }
   0x4   :  { %105 = vmatpush.msra.mxu1 %v53_v2  ;;  %256 = vmatpush.msra.mxu3 %v2859_v3 }
   0x5   :  { %2863 = vmatmul.msk.f32.vlgmr.msra.gmra.mxu1 %vm60_vm0, %v3403_v4  ;;  %2869 = vmatmul.msk.f32.vlgmr.msra.gmra.mxu3 %vm60_vm0, %v3403_v4 }
   0x6   :  { %14 = vsyncpa [#allocation3], 0  ;;  %82 = vmatpush.msra.mxu0 %v58_v6  ;;  %146 = vmatpush.msra.mxu2 %v3414_v7  ;;  %v3431_v9 = vld [vmem:[%s4421_s4 + $0x8] sm:$0xff]  ;;  %v3452_v11 = vld [vmem:[%s4421_s4] sm:$0xff]  ;;  %v3331_v12 = vmov 0   ;;  %v3332_v13 = vmov 1  }
   0x7   :  { %2861 = vmatmul.msk.f32.vlgmr.msra.gmra.mxu0 %vm60_vm0, %v3403_v4  ;;  %v3438_v10 = vld [vmem:[%s4417_s0 + $0x8] sm:$0xff]  ;;  %3002 = vset.pattern.permute.xlu1 %v3331_v12  ;;  %vm127_vm1 = vcmask 261120   ;;  %v3485_v20 = vld [vmem:[%s4423_s6] ss:$0 sm:$0xff]  ;;  %s3333_s13 = smov 64   ;;  %s3334_s18 = smov 32  }
   0x8   :  { %147 = vmatpush.msra.mxu2 %v3419_v8  ;;  %294 = vmatpush.msrb.mxu0 %v3414_v7  ;;  %v3498_v30 = vld [vmem:[%s4420_s3] ss:$0 sm:$0xff]  ;;  %s3335_s23 = smov 96   ;;  %s2847_s24 = sshll.u32 %s4426_s9, 4  ;;  %s2848_s24 = int_to_ptr.hbm [resolvable:$true] %s2847_s24 }
   0x9   :  { %3000 = vset.pattern.permute.xlu0 %v3331_v12  ;;  %3014 = vset.pattern.permute.xlu2 %v3332_v13  ;;  %v3504_v32 = vld [vmem:[%s4422_s5] ss:$0 sm:$0xff]  ;;  %s3337_s25 = smov 4  }
   0xa   :  { %148 = vmatpush.msra.mxu2 %v3431_v9  ;;  %295 = vmatpush.msrb.mxu0 %v3419_v8 }
   0xc   :  { %296 = vmatpush.msrb.mxu0 %v3431_v9  ;;  %149 = vmatpush.msra.mxu2 %v3452_v11 }
   0xd   :  { %2864 = vmatmul.msk.f32.gmra.mxu1 %vm60_vm0, %v3438_v10  ;;  %2870 = vmatmul.msk.f32.gmra.mxu3 %vm60_vm0, %v3438_v10 }
   0xe   :  { %297 = vmatpush.msrb.mxu0 %v3452_v11  ;;  %478 = vmatpush.msrb.mxu2 %v3414_v7 }
   0xf   :  { %2862 = vmatmul.msk.f32.gmra.mxu0 %vm60_vm0, %v3438_v10 }
  0x10   :  { %479 = vmatpush.msrb.mxu2 %v3419_v8 }
  0x12   :  { %480 = vmatpush.msrb.mxu2 %v3431_v9 }
  0x14   :  { %481 = vmatpush.msrb.mxu2 %v3452_v11 }
  0x82   :  { %v3463_v14 = vpop.f32.mrf.mxu1 }
  0x83   :  { %2865 = vmatmul.msk.f32.vlgmr.msra.gmra.mxu2 %vm127_vm1, %v3463_v14 }
  0x84   :  { %v84_v15 = vpop.f32.mrf.mxu0 }
  0x85   :  { %115 = vperm.xlu1 %3002, %v84_v15  }
  0x88   :  { %v3467_v16 = vpop.f32.mrf.mxu3 }
  0x89   :  { %2871 = vmatmul.msk.f32.vlgmr.msrb.gmra.mxu0 %vm127_vm1, %v3467_v16 }
  0x8a   :  { %v3471_v17 = vpop.f32.mrf.mxu1 }
  0x8b   :  { %2866 = vmatmul.msk.f32.gmra.mxu2 %vm127_vm1, %v3471_v17 }
  0x8c   :  { %v87_v18 = vpop.f32.mrf.mxu0 }
  0x8d   :  { %3003 = vset.pattern.permute.xlu1 %v3332_v13  ;;  %120 = vperm.xlu0 %3000, %v87_v18  }
  0x8e   :  { %265 = vperm.xlu1 %3003, %v84_v15  }
  0x90   :  { %v3476_v19 = vpop.f32.mrf.mxu3 }
  0x91   :  { %2872 = vmatmul.msk.f32.gmra.mxu0 %vm127_vm1, %v3476_v19 }
  0x95   :  { %3001 = vset.pattern.permute.xlu0 %v3332_v13 }
  0x96   :  { %269 = vperm.xlu0 %3001, %v87_v18   ;;  %3015 = vset.pattern.permute.xlu1 %v3331_v12 }
  0xf7   :  { %v116_v33 = vpop.permute.xlu1 %115 }
  0xf8   :  { %v123_v41 = vmul.f32 %v3498_v30, %v116_v33 }
  0xfa   :  { %v3518_v44 = vadd.f32 %v3504_v32, %v123_v41 }
  0xff   :  { %v121_v29 = vpop.permute.xlu0 %120 }
 0x100   :  { %v124_v31 = vmul.f32 %v3498_v30, %v121_v29  ;;  %v266_v40 = vpop.permute.xlu1 %265 }
 0x101   :  { %v272_v42 = vmul.f32 %v3498_v30, %v266_v40 }
 0x102   :  { %v3507_v34 = vadd.f32 %v3504_v32, %v124_v31 }
 0x103   :  { %v3521_v45 = vadd.f32 %v3504_v32, %v272_v42 }
 0x106   :  { %v151_v21 = vpop.f32.mrf.mxu2  ;;  %v299_v23 = vpop.f32.mrf.mxu0 }
 0x107   :  { %v152_v22 = vadd.f32 %v3485_v20, %v151_v21  ;;  %v300_v28 = vadd.f32 %v3485_v20, %v299_v23 }
 0x108   :  { %v270_v35 = vpop.permute.xlu0 %269 }
 0x109   :  { %199 = vrot.lane.b32.xlu1 %v152_v22, %s3333_s13  ;;  %v273_v36 = vmul.f32 %v3498_v30, %v270_v35  ;;  %v157_v48 = vadd.f32 %v152_v22, %v3518_v44  ;;  %v305_v49 = vadd.f32 %v300_v28, %v3521_v45 }
 0x10b   :  { %v3512_v38 = vadd.f32 %v3504_v32, %v273_v36  ;;  %v2867_v51 = vmul.f32 -1.442695, %v157_v48  ;;  %v2873_v52 = vmul.f32 -1.442695, %v305_v49 }
 0x10e   :  { %v154_v24 = vpop.f32.mrf.mxu2  ;;  %v302_v26 = vpop.f32.mrf.mxu0 }
 0x10f   :  { %v155_v25 = vadd.f32 %v3485_v20, %v154_v24  ;;  %v303_v27 = vadd.f32 %v3485_v20, %v302_v26 }
 0x111   :  { %201 = vrot.lane.b32.xlu2 %v155_v25, %s3333_s13  ;;  %v158_v37 = vadd.f32 %v155_v25, %v3507_v34  ;;  %v306_v43 = vadd.f32 %v303_v27, %v3512_v38 }
 0x113   :  { %v2868_v39 = vmul.f32 -1.442695, %v158_v37  ;;  %v2874_v46 = vmul.f32 -1.442695, %v306_v43 }
 0x115   :  { %3095 = vpow2.f32 %v2868_v39 }
 0x116   :  { %3097 = vpow2.f32 %v2874_v46 }
 0x119   :  { %349 = vrot.lane.b32.xlu2 %v303_v27, %s3333_s13 }
 0x11b   :  { %v3096_v47 = vpop.eup %3095 }
 0x11c   :  { %v166_v50 = vadd.f32 1.0, %v3096_v47  ;;  %v3098_v53 = vpop.eup %3097 }
 0x11d   :  { %v314_v54 = vadd.f32 1.0, %v3098_v53 }
 0x11e   :  { %3099 = vrcp.f32 %v166_v50  ;;  %v193_v6 = vand.u32 2147483648, %v166_v50  ;;  %vm187_vm3 = vweird.f32 %v166_v50  ;;  %v191_v15 = vand.u32 2147483647, %v166_v50 }
 0x11f   :  { %3101 = vpow2.f32 %v2867_v51  ;;  %vm335_vm6 = vweird.f32 %v314_v54  ;;  %v341_v33 = vand.u32 2147483648, %v314_v54  ;;  %v339_v35 = vand.u32 2147483647, %v314_v54 }
 0x120   :  { %3103 = vpow2.f32 %v2873_v52  ;;  %v194_v24 = vor.u32 1.1754944e-38, %v193_v6  ;;  %vm192_vm5 = vcmp.eq.f32.partialorder %v191_v15, 8.507059e+37 }
 0x121   :  { %347 = vrot.lane.b32.xlu2 %v300_v28, %s3333_s13  ;;  %3105 = vrcp.f32 %v314_v54  ;;  %v342_v40 = vor.u32 1.1754944e-38, %v341_v33  ;;  %vm340_vm9 = vcmp.eq.f32.partialorder %v339_v35, 8.507059e+37 }
 0x124   :  { %v3100_v55 = vpop.eup %3099 }
 0x125   :  { %v3102_v56 = vpop.eup %3101  ;;  %v183_v58 = vmul.f32 %v3100_v55, %v166_v50  ;;  %vm188_vm2 = vweird.f32 %v3100_v55 }
 0x126   :  { %v3104_v57 = vpop.eup %3103  ;;  %v165_v59 = vadd.f32 1.0, %v3102_v56  ;;  %vm189_vm4 = vmor %vm187_vm3, %vm188_vm2 }
 0x127   :  { %v313_v60 = vadd.f32 1.0, %v3104_v57  ;;  %v184_v61 = vsub.f32 1.0, %v183_v58  ;;  %v3106_v62 = vpop.eup %3105 }
 0x128   :  { %3107 = vrcp.f32 %v165_v59  ;;  %v331_v0 = vmul.f32 %v3106_v62, %v314_v54  ;;  %vm336_vm7 = vweird.f32 %v3106_v62  ;;  %vm172_vm13 = vweird.f32 %v165_v59 }
 0x129   :  { %3109 = vrcp.f32 %v313_v60  ;;  %v185_v63 = vmul.f32 %v3100_v55, %v184_v61  ;;  %vm337_vm8 = vmor %vm335_vm6, %vm336_vm7  ;;  %vm320_vm11 = vweird.f32 %v313_v60  ;;  %v178_v48 = vand.u32 2147483648, %v165_v59 }
 0x12a   :  { %v332_v3 = vsub.f32 1.0, %v331_v0  ;;  %v326_v49 = vand.u32 2147483648, %v313_v60  ;;  %v176_v50 = vand.u32 2147483647, %v165_v59  ;;  %v324_v51 = vand.u32 2147483647, %v313_v60 }
 0x12b   :  { %v186_v2 = vadd.f32 %v3100_v55, %v185_v63  ;;  %v179_v54 = vor.u32 1.1754944e-38, %v178_v48 }
 0x12c   :  { %v333_v22 = vmul.f32 %v3106_v62, %v332_v3  ;;  %vm177_vm2 = vcmp.eq.f32.partialorder %v176_v50, 8.507059e+37  ;;  %vm325_vm3 = vcmp.eq.f32.partialorder %v324_v51, 8.507059e+37 }
 0x12d   :  { %v190_v21 = vsel %vm189_vm4, %v3100_v55, %v186_v2  ;;  %v327_v55 = vor.u32 1.1754944e-38, %v326_v49 }
 0x12e   :  { %v3108_v1 = vpop.eup %3107  ;;  %v3525_v26 = vsel %vm192_vm5, %v194_v24, %v190_v21  ;;  %v334_v29 = vadd.f32 %v3106_v62, %v333_v22 }
 0x12f   :  { %v3110_v5 = vpop.eup %3109  ;;  %v168_v18 = vmul.f32 %v3108_v1, %v165_v59  ;;  %vm173_vm10 = vweird.f32 %v3108_v1  ;;  %v2876_v59 = vld [vmem:[%s4418_s1 + $0x18] sm:$0xff] }
 0x130   :  { %v316_v23 = vmul.f32 %v3110_v5, %v313_v60  ;;  %v338_v36 = vsel %vm337_vm8, %v3106_v62, %v334_v29  ;;  %vm321_vm12 = vweird.f32 %v3110_v5  ;;  %vm174_vm14 = vmor %vm172_vm13, %vm173_vm10  ;;  %v2875_v60 = vld [vmem:[%s4418_s1 + $0x10] sm:$0xff]  ;;  %406 = vmatpush.msrb.mxu1 %v2876_v59 }
 0x131   :  { %v169_v27 = vsub.f32 1.0, %v168_v18  ;;  %v3529_v42 = vsel %vm340_vm9, %v342_v40, %v338_v36  ;;  %vm322_vm15 = vmor %vm320_vm11, %vm321_vm12 }
 0x132   :  { %v317_v31 = vsub.f32 1.0, %v316_v23  ;;  %407 = vmatpush.msrb.mxu1 %v2875_v60  ;;  %v2892_v60 = vld [vmem:[%s4418_s1 + $0x28] sm:$0xff] }
 0x133   :  { %v170_v37 = vmul.f32 %v3108_v1, %v169_v27  ;;  %2877 = vmatmul.msk.f32.vlgmr.msrb.gmra.mxu1 %vm60_vm0, %v3403_v4 }
 0x134   :  { %v318_v39 = vmul.f32 %v3110_v5, %v317_v31  ;;  %634 = vmatpush.msra.mxu1 %v3414_v7 }
 0x135   :  { %v171_v46 = vadd.f32 %v3108_v1, %v170_v37 }
 0x136   :  { %v319_v47 = vadd.f32 %v3110_v5, %v318_v39  ;;  %635 = vmatpush.msra.mxu1 %v3419_v8 }
 0x137   :  { %v175_v52 = vsel %vm174_vm14, %v3108_v1, %v171_v46 }
 0x138   :  { %v323_v53 = vsel %vm322_vm15, %v3110_v5, %v319_v47  ;;  %v3533_v56 = vsel %vm177_vm2, %v179_v54, %v175_v52  ;;  %636 = vmatpush.msra.mxu1 %v3431_v9 }
 0x139   :  { %v3535_v61 = vsel %vm325_vm3, %v327_v55, %v323_v53  ;;  %v219_v35 = vsub.f32 1.0, %v3533_v56 }
 0x13a   :  { %637 = vmatpush.msra.mxu1 %v3452_v11  ;;  %v367_v37 = vsub.f32 1.0, %v3535_v61 }
 0x13b   :  { %2878 = vmatmul.msk.f32.gmra.mxu1 %vm60_vm0, %v3438_v10 }
 0x16b   :  { %v202_v25 = vpop.permute.xlu2 %201 }
 0x16c   :  { %v206_v28 = vmul.f32 %v202_v25, %v3525_v26  ;;  %v368_v25 = vsub.f32 1.0, %v3529_v42 }
 0x16e   :  { %211 = vrot.lane.b32.xlu0 %v206_v28, %s3333_s13 }
 0x173   :  { %v350_v41 = vpop.permute.xlu2 %349 }
 0x174   :  { %v354_v43 = vmul.f32 %v350_v41, %v3529_v42 }
 0x176   :  { %359 = vrot.lane.b32.xlu1 %v354_v43, %s3333_s13 }
 0x17b   :  { %v200_v57 = vpop.permute.xlu1 %199  ;;  %v348_v58 = vpop.permute.xlu2 %347 }
 0x17c   :  { %v205_v62 = vmul.f32 %v200_v57, %v3533_v56  ;;  %v353_v63 = vmul.f32 %v348_v58, %v3535_v61 }
 0x17e   :  { %381 = vrot.lane.b32.xlu1 %v3476_v19, %s3334_s18  ;;  %209 = vrot.lane.b32.xlu2 %v205_v62, %s3333_s13 }
 0x17f   :  { %357 = vrot.lane.b32.xlu0 %v353_v63, %s3333_s13 }
 0x186   :  { %233 = vrot.lane.b32.xlu2 %v3471_v17, %s3334_s18 }
 0x1b0   :  { %v409_v48 = vpop.f32.mrf.mxu1 }
 0x1d8   :  { %v210_v0 = vpop.permute.xlu2 %209 }
 0x1d9   :  { %v215_v19 = vadd.f32 %v210_v0, %v3518_v44 }
 0x1db   :  { %3111 = vtanh.f32 %v215_v19 }
 0x1e0   :  { %v212_v17 = vpop.permute.xlu0 %211  ;;  %v234_v21 = vpop.permute.xlu2 %233 }
 0x1e1   :  { %v3112_v1 = vpop.eup %3111  ;;  %v216_v2 = vadd.f32 %v212_v17, %v3507_v34 }
 0x1e2   :  { %223 = vrot.lane.b32.xlu2 %v3112_v1, %s3335_s23 }
 0x1e3   :  { %3113 = vtanh.f32 %v216_v2 }
 0x1e8   :  { %v360_v44 = vpop.permute.xlu1 %359 }
 0x1e9   :  { %v3114_v3 = vpop.eup %3113  ;;  %v364_v5 = vadd.f32 %v360_v44, %v3512_v38 }
 0x1ea   :  { %225 = vrot.lane.b32.xlu1 %v3114_v3, %s3335_s23  ;;  %379 = vrot.lane.b32.xlu2 %v3467_v16, %s3334_s18  ;;  %v220_v16 = vsub.f32 1.0, %v3525_v26 }
 0x1eb   :  { %3115 = vtanh.f32 %v364_v5 }
 0x1f0   :  { %v382_v38 = vpop.permute.xlu1 %381 }
 0x1f1   :  { %v3116_v6 = vpop.eup %3115  ;;  %v358_v15 = vpop.permute.xlu0 %357  ;;  %v386_v28 = vmul.f32 %v382_v38, %v3529_v42 }
 0x1f2   :  { %v363_v18 = vadd.f32 %v358_v15, %v3521_v45  ;;  %373 = vrot.lane.b32.xlu0 %v3116_v6, %s3335_s23  ;;  %v238_v45 = vmul.f32 %v234_v21, %v3525_v26 }
 0x1f4   :  { %3117 = vtanh.f32 %v363_v18 }
 0x1fa   :  { %v3118_v34 = vpop.eup %3117  ;;  %231 = vrot.lane.b32.xlu0 %v3463_v14, %s3334_s18 }
 0x1fb   :  { %371 = vrot.lane.b32.xlu1 %v3118_v34, %s3335_s23 }
 0x23c   :  { %v224_v23 = vpop.permute.xlu2 %223 }
 0x23d   :  { %v229_v40 = vmul.f32 %v224_v23, %v219_v35 }
 0x244   :  { %v380_v36 = vpop.permute.xlu2 %379 }
 0x245   :  { %v385_v26 = vmul.f32 %v380_v36, %v3535_v61  ;;  %v2891_v36 = vld [vmem:[%s4418_s1 + $0x20] sm:$0xff] }
 0x25c   :  { %v226_v22 = vpop.permute.xlu1 %225 }
 0x25d   :  { %v230_v24 = vmul.f32 %v226_v22, %v220_v16 }
 0x25f   :  { %v240_v31 = vadd.f32 %v238_v45, %v230_v24 }
 0x264   :  { %v374_v27 = vpop.permute.xlu0 %373 }
 0x265   :  { %v378_v29 = vmul.f32 %v374_v27, %v368_v25 }
 0x267   :  { %v388_v33 = vadd.f32 %v386_v28, %v378_v29 }
 0x269   :  { %v3004_v14 = vpack.i.bf16 %v388_v33, %v240_v31 }
 0x26b   :  { %3005 = vrot.lane.b32.xlu0 %v3004_v14, %s3335_s23 }
 0x26c   :  { %v232_v39 = vpop.permute.xlu0 %231 }
 0x26d   :  { %v372_v41 = vpop.permute.xlu1 %371  ;;  %v237_v43 = vmul.f32 %v232_v39, %v3533_v56  ;;  %v412_v56 = vpop.f32.mrf.mxu1 }
 0x26e   :  { %v377_v46 = vmul.f32 %v372_v41, %v367_v37  ;;  %609 = vperm.xlu2 %3014, %v412_v56  }
 0x26f   :  { %v239_v42 = vadd.f32 %v237_v43, %v229_v40 }
 0x270   :  { %v387_v47 = vadd.f32 %v385_v26, %v377_v46 }
 0x272   :  { %v3009_v49 = vpack.i.bf16 %v387_v47, %v239_v42 }
 0x273   :  { %605 = vperm.xlu0 %3001, %v409_v48  }
 0x274   :  { %3010 = vrot.lane.b32.xlu1 %v3009_v49, %s3335_s23 }
 0x276   :  { %3016 = vset.pattern.permute.xlu2 %v3331_v12 }
 0x277   :  { %448 = vperm.xlu2 %3016, %v409_v48  }
 0x27c   :  { %453 = vperm.xlu1 %3015, %v412_v56  }
 0x284   :  { %3027 = vset.pattern.permute.xlu1 %v3332_v13 }
 0x2c8   :  { %v610_v38 = vpop.permute.xlu2 %609 }
 0x2c9   :  { %v613_v23 = vmul.f32 %v3498_v30, %v610_v38 }
 0x2cb   :  { %v3634_v25 = vadd.f32 %v3504_v32, %v613_v23 }
 0x2d1   :  { %v449_v27 = vpop.permute.xlu2 %448 }
 0x2d2   :  { %v456_v28 = vmul.f32 %v3498_v30, %v449_v27 }
 0x2d4   :  { %v3639_v33 = vadd.f32 %v3504_v32, %v456_v28 }
 0x2dd   :  { %v3006_v50 = vpop.permute.xlu0 %3005 }
 0x2de   :  { %v3008_v51 = vunpack.i.h.bf16 %v3006_v50  ;;  %v3007_v52 = vunpack.i.l.bf16 %v3006_v50 }
 0x2e0   :  { %437 = vmatpush.msrb.mxu3 %v3007_v52  ;;  %595 = vmatpush.msra.mxu0 %v3008_v51 }
 0x2e5   :  { %v606_v6 = vpop.permute.xlu0 %605 }
 0x2e6   :  { %v3011_v53 = vpop.permute.xlu1 %3010  ;;  %v612_v18 = vmul.f32 %v3498_v30, %v606_v6 }
 0x2e7   :  { %v3013_v54 = vunpack.i.h.bf16 %v3011_v53  ;;  %v3012_v55 = vunpack.i.l.bf16 %v3011_v53 }
 0x2e8   :  { %v3629_v21 = vadd.f32 %v3504_v32, %v612_v18 }
 0x2e9   :  { %438 = vmatpush.msrb.mxu3 %v3012_v55  ;;  %596 = vmatpush.msra.mxu0 %v3013_v54 }
 0x2ea   :  { %2879 = vmatmul.msk.f32.vlgmr.msrb.gmra.mxu3 %vm60_vm0, %v3403_v4  ;;  %2885 = vmatmul.msk.f32.vlgmr.msra.gmra.mxu0 %vm60_vm0, %v3403_v4 }
 0x2eb   :  { %818 = vmatpush.msrb.mxu0 %v3414_v7  ;;  %746 = vmatpush.msra.mxu3 %v2892_v60 }
 0x2ed   :  { %819 = vmatpush.msrb.mxu0 %v3419_v8  ;;  %747 = vmatpush.msra.mxu3 %v2891_v36 }
 0x2ee   :  { %v454_v3 = vpop.permute.xlu1 %453 }
 0x2ef   :  { %820 = vmatpush.msrb.mxu0 %v3431_v9  ;;  %v457_v5 = vmul.f32 %v3498_v30, %v454_v3  ;;  %974 = vmatpush.msrb.mxu3 %v3414_v7 }
 0x2f1   :  { %821 = vmatpush.msrb.mxu0 %v3452_v11  ;;  %v3624_v15 = vadd.f32 %v3504_v32, %v457_v5  ;;  %975 = vmatpush.msrb.mxu3 %v3419_v8 }
 0x2f2   :  { %2880 = vmatmul.msk.f32.gmra.mxu3 %vm60_vm0, %v3438_v10  ;;  %2886 = vmatmul.msk.f32.gmra.mxu0 %vm60_vm0, %v3438_v10 }
 0x2f3   :  { %976 = vmatpush.msrb.mxu3 %v3431_v9 }
 0x2f5   :  { %977 = vmatpush.msrb.mxu3 %v3452_v11 }
 0x2fa   :  { %2893 = vmatmul.msk.f32.vlgmr.msra.gmra.mxu3 %vm60_vm0, %v3403_v4 }
 0x302   :  { %2894 = vmatmul.msk.f32.gmra.mxu3 %vm60_vm0, %v3438_v10 }
 0x367   :  { %v3595_v57 = vpop.f32.mrf.mxu0 }
 0x368   :  { %2887 = vmatmul.msk.f32.vlgmr.msra.gmra.mxu1 %vm127_vm1, %v3595_v57 }
 0x36d   :  { %v3599_v58 = vpop.f32.mrf.mxu3 }
 0x36e   :  { %2881 = vmatmul.msk.f32.vlgmr.msrb.gmra.mxu2 %vm127_vm1, %v3599_v58 }
 0x36f   :  { %v3603_v61 = vpop.f32.mrf.mxu0 }
 0x370   :  { %2888 = vmatmul.msk.f32.gmra.mxu1 %vm127_vm1, %v3603_v61 }
 0x375   :  { %v3607_v62 = vpop.f32.mrf.mxu3 }
 0x376   :  { %2882 = vmatmul.msk.f32.gmra.mxu2 %vm127_vm1, %v3607_v62 }
 0x3e5   :  { %v639_v63 = vpop.f32.mrf.mxu1 }
 0x3e6   :  { %v640_v59 = vadd.f32 %v3485_v20, %v639_v63 }
 0x3e8   :  { %687 = vrot.lane.b32.xlu1 %v640_v59, %s3333_s13  ;;  %v645_v22 = vadd.f32 %v640_v59, %v3629_v21 }
 0x3ea   :  { %v2889_v24 = vmul.f32 -1.442695, %v645_v22 }
 0x3ed   :  { %v642_v0 = vpop.f32.mrf.mxu1 }
 0x3ee   :  { %v643_v19 = vadd.f32 %v3485_v20, %v642_v0 }
 0x3f0   :  { %689 = vrot.lane.b32.xlu0 %v643_v19, %s3333_s13  ;;  %v646_v45 = vadd.f32 %v643_v19, %v3634_v25 }
 0x3f1   :  { %v483_v17 = vpop.f32.mrf.mxu2 }
 0x3f2   :  { %v484_v1 = vadd.f32 %v3485_v20, %v483_v17  ;;  %v2890_v31 = vmul.f32 -1.442695, %v646_v45 }
 0x3f4   :  { %v489_v37 = vadd.f32 %v484_v1, %v3639_v33 }
 0x3f6   :  { %v2883_v40 = vmul.f32 -1.442695, %v489_v37 }
 0x3f8   :  { %531 = vrot.lane.b32.xlu0 %v484_v1, %s3333_s13 }
 0x3f9   :  { %v486_v2 = vpop.f32.mrf.mxu2 }
 0x3fa   :  { %v487_v44 = vadd.f32 %v3485_v20, %v486_v2 }
 0x3fc   :  { %533 = vrot.lane.b32.xlu2 %v487_v44, %s3333_s13  ;;  %v490_v34 = vadd.f32 %v487_v44, %v3624_v15 }
 0x3fe   :  { %v2884_v16 = vmul.f32 -1.442695, %v490_v34 }
 0x400   :  { %3119 = vpow2.f32 %v2884_v16 }
 0x401   :  { %3121 = vpow2.f32 %v2889_v24 }
 0x402   :  { %3123 = vpow2.f32 %v2890_v31 }
 0x406   :  { %v3120_v29 = vpop.eup %3119 }
 0x407   :  { %v498_v14 = vadd.f32 1.0, %v3120_v29  ;;  %v3122_v35 = vpop.eup %3121 }
 0x408   :  { %v653_v39 = vadd.f32 1.0, %v3122_v35  ;;  %v3124_v41 = vpop.eup %3123 }
 0x409   :  { %3125 = vrcp.f32 %v498_v14  ;;  %v654_v26 = vadd.f32 1.0, %v3124_v41  ;;  %vm519_vm4 = vweird.f32 %v498_v14  ;;  %v525_v54 = vand.u32 2147483648, %v498_v14 }
 0x40a   :  { %3127 = vrcp.f32 %v653_v39  ;;  %v523_v56 = vand.u32 2147483647, %v498_v14  ;;  %v666_v2 = vand.u32 2147483648, %v653_v39  ;;  %vm660_vm9 = vweird.f32 %v653_v39 }
 0x40b   :  { %3129 = vpow2.f32 %v2883_v40  ;;  %v526_v60 = vor.u32 1.1754944e-38, %v525_v54  ;;  %v664_v44 = vand.u32 2147483647, %v653_v39  ;;  %v681_v28 = vand.u32 2147483648, %v654_v26 }
 0x40c   :  { %3131 = vrcp.f32 %v654_v26  ;;  %vm524_vm8 = vcmp.eq.f32.partialorder %v523_v56, 8.507059e+37  ;;  %v667_v22 = vor.u32 1.1754944e-38, %v666_v2  ;;  %vm675_vm13 = vweird.f32 %v654_v26  ;;  %v749_v56 = vpop.f32.mrf.mxu3 }
 0x40d   :  { %vm665_vm11 = vcmp.eq.f32.partialorder %v664_v44, 8.507059e+37  ;;  %v679_v29 = vand.u32 2147483647, %v654_v26  ;;  %v682_v35 = vor.u32 1.1754944e-38, %v681_v28 }
 0x40f   :  { %v3126_v43 = vpop.eup %3125  ;;  %vm680_vm15 = vcmp.eq.f32.partialorder %v679_v29, 8.507059e+37 }
 0x410   :  { %v515_v46 = vmul.f32 %v3126_v43, %v498_v14  ;;  %v3128_v42 = vpop.eup %3127  ;;  %vm520_vm5 = vweird.f32 %v3126_v43 }
 0x411   :  { %v3130_v47 = vpop.eup %3129  ;;  %v656_v49 = vmul.f32 %v3128_v42, %v653_v39  ;;  %vm521_vm6 = vmor %vm519_vm4, %vm520_vm5  ;;  %vm661_vm7 = vweird.f32 %v3128_v42 }
 0x412   :  { %v516_v48 = vsub.f32 1.0, %v515_v46  ;;  %v497_v50 = vadd.f32 1.0, %v3130_v47  ;;  %v3132_v53 = vpop.eup %3131  ;;  %vm662_vm10 = vmor %vm660_vm9, %vm661_vm7 }
 0x413   :  { %v657_v52 = vsub.f32 1.0, %v656_v49  ;;  %v671_v59 = vmul.f32 %v3132_v53, %v654_v26  ;;  %vm676_vm12 = vweird.f32 %v3132_v53 }
 0x414   :  { %v517_v51 = vmul.f32 %v3126_v43, %v516_v48  ;;  %3133 = vrcp.f32 %v497_v50  ;;  %vm677_vm14 = vmor %vm675_vm13, %vm676_vm12  ;;  %vm504_vm2 = vweird.f32 %v497_v50  ;;  %v510_v39 = vand.u32 2147483648, %v497_v50 }
 0x415   :  { %v658_v63 = vmul.f32 %v3128_v42, %v657_v52  ;;  %v672_v17 = vsub.f32 1.0, %v671_v59 }
 0x416   :  { %v518_v55 = vadd.f32 %v3126_v43, %v517_v51  ;;  %v511_v26 = vor.u32 1.1754944e-38, %v510_v39 }
 0x417   :  { %v659_v19 = vadd.f32 %v3128_v42, %v658_v63  ;;  %v673_v34 = vmul.f32 %v3132_v53, %v672_v17  ;;  %v752_v63 = vpop.f32.mrf.mxu3 }
 0x418   :  { %v522_v0 = vsel %vm521_vm6, %v3126_v43, %v518_v55  ;;  %v508_v43 = vand.u32 2147483647, %v497_v50 }
 0x419   :  { %v3653_v5 = vsel %vm524_vm8, %v526_v60, %v522_v0  ;;  %v663_v18 = vsel %vm662_vm10, %v3128_v42, %v659_v19  ;;  %v674_v27 = vadd.f32 %v3132_v53, %v673_v34 }
 0x41a   :  { %v3134_v1 = vpop.eup %3133  ;;  %v3657_v16 = vsel %vm665_vm11, %v667_v22, %v663_v18  ;;  %vm509_vm5 = vcmp.eq.f32.partialorder %v508_v43, 8.507059e+37  ;;  %v552_v34 = vsub.f32 1.0, %v3653_v5 }
 0x41b   :  { %v500_v38 = vmul.f32 %v3134_v1, %v497_v50  ;;  %v678_v31 = vsel %vm677_vm14, %v3132_v53, %v674_v27  ;;  %vm505_vm3 = vweird.f32 %v3134_v1  ;;  %v707_v19 = vsub.f32 1.0, %v3657_v16 }
 0x41c   :  { %v683_v37 = vsel %vm680_vm15, %v682_v35, %v678_v31  ;;  %vm506_vm4 = vmor %vm504_vm2, %vm505_vm3 }
 0x41d   :  { %v501_v45 = vsub.f32 1.0, %v500_v38  ;;  %v708_v60 = vsub.f32 1.0, %v683_v37 }
 0x41f   :  { %v502_v14 = vmul.f32 %v3134_v1, %v501_v45 }
 0x421   :  { %v503_v41 = vadd.f32 %v3134_v1, %v502_v14 }
 0x423   :  { %v507_v46 = vsel %vm506_vm4, %v3134_v1, %v503_v41 }
 0x424   :  { %v512_v47 = vsel %vm509_vm5, %v511_v26, %v507_v46 }
 0x456   :  { %v534_v3 = vpop.permute.xlu2 %533 }
 0x457   :  { %v538_v6 = vmul.f32 %v534_v3, %v3653_v5 }
 0x459   :  { %543 = vrot.lane.b32.xlu0 %v538_v6, %s3333_s13 }
 0x45a   :  { %v688_v23 = vpop.permute.xlu1 %687 }
 0x45b   :  { %v693_v24 = vmul.f32 %v688_v23, %v3657_v16 }
 0x45d   :  { %697 = vrot.lane.b32.xlu2 %v693_v24, %s3333_s13  ;;  %v551_v24 = vsub.f32 1.0, %v512_v47 }
 0x461   :  { %721 = vrot.lane.b32.xlu0 %v3603_v61, %s3334_s18 }
 0x462   :  { %v690_v36 = vpop.permute.xlu0 %689 }
 0x463   :  { %v694_v40 = vmul.f32 %v690_v36, %v683_v37 }
 0x465   :  { %699 = vrot.lane.b32.xlu1 %v694_v40, %s3333_s13 }
 0x46a   :  { %v532_v42 = vpop.permute.xlu0 %531 }
 0x46b   :  { %v537_v48 = vmul.f32 %v532_v42, %v512_v47 }
 0x46d   :  { %541 = vrot.lane.b32.xlu1 %v537_v48, %s3333_s13 }
 0x4b7   :  { %v698_v61 = vpop.permute.xlu2 %697 }
 0x4b8   :  { %v703_v49 = vadd.f32 %v698_v61, %v3629_v21 }
 0x4ba   :  { %3135 = vtanh.f32 %v703_v49 }
 0x4c0   :  { %v3136_v51 = vpop.eup %3135 }
 0x4c1   :  { %711 = vrot.lane.b32.xlu1 %v3136_v51, %s3335_s23 }
 0x4c9   :  { %565 = vrot.lane.b32.xlu1 %v3607_v62, %s3334_s18 }
 0x4cb   :  { %v544_v50 = vpop.permute.xlu0 %543 }
 0x4cc   :  { %v548_v52 = vadd.f32 %v544_v50, %v3624_v15 }
 0x4ce   :  { %3137 = vtanh.f32 %v548_v52 }
 0x4d3   :  { %v722_v59 = vpop.permute.xlu0 %721 }
 0x4d4   :  { %v3138_v53 = vpop.eup %3137  ;;  %v726_v1 = vmul.f32 %v722_v59, %v683_v37  ;;  %v3742_v59 = vld [vmem:[%s4417_s0] sm:$0xff] }
 0x4d5   :  { %557 = vrot.lane.b32.xlu0 %v3138_v53, %s3335_s23 }
 0x4d7   :  { %v700_v54 = vpop.permute.xlu1 %699 }
 0x4d8   :  { %v704_v55 = vadd.f32 %v700_v54, %v3634_v25 }
 0x4da   :  { %3139 = vtanh.f32 %v704_v55 }
 0x4dd   :  { %563 = vrot.lane.b32.xlu0 %v3599_v58, %s3334_s18 }
 0x4df   :  { %v542_v62 = vpop.permute.xlu1 %541 }
 0x4e0   :  { %v3140_v21 = vpop.eup %3139  ;;  %v547_v15 = vadd.f32 %v542_v62, %v3639_v33 }
 0x4e1   :  { %713 = vrot.lane.b32.xlu2 %v3140_v21, %s3335_s23 }
 0x4e2   :  { %3141 = vtanh.f32 %v547_v15 }
 0x4e5   :  { %949 = vperm.xlu0 %3001, %v752_v63  }
 0x4e8   :  { %v3142_v25 = vpop.eup %3141 }
 0x4e9   :  { %719 = vrot.lane.b32.xlu2 %v3595_v57, %s3334_s18 }
 0x4ed   :  { %3028 = vset.pattern.permute.xlu0 %v3331_v12 }
 0x4ee   :  { %788 = vperm.xlu0 %3028, %v749_v56  }
 0x4f1   :  { %555 = vrot.lane.b32.xlu2 %v3142_v25, %s3335_s23 }
 0x4f6   :  { %3039 = vset.pattern.permute.xlu0 %v3332_v13 }
 0x533   :  { %v712_v0 = vpop.permute.xlu1 %711 }
 0x534   :  { %v717_v2 = vmul.f32 %v712_v0, %v707_v19  ;;  %v3750_v19 = vld [vmem:[%s4421_s4 + $0x18] sm:$0xff] }
 0x53b   :  { %v714_v58 = vpop.permute.xlu2 %713  ;;  %v566_v38 = vpop.permute.xlu1 %565 }
 0x53c   :  { %v718_v17 = vmul.f32 %v714_v58, %v708_v60  ;;  %v570_v45 = vmul.f32 %v566_v38, %v3653_v5 }
 0x53e   :  { %v728_v44 = vadd.f32 %v726_v1, %v718_v17 }
 0x543   :  { %v720_v33 = vpop.permute.xlu2 %719 }
 0x544   :  { %v725_v57 = vmul.f32 %v720_v33, %v3657_v16  ;;  %v3757_v33 = vld [vmem:[%s4421_s4 + $0x10] sm:$0xff] }
 0x546   :  { %v727_v3 = vadd.f32 %v725_v57, %v717_v2 }
 0x547   :  { %v558_v6 = vpop.permute.xlu0 %557 }
 0x548   :  { %v3017_v18 = vpack.i.bf16 %v727_v3, %v728_v44  ;;  %v562_v23 = vmul.f32 %v558_v6, %v552_v34 }
 0x54a   :  { %3018 = vrot.lane.b32.xlu1 %v3017_v18, %s3335_s23  ;;  %v572_v31 = vadd.f32 %v570_v45, %v562_v23  ;;  %v3772_v18 = vld [vmem:[%s4417_s0 + $0x8] sm:$0xff] }
 0x54b   :  { %v556_v22 = vpop.permute.xlu2 %555 }
 0x54c   :  { %v561_v28 = vmul.f32 %v556_v22, %v551_v24 }
 0x54f   :  { %v564_v27 = vpop.permute.xlu0 %563 }
 0x550   :  { %v569_v29 = vmul.f32 %v564_v27, %v512_v47 }
 0x552   :  { %v571_v14 = vadd.f32 %v569_v29, %v561_v28  ;;  %945 = vperm.xlu1 %3027, %v749_v56  }
 0x554   :  { %v3022_v16 = vpack.i.bf16 %v571_v14, %v572_v31 }
 0x556   :  { %3023 = vrot.lane.b32.xlu2 %v3022_v16, %s3335_s23 }
 0x557   :  { %v950_v56 = vpop.permute.xlu0 %949 }
 0x558   :  { %v953_v21 = vmul.f32 %v3498_v30, %v950_v56 }
 0x55a   :  { %3040 = vset.pattern.permute.xlu1 %v3331_v12  ;;  %v3737_v25 = vadd.f32 %v3504_v32, %v953_v21 }
 0x55e   :  { %793 = vperm.xlu2 %3016, %v752_v63   ;;  %v2907_v63 = vld [vmem:[%s4418_s1 + $0x30] sm:$0xff] }
 0x560   :  { %v789_v15 = vpop.permute.xlu0 %788 }
 0x561   :  { %v796_v0 = vmul.f32 %v3498_v30, %v789_v15 }
 0x563   :  { %v3762_v57 = vadd.f32 %v3504_v32, %v796_v0 }
 0x5b0   :  { %v3024_v35 = vpop.permute.xlu2 %3023 }
 0x5b1   :  { %v3025_v36 = vunpack.i.l.bf16 %v3024_v35  ;;  %v3026_v37 = vunpack.i.h.bf16 %v3024_v35 }
 0x5b3   :  { %777 = vmatpush.msra.mxu2 %v3025_v36 }
 0x5b5   :  { %778 = vmatpush.msra.mxu2 %v3026_v37 }
 0x5b6   :  { %2895 = vmatmul.msk.f32.vlgmr.msra.gmra.mxu2 %vm60_vm0, %v3403_v4 }
 0x5b8   :  { %v794_v60 = vpop.permute.xlu2 %793 }
 0x5b9   :  { %v797_v1 = vmul.f32 %v3498_v30, %v794_v60 }
 0x5bb   :  { %v3767_v3 = vadd.f32 %v3504_v32, %v797_v1 }
 0x5bc   :  { %v3019_v5 = vpop.permute.xlu1 %3018 }
 0x5bd   :  { %v3020_v39 = vunpack.i.l.bf16 %v3019_v5  ;;  %v3021_v40 = vunpack.i.h.bf16 %v3019_v5 }
 0x5be   :  { %2896 = vmatmul.msk.f32.gmra.mxu2 %vm60_vm0, %v3438_v10 }
 0x5bf   :  { %935 = vmatpush.msrb.mxu1 %v3020_v39 }
 0x5c1   :  { %936 = vmatpush.msrb.mxu1 %v3021_v40 }
 0x5c2   :  { %2901 = vmatmul.msk.f32.vlgmr.msrb.gmra.mxu1 %vm60_vm0, %v3403_v4 }
 0x5c3   :  { %1158 = vmatpush.msra.mxu1 %v3414_v7 }
 0x5c4   :  { %v946_v49 = vpop.permute.xlu1 %945 }
 0x5c5   :  { %1159 = vmatpush.msra.mxu1 %v3419_v8  ;;  %v952_v51 = vmul.f32 %v3498_v30, %v946_v49 }
 0x5c7   :  { %1160 = vmatpush.msra.mxu1 %v3431_v9  ;;  %v3726_v50 = vadd.f32 %v3504_v32, %v952_v51 }
 0x5c9   :  { %1161 = vmatpush.msra.mxu1 %v3452_v11 }
 0x5ca   :  { %2902 = vmatmul.msk.f32.gmra.mxu1 %vm60_vm0, %v3438_v10 }
 0x639   :  { %v3700_v41 = vpop.f32.mrf.mxu2 }
 0x63a   :  { %2897 = vmatmul.msk.f32.vlgmr.msrb.gmra.mxu0 %vm127_vm1, %v3700_v41 }
 0x63f   :  { %v3704_v43 = vpop.f32.mrf.mxu1 }
 0x640   :  { %2903 = vmatmul.msk.f32.vlgmr.msrb.gmra.mxu3 %vm127_vm1, %v3704_v43 }
 0x641   :  { %v3708_v4 = vpop.f32.mrf.mxu2 }
 0x642   :  { %2898 = vmatmul.msk.f32.gmra.mxu0 %vm127_vm1, %v3708_v4 }
 0x647   :  { %v3712_v7 = vpop.f32.mrf.mxu1 }
 0x648   :  { %2904 = vmatmul.msk.f32.gmra.mxu3 %vm127_vm1, %v3712_v7 }
 0x6b7   :  { %v823_v26 = vpop.f32.mrf.mxu0 }
 0x6b8   :  { %v824_v46 = vadd.f32 %v3485_v20, %v823_v26 }
 0x6ba   :  { %v829_v30 = vadd.f32 %v824_v46, %v3762_v57 }
 0x6bf   :  { %v826_v48 = vpop.f32.mrf.mxu0 }
 0x6c0   :  { %v827_v61 = vadd.f32 %v3485_v20, %v826_v48 }
 0x6c2   :  { %v830_v34 = vadd.f32 %v827_v61, %v3767_v3 }
 0x6c3   :  { %v979_v8 = vpop.f32.mrf.mxu3 }
 0x6c4   :  { %v980_v10 = vadd.f32 %v3485_v20, %v979_v8  ;;  %v2900_v32 = vmul.f32 -1.442695, %v830_v34 }
 0x6c6   :  { %1027 = vrot.lane.b32.xlu2 %v980_v10, %s3333_s13  ;;  %v985_v52 = vadd.f32 %v980_v10, %v3726_v50 }
 0x6c8   :  { %v2905_v53 = vmul.f32 -1.442695, %v985_v52 }
 0x6ca   :  { %3143 = vpow2.f32 %v2905_v53 }
 0x6cb   :  { %v982_v42 = vpop.f32.mrf.mxu3 }
 0x6cc   :  { %v983_v47 = vadd.f32 %v3485_v20, %v982_v42  ;;  %v2908_v20 = vld [vmem:[%s4418_s1 + $0x38] sm:$0xff] }
 0x6cd   :  { %1086 = vmatpush.msrb.mxu2 %v2908_v20 }
 0x6ce   :  { %1029 = vrot.lane.b32.xlu1 %v983_v47, %s3333_s13  ;;  %871 = vrot.lane.b32.xlu2 %v824_v46, %s3333_s13  ;;  %v986_v17 = vadd.f32 %v983_v47, %v3737_v25 }
 0x6cf   :  { %1087 = vmatpush.msrb.mxu2 %v2907_v63 }
 0x6d0   :  { %v3144_v54 = vpop.eup %3143  ;;  %2909 = vmatmul.msk.f32.vlgmr.msrb.gmra.mxu2 %vm60_vm0, %v3742_v59  ;;  %v2906_v44 = vmul.f32 -1.442695, %v986_v17 }
 0x6d1   :  { %v993_v55 = vadd.f32 1.0, %v3144_v54  ;;  %1314 = vmatpush.msra.mxu2 %v3750_v19 }
 0x6d3   :  { %3145 = vrcp.f32 %v993_v55  ;;  %1315 = vmatpush.msra.mxu2 %v3757_v33  ;;  %v1006_v38 = vand.u32 2147483648, %v993_v55  ;;  %vm1000_vm7 = vweird.f32 %v993_v55  ;;  %v1004_v22 = vand.u32 2147483647, %v993_v55 }
 0x6d4   :  { %3147 = vpow2.f32 %v2906_v44 }
 0x6d5   :  { %1316 = vmatpush.msra.mxu2 %v3431_v9  ;;  %v1007_v27 = vor.u32 1.1754944e-38, %v1006_v38  ;;  %vm1005_vm9 = vcmp.eq.f32.partialorder %v1004_v22, 8.507059e+37 }
 0x6d6   :  { %873 = vrot.lane.b32.xlu1 %v827_v61, %s3333_s13 }
 0x6d7   :  { %1317 = vmatpush.msra.mxu2 %v3452_v11  ;;  %v2899_v11 = vmul.f32 -1.442695, %v829_v30 }
 0x6d8   :  { %2910 = vmatmul.msk.f32.gmra.mxu2 %vm60_vm0, %v3772_v18 }
 0x6d9   :  { %v3146_v62 = vpop.eup %3145  ;;  %3149 = vpow2.f32 %v2899_v11 }
 0x6da   :  { %v996_v58 = vmul.f32 %v3146_v62, %v993_v55  ;;  %vm1001_vm6 = vweird.f32 %v3146_v62  ;;  %v3148_v23 = vpop.eup %3147  ;;  %3151 = vpow2.f32 %v2900_v32 }
 0x6db   :  { %vm1002_vm8 = vmor %vm1000_vm7, %vm1001_vm6  ;;  %v994_v45 = vadd.f32 1.0, %v3148_v23 }
 0x6dc   :  { %v997_v2 = vsub.f32 1.0, %v996_v58 }
 0x6dd   :  { %3153 = vrcp.f32 %v994_v45  ;;  %v1021_v61 = vand.u32 2147483648, %v994_v45  ;;  %vm1015_vm11 = vweird.f32 %v994_v45  ;;  %v1019_v49 = vand.u32 2147483647, %v994_v45 }
 0x6de   :  { %v998_v6 = vmul.f32 %v3146_v62, %v997_v2 }
 0x6df   :  { %v3150_v14 = vpop.eup %3149  ;;  %v1022_v54 = vor.u32 1.1754944e-38, %v1021_v61  ;;  %vm1020_vm15 = vcmp.eq.f32.partialorder %v1019_v49, 8.507059e+37 }
 0x6e0   :  { %v999_v9 = vadd.f32 %v3146_v62, %v998_v6  ;;  %v3152_v16 = vpop.eup %3151  ;;  %v837_v35 = vadd.f32 1.0, %v3150_v14 }
 0x6e1   :  { %v838_v36 = vadd.f32 1.0, %v3152_v16 }
 0x6e2   :  { %v1003_v24 = vsel %vm1002_vm8, %v3146_v62, %v999_v9  ;;  %3155 = vrcp.f32 %v837_v35  ;;  %vm844_vm13 = vweird.f32 %v837_v35  ;;  %v850_v55 = vand.u32 2147483648, %v837_v35 }
 0x6e3   :  { %v3778_v28 = vsel %vm1005_vm9, %v1007_v27, %v1003_v24  ;;  %v3154_v37 = vpop.eup %3153  ;;  %3157 = vrcp.f32 %v838_v36  ;;  %v848_v63 = vand.u32 2147483647, %v837_v35  ;;  %v865_v58 = vand.u32 2147483648, %v838_v36 }
 0x6e4   :  { %v1011_v5 = vmul.f32 %v3154_v37, %v994_v45  ;;  %vm1016_vm10 = vweird.f32 %v3154_v37  ;;  %vm859_vm4 = vweird.f32 %v838_v36  ;;  %v863_v60 = vand.u32 2147483647, %v838_v36 }
 0x6e5   :  { %vm1017_vm12 = vmor %vm1015_vm11, %vm1016_vm10  ;;  %v851_v0 = vor.u32 1.1754944e-38, %v850_v55  ;;  %vm849_vm6 = vcmp.eq.f32.partialorder %v848_v63, 8.507059e+37  ;;  %v866_v44 = vor.u32 1.1754944e-38, %v865_v58  ;;  %v3819_v58 = vld [vmem:[%s4421_s4 + $0x8] sm:$0xff] }
 0x6e6   :  { %v1012_v40 = vsub.f32 1.0, %v1011_v5  ;;  %vm864_vm7 = vcmp.eq.f32.partialorder %v863_v60, 8.507059e+37  ;;  %v3825_v60 = vld [vmem:[%s4421_s4] sm:$0xff] }
 0x6e8   :  { %v3156_v39 = vpop.eup %3155  ;;  %v1013_v26 = vmul.f32 %v3154_v37, %v1012_v40 }
 0x6e9   :  { %v3158_v8 = vpop.eup %3157  ;;  %v840_v10 = vmul.f32 %v3156_v39, %v837_v35  ;;  %vm845_vm14 = vweird.f32 %v3156_v39 }
 0x6ea   :  { %v855_v46 = vmul.f32 %v3158_v8, %v838_v36  ;;  %v1014_v47 = vadd.f32 %v3154_v37, %v1013_v26  ;;  %vm860_vm2 = vweird.f32 %v3158_v8  ;;  %vm846_vm3 = vmor %vm844_vm13, %vm845_vm14 }
 0x6eb   :  { %v841_v42 = vsub.f32 1.0, %v840_v10  ;;  %vm861_vm5 = vmor %vm859_vm4, %vm860_vm2 }
 0x6ec   :  { %v856_v48 = vsub.f32 1.0, %v855_v46  ;;  %v1018_v52 = vsel %vm1017_vm12, %v3154_v37, %v1014_v47  ;;  %v1047_v37 = vsub.f32 1.0, %v3778_v28 }
 0x6ed   :  { %v842_v51 = vmul.f32 %v3156_v39, %v841_v42  ;;  %v3782_v21 = vsel %vm1020_vm15, %v1022_v54, %v1018_v52 }
 0x6ee   :  { %v857_v53 = vmul.f32 %v3158_v8, %v856_v48  ;;  %v1048_v36 = vsub.f32 1.0, %v3782_v21 }
 0x6ef   :  { %v843_v20 = vadd.f32 %v3156_v39, %v842_v51 }
 0x6f0   :  { %v858_v15 = vadd.f32 %v3158_v8, %v857_v53 }
 0x6f1   :  { %v847_v17 = vsel %vm846_vm3, %v3156_v39, %v843_v20 }
 0x6f2   :  { %v862_v1 = vsel %vm861_vm5, %v3158_v8, %v858_v15  ;;  %v852_v6 = vsel %vm849_vm6, %v851_v0, %v847_v17 }
 0x6f3   :  { %v867_v34 = vsel %vm864_vm7, %v866_v44, %v862_v1  ;;  %v891_v61 = vsub.f32 1.0, %v852_v6 }
 0x6f4   :  { %v892_v47 = vsub.f32 1.0, %v867_v34 }
 0x720   :  { %v1028_v29 = vpop.permute.xlu2 %1027 }
 0x721   :  { %v1033_v31 = vmul.f32 %v1028_v29, %v3778_v28 }
 0x723   :  { %1037 = vrot.lane.b32.xlu1 %v1033_v31, %s3333_s13 }
 0x728   :  { %v872_v2 = vpop.permute.xlu2 %871 }
 0x729   :  { %v877_v9 = vmul.f32 %v872_v2, %v852_v6 }
 0x740   :  { %v1030_v56 = vpop.permute.xlu1 %1029 }
 0x741   :  { %v1034_v62 = vmul.f32 %v1030_v56, %v3782_v21 }
 0x743   :  { %1039 = vrot.lane.b32.xlu0 %v1034_v62, %s3333_s13 }
 0x748   :  { %v874_v30 = vpop.permute.xlu1 %873 }
 0x749   :  { %v878_v11 = vmul.f32 %v874_v30, %v867_v34 }
 0x74b   :  { %883 = vrot.lane.b32.xlu2 %v878_v11, %s3333_s13  ;;  %881 = vrot.lane.b32.xlu0 %v877_v9, %s3333_s13 }
 0x753   :  { %1061 = vrot.lane.b32.xlu2 %v3712_v7, %s3334_s18  ;;  %v1089_v45 = vpop.f32.mrf.mxu2 }
 0x795   :  { %v1038_v38 = vpop.permute.xlu1 %1037 }
 0x796   :  { %v1043_v32 = vadd.f32 %v1038_v38, %v3726_v50  ;;  %v1092_v50 = vpop.f32.mrf.mxu2 }
 0x798   :  { %3159 = vtanh.f32 %v1043_v32 }
 0x79e   :  { %v3160_v22 = vpop.eup %3159 }
 0x79f   :  { %1051 = vrot.lane.b32.xlu0 %v3160_v22, %s3335_s23 }
 0x7a5   :  { %v884_v23 = vpop.permute.xlu2 %883 }
 0x7a6   :  { %v888_v24 = vadd.f32 %v884_v23, %v3767_v3 }
 0x7a7   :  { %905 = vrot.lane.b32.xlu0 %v3708_v4, %s3334_s18 }
 0x7a8   :  { %3161 = vtanh.f32 %v888_v24  ;;  %v3866_v24 = vld [vmem:[%s4420_s3] ss:$0 sm:$0xff] }
 0x7ae   :  { %v3162_v27 = vpop.eup %3161 }
 0x7af   :  { %897 = vrot.lane.b32.xlu2 %v3162_v27, %s3335_s23 }
 0x7b5   :  { %v1040_v29 = vpop.permute.xlu0 %1039 }
 0x7b6   :  { %v1044_v7 = vadd.f32 %v1040_v29, %v3737_v25 }
 0x7b7   :  { %903 = vrot.lane.b32.xlu2 %v3700_v41, %s3334_s18  ;;  %v1062_v41 = vpop.permute.xlu2 %1061 }
 0x7b8   :  { %3163 = vtanh.f32 %v1044_v7  ;;  %v1066_v39 = vmul.f32 %v1062_v41, %v3782_v21 }
 0x7bd   :  { %v882_v3 = vpop.permute.xlu0 %881 }
 0x7be   :  { %v3164_v31 = vpop.eup %3163  ;;  %v887_v4 = vadd.f32 %v882_v3, %v3762_v57 }
 0x7bf   :  { %1133 = vperm.xlu2 %3016, %v1092_v50   ;;  %1053 = vrot.lane.b32.xlu1 %v3164_v31, %s3335_s23 }
 0x7c0   :  { %3165 = vtanh.f32 %v887_v4 }
 0x7c6   :  { %v3166_v25 = vpop.eup %3165 }
 0x7c7   :  { %1059 = vrot.lane.b32.xlu1 %v3704_v43, %s3334_s18  ;;  %3041 = vset.pattern.permute.xlu2 %v3332_v13 }
 0x7c8   :  { %1285 = vperm.xlu2 %3041, %v1089_v45  }
 0x7cf   :  { %895 = vrot.lane.b32.xlu1 %v3166_v25, %s3335_s23 }
 0x809   :  { %v898_v35 = vpop.permute.xlu2 %897 }
 0x80a   :  { %v902_v51 = vmul.f32 %v898_v35, %v892_v47 }
 0x811   :  { %v1052_v16 = vpop.permute.xlu0 %1051  ;;  %v904_v42 = vpop.permute.xlu2 %903 }
 0x812   :  { %v1057_v43 = vmul.f32 %v1052_v16, %v1047_v37  ;;  %v909_v52 = vmul.f32 %v904_v42, %v852_v6  ;;  %v3853_v6 = vld [vmem:[%s4423_s6] ss:$0 sm:$0xff] }
 0x819   :  { %v906_v26 = vpop.permute.xlu0 %905  ;;  %v1134_v25 = vpop.permute.xlu2 %1133 }
 0x81a   :  { %v910_v48 = vmul.f32 %v906_v26, %v867_v34  ;;  %v1137_v16 = vmul.f32 %v3866_v24, %v1134_v25 }
 0x81c   :  { %v912_v54 = vadd.f32 %v910_v48, %v902_v51  ;;  %v2924_v48 = vld [vmem:[%s4418_s1 + $0x48] sm:$0xff] }
 0x831   :  { %v1054_v14 = vpop.permute.xlu1 %1053 }
 0x832   :  { %v1058_v5 = vmul.f32 %v1054_v14, %v1048_v36  ;;  %v1286_v36 = vpop.permute.xlu2 %1285 }
 0x834   :  { %v1068_v8 = vadd.f32 %v1066_v39, %v1058_v5  ;;  %v1292_v39 = vmul.f32 %v3866_v24, %v1286_v36 }
 0x839   :  { %v1060_v57 = vpop.permute.xlu1 %1059 }
 0x83a   :  { %v1065_v40 = vmul.f32 %v1060_v57, %v3778_v28 }
 0x83c   :  { %v1067_v10 = vadd.f32 %v1065_v40, %v1057_v43 }
 0x83e   :  { %v3029_v46 = vpack.i.bf16 %v1067_v10, %v1068_v8 }
 0x840   :  { %3030 = vrot.lane.b32.xlu0 %v3029_v46, %s3335_s23 }
 0x841   :  { %v896_v49 = vpop.permute.xlu1 %895 }
 0x842   :  { %v901_v53 = vmul.f32 %v896_v49, %v891_v61  ;;  %v2923_v61 = vld [vmem:[%s4418_s1 + $0x40] sm:$0xff] }
 0x844   :  { %v911_v55 = vadd.f32 %v909_v52, %v901_v53 }
 0x846   :  { %v3034_v56 = vpack.i.bf16 %v911_v55, %v912_v54 }
 0x848   :  { %3035 = vrot.lane.b32.xlu1 %v3034_v56, %s3335_s23  ;;  %1289 = vperm.xlu0 %3039, %v1092_v50  }
 0x850   :  { %1128 = vperm.xlu1 %3040, %v1089_v45   ;;  %3052 = vset.pattern.permute.xlu0 %v3331_v12  ;;  %v3872_v45 = vld [vmem:[%s4422_s5] ss:$0 sm:$0xff] }
 0x851   :  { %v3885_v5 = vadd.f32 %v3872_v45, %v1137_v16  ;;  %v3890_v40 = vadd.f32 %v3872_v45, %v1292_v39 }
 0x8b2   :  { %v3031_v28 = vpop.permute.xlu0 %3030 }
 0x8b3   :  { %v3032_v21 = vunpack.i.l.bf16 %v3031_v28  ;;  %v3033_v20 = vunpack.i.h.bf16 %v3031_v28 }
 0x8b5   :  { %1275 = vmatpush.msra.mxu3 %v3032_v21 }
 0x8b7   :  { %1276 = vmatpush.msra.mxu3 %v3033_v20 }
 0x8b8   :  { %2917 = vmatmul.msk.f32.vlgmr.msra.gmra.mxu3 %vm60_vm0, %v3742_v59 }
 0x8b9   :  { %1498 = vmatpush.msrb.mxu3 %v3750_v19 }
 0x8ba   :  { %v3036_v63 = vpop.permute.xlu1 %3035  ;;  %v1290_v23 = vpop.permute.xlu0 %1289 }
 0x8bb   :  { %v3037_v62 = vunpack.i.l.bf16 %v3036_v63  ;;  %1499 = vmatpush.msrb.mxu3 %v3757_v33  ;;  %v3038_v15 = vunpack.i.h.bf16 %v3036_v63  ;;  %v1293_v27 = vmul.f32 %v3866_v24, %v1290_v23 }
 0x8bd   :  { %1117 = vmatpush.msra.mxu0 %v3037_v62  ;;  %1500 = vmatpush.msrb.mxu3 %v3819_v58  ;;  %v3875_v29 = vadd.f32 %v3872_v45, %v1293_v27 }
 0x8bf   :  { %1118 = vmatpush.msra.mxu0 %v3038_v15  ;;  %1501 = vmatpush.msrb.mxu3 %v3825_v60 }
 0x8c0   :  { %2911 = vmatmul.msk.f32.vlgmr.msra.gmra.mxu0 %vm60_vm0, %v3742_v59  ;;  %2918 = vmatmul.msk.f32.gmra.mxu3 %vm60_vm0, %v3772_v18 }
 0x8c1   :  { %1426 = vmatpush.msrb.mxu0 %v2924_v48 }
 0x8c2   :  { %v1129_v50 = vpop.permute.xlu1 %1128 }
 0x8c3   :  { %v1136_v31 = vmul.f32 %v3866_v24, %v1129_v50  ;;  %1427 = vmatpush.msrb.mxu0 %v2923_v61 }
 0x8c5   :  { %v3880_v4 = vadd.f32 %v3872_v45, %v1136_v31  ;;  %1654 = vmatpush.msra.mxu0 %v3750_v19 }
 0x8c7   :  { %1655 = vmatpush.msra.mxu0 %v3757_v33 }
 0x8c8   :  { %2912 = vmatmul.msk.f32.gmra.mxu0 %vm60_vm0, %v3772_v18 }
 0x8c9   :  { %1656 = vmatpush.msra.mxu0 %v3819_v58 }
 0x8cb   :  { %1657 = vmatpush.msra.mxu0 %v3825_v60 }
 0x8d0   :  { %2925 = vmatmul.msk.f32.vlgmr.msrb.gmra.mxu0 %vm60_vm0, %v3742_v59 }
 0x8d8   :  { %2926 = vmatmul.msk.f32.gmra.mxu0 %vm60_vm0, %v3772_v18 }
 0x93b   :  { %v3834_v0 = vpop.f32.mrf.mxu3 }
 0x93c   :  { %2919 = vmatmul.msk.f32.vlgmr.msra.gmra.mxu2 %vm127_vm1, %v3834_v0 }
 0x93d   :  { %v3838_v17 = vpop.f32.mrf.mxu0 }
 0x93e   :  { %2913 = vmatmul.msk.f32.vlgmr.msra.gmra.mxu1 %vm127_vm1, %v3838_v17 }
 0x943   :  { %v3842_v1 = vpop.f32.mrf.mxu3 }
 0x944   :  { %2920 = vmatmul.msk.f32.gmra.mxu2 %vm127_vm1, %v3842_v1 }
 0x945   :  { %v3846_v2 = vpop.f32.mrf.mxu0 }
 0x946   :  { %2914 = vmatmul.msk.f32.gmra.mxu1 %vm127_vm1, %v3846_v2 }
 0x9bb   :  { %v1163_v44 = vpop.f32.mrf.mxu1 }
 0x9bc   :  { %v1164_v30 = vadd.f32 %v3853_v6, %v1163_v44 }
 0x9be   :  { %1211 = vrot.lane.b32.xlu0 %v1164_v30, %s3333_s13  ;;  %v1169_v41 = vadd.f32 %v1164_v30, %v3880_v4 }
 0x9bf   :  { %v1319_v34 = vpop.f32.mrf.mxu2 }
 0x9c0   :  { %v1320_v22 = vadd.f32 %v3853_v6, %v1319_v34  ;;  %v2915_v35 = vmul.f32 -1.442695, %v1169_v41 }
 0x9c2   :  { %v1325_v26 = vadd.f32 %v1320_v22, %v3890_v40 }
 0x9c3   :  { %v1166_v9 = vpop.f32.mrf.mxu1 }
 0x9c4   :  { %v1167_v11 = vadd.f32 %v3853_v6, %v1166_v9  ;;  %v2921_v47 = vmul.f32 -1.442695, %v1325_v26 }
 0x9c6   :  { %1213 = vrot.lane.b32.xlu1 %v1167_v11, %s3333_s13  ;;  %v1170_v57 = vadd.f32 %v1167_v11, %v3885_v5 }
 0x9c7   :  { %v1322_v38 = vpop.f32.mrf.mxu2 }
 0x9c8   :  { %v1323_v32 = vadd.f32 %v3853_v6, %v1322_v38  ;;  %v2916_v43 = vmul.f32 -1.442695, %v1170_v57 }
 0x9ca   :  { %1369 = vrot.lane.b32.xlu2 %v1323_v32, %s3333_s13  ;;  %v1326_v7 = vadd.f32 %v1323_v32, %v3875_v29 }
 0x9cc   :  { %v2922_v3 = vmul.f32 -1.442695, %v1326_v7 }
 0x9ce   :  { %1367 = vrot.lane.b32.xlu1 %v1320_v22, %s3333_s13  ;;  %3167 = vpow2.f32 %v2922_v3 }
 0x9cf   :  { %3169 = vpow2.f32 %v2915_v35 }
 0x9d4   :  { %v3168_v14 = vpop.eup %3167 }
 0x9d5   :  { %v1334_v37 = vadd.f32 1.0, %v3168_v14  ;;  %v3170_v8 = vpop.eup %3169 }
 0x9d6   :  { %v1177_v46 = vadd.f32 1.0, %v3170_v8 }
 0x9d7   :  { %3171 = vrcp.f32 %v1334_v37  ;;  %vm1355_vm8 = vweird.f32 %v1334_v37  ;;  %v1361_v55 = vand.u32 2147483648, %v1334_v37  ;;  %v1359_v21 = vand.u32 2147483647, %v1334_v37 }
 0x9d8   :  { %3173 = vpow2.f32 %v2916_v43  ;;  %v1190_v7 = vand.u32 2147483648, %v1177_v46  ;;  %vm1184_vm13 = vweird.f32 %v1177_v46  ;;  %v1188_v50 = vand.u32 2147483647, %v1177_v46 }
 0x9d9   :  { %3175 = vrcp.f32 %v1177_v46  ;;  %v1362_v62 = vor.u32 1.1754944e-38, %v1361_v55  ;;  %vm1360_vm11 = vcmp.eq.f32.partialorder %v1359_v21, 8.507059e+37 }
 0x9da   :  { %3177 = vpow2.f32 %v2921_v47  ;;  %v1191_v41 = vor.u32 1.1754944e-38, %v1190_v7  ;;  %vm1189_vm15 = vcmp.eq.f32.partialorder %v1188_v50, 8.507059e+37 }
 0x9dd   :  { %v3172_v10 = vpop.eup %3171 }
 0x9de   :  { %v1351_v42 = vmul.f32 %v3172_v10, %v1334_v37  ;;  %v3174_v49 = vpop.eup %3173  ;;  %vm1356_vm9 = vweird.f32 %v3172_v10 }
 0x9df   :  { %v1178_v52 = vadd.f32 1.0, %v3174_v49  ;;  %v3176_v54 = vpop.eup %3175  ;;  %vm1357_vm10 = vmor %vm1355_vm8, %vm1356_vm9 }
 0x9e0   :  { %v1352_v51 = vsub.f32 1.0, %v1351_v42  ;;  %v3178_v56 = vpop.eup %3177  ;;  %v1180_v20 = vmul.f32 %v3176_v54, %v1177_v46  ;;  %vm1185_vm12 = vweird.f32 %v3176_v54 }
 0x9e1   :  { %3179 = vrcp.f32 %v1178_v52  ;;  %v1333_v63 = vadd.f32 1.0, %v3178_v56  ;;  %vm1186_vm14 = vmor %vm1184_vm13, %vm1185_vm12  ;;  %v1205_v57 = vand.u32 2147483648, %v1178_v52  ;;  %vm1199_vm3 = vweird.f32 %v1178_v52 }
 0x9e2   :  { %v1353_v53 = vmul.f32 %v3172_v10, %v1352_v51  ;;  %v1181_v44 = vsub.f32 1.0, %v1180_v20  ;;  %v1203_v39 = vand.u32 2147483647, %v1178_v52 }
 0x9e3   :  { %3181 = vrcp.f32 %v1333_v63  ;;  %vm1340_vm6 = vweird.f32 %v1333_v63  ;;  %v1346_v46 = vand.u32 2147483648, %v1333_v63  ;;  %v1344_v48 = vand.u32 2147483647, %v1333_v63 }
 0x9e4   :  { %v1354_v28 = vadd.f32 %v3172_v10, %v1353_v53  ;;  %v1182_v38 = vmul.f32 %v3176_v54, %v1181_v44  ;;  %vm1204_vm5 = vcmp.eq.f32.partialorder %v1203_v39, 8.507059e+37 }
 0x9e5   :  { %v1347_v61 = vor.u32 1.1754944e-38, %v1346_v46  ;;  %vm1345_vm9 = vcmp.eq.f32.partialorder %v1344_v48, 8.507059e+37 }
 0x9e6   :  { %v1358_v15 = vsel %vm1357_vm10, %v3172_v10, %v1354_v28  ;;  %v1183_v22 = vadd.f32 %v3176_v54, %v1182_v38  ;;  %v1206_v10 = vor.u32 1.1754944e-38, %v1205_v57 }
 0x9e7   :  { %v3180_v30 = vpop.eup %3179  ;;  %v3907_v9 = vsel %vm1360_vm11, %v1362_v62, %v1358_v15 }
 0x9e8   :  { %v1195_v32 = vmul.f32 %v3180_v30, %v1178_v52  ;;  %v1187_v31 = vsel %vm1186_vm14, %v3176_v54, %v1183_v22  ;;  %vm1200_vm2 = vweird.f32 %v3180_v30 }
 0x9e9   :  { %v3182_v27 = vpop.eup %3181  ;;  %v3913_v14 = vsel %vm1189_vm15, %v1191_v41, %v1187_v31  ;;  %vm1201_vm4 = vmor %vm1199_vm3, %vm1200_vm2 }
 0x9ea   :  { %v1196_v23 = vsub.f32 1.0, %v1195_v32  ;;  %v1336_v25 = vmul.f32 %v3182_v27, %v1333_v63  ;;  %vm1341_vm7 = vweird.f32 %v3182_v27 }
 0x9eb   :  { %vm1342_vm8 = vmor %vm1340_vm6, %vm1341_vm7 }
 0x9ec   :  { %v1197_v3 = vmul.f32 %v3180_v30, %v1196_v23  ;;  %v1337_v37 = vsub.f32 1.0, %v1336_v25 }
 0x9ee   :  { %v1198_v36 = vadd.f32 %v3180_v30, %v1197_v3  ;;  %v1338_v8 = vmul.f32 %v3182_v27, %v1337_v37  ;;  %v1231_v3 = vsub.f32 1.0, %v3913_v14 }
 0x9f0   :  { %v1202_v43 = vsel %vm1201_vm4, %v3180_v30, %v1198_v36  ;;  %v1339_v47 = vadd.f32 %v3182_v27, %v1338_v8 }
 0x9f1   :  { %v1207_v26 = vsel %vm1204_vm5, %v1206_v10, %v1202_v43 }
 0x9f2   :  { %v1343_v49 = vsel %vm1342_vm8, %v3182_v27, %v1339_v47  ;;  %v1232_v32 = vsub.f32 1.0, %v1207_v26 }
 0x9f3   :  { %v1348_v52 = vsel %vm1345_vm9, %v1347_v61, %v1343_v49 }
 0xa24   :  { %v1370_v34 = vpop.permute.xlu2 %1369 }
 0xa25   :  { %v1374_v11 = vmul.f32 %v1370_v34, %v3907_v9  ;;  %v1388_v34 = vsub.f32 1.0, %v3907_v9 }
 0xa27   :  { %1379 = vrot.lane.b32.xlu0 %v1374_v11, %s3333_s13 }
 0xa2f   :  { %1401 = vrot.lane.b32.xlu0 %v3842_v1, %s3334_s18 }
 0xa30   :  { %v1212_v16 = vpop.permute.xlu0 %1211 }
 0xa31   :  { %v1217_v35 = vmul.f32 %v1212_v16, %v3913_v14  ;;  %v1387_v16 = vsub.f32 1.0, %v1348_v52 }
 0xa33   :  { %1221 = vrot.lane.b32.xlu1 %v1217_v35, %s3333_s13 }
 0xa38   :  { %v1214_v1 = vpop.permute.xlu1 %1213 }
 0xa39   :  { %v1218_v42 = vmul.f32 %v1214_v1, %v1207_v26 }
 0xa3b   :  { %1245 = vrot.lane.b32.xlu1 %v3846_v2, %s3334_s18  ;;  %1223 = vrot.lane.b32.xlu2 %v1218_v42, %s3333_s13 }
 0xa40   :  { %v1368_v51 = vpop.permute.xlu1 %1367 }
 0xa41   :  { %v1373_v53 = vmul.f32 %v1368_v51, %v1348_v52 }
 0xa43   :  { %1377 = vrot.lane.b32.xlu2 %v1373_v53, %s3333_s13 }
 0xa95   :  { %v1224_v54 = vpop.permute.xlu2 %1223 }
 0xa96   :  { %v1228_v55 = vadd.f32 %v1224_v54, %v3885_v5  ;;  %v1429_v5 = vpop.f32.mrf.mxu0 }
 0xa98   :  { %3183 = vtanh.f32 %v1228_v55 }
 0xa99   :  { %v1380_v56 = vpop.permute.xlu0 %1379 }
 0xa9a   :  { %v1384_v28 = vadd.f32 %v1380_v56, %v3875_v29 }
 0xa9c   :  { %3185 = vtanh.f32 %v1384_v28 }
 0xa9d   :  { %v1378_v21 = vpop.permute.xlu2 %1377 }
 0xa9e   :  { %v3184_v2 = vpop.eup %3183  ;;  %v1383_v20 = vadd.f32 %v1378_v21, %v3890_v40  ;;  %v1432_v40 = vpop.f32.mrf.mxu0 }
 0xa9f   :  { %1237 = vrot.lane.b32.xlu0 %v3184_v2, %s3335_s23 }
 0xaa0   :  { %3187 = vtanh.f32 %v1383_v20 }
 0xaa1   :  { %v1402_v30 = vpop.permute.xlu0 %1401 }
 0xaa2   :  { %v3186_v63 = vpop.eup %3185  ;;  %v1406_v22 = vmul.f32 %v1402_v30, %v3907_v9 }
 0xaa3   :  { %1393 = vrot.lane.b32.xlu2 %v3186_v63, %s3335_s23 }
 0xaa5   :  { %v1222_v62 = vpop.permute.xlu1 %1221 }
 0xaa6   :  { %v3188_v15 = vpop.eup %3187  ;;  %v1227_v44 = vadd.f32 %v1222_v62, %v3880_v4 }
 0xaa7   :  { %1391 = vrot.lane.b32.xlu0 %v3188_v15, %s3335_s23 }
 0xaa8   :  { %3189 = vtanh.f32 %v1227_v44 }
 0xaab   :  { %1243 = vrot.lane.b32.xlu2 %v3838_v17, %s3334_s18 }
 0xaad   :  { %v1246_v11 = vpop.permute.xlu1 %1245 }
 0xaae   :  { %v3190_v29 = vpop.eup %3189  ;;  %v1250_v23 = vmul.f32 %v1246_v11, %v1207_v26 }
 0xaaf   :  { %1235 = vrot.lane.b32.xlu1 %v3190_v29, %s3335_s23 }
 0xab7   :  { %1399 = vrot.lane.b32.xlu1 %v3834_v0, %s3334_s18 }
 0xabf   :  { %1473 = vperm.xlu1 %3040, %v1432_v40  }
 0xac7   :  { %3053 = vset.pattern.permute.xlu1 %v3332_v13 }
 0xac8   :  { %1625 = vperm.xlu1 %3053, %v1429_v5  }
 0xafd   :  { %v1394_v4 = vpop.permute.xlu2 %1393 }
 0xafe   :  { %v1398_v38 = vmul.f32 %v1394_v4, %v1388_v34 }
 0xb00   :  { %v1408_v7 = vadd.f32 %v1406_v22, %v1398_v38 }
 0xb05   :  { %v1244_v25 = vpop.permute.xlu2 %1243 }
 0xb06   :  { %v1249_v9 = vmul.f32 %v1244_v25, %v3913_v14 }
 0xb11   :  { %v1238_v17 = vpop.permute.xlu0 %1237 }
 0xb12   :  { %v1242_v27 = vmul.f32 %v1238_v17, %v1232_v32 }
 0xb14   :  { %v1252_v50 = vadd.f32 %v1250_v23, %v1242_v27 }
 0xb16   :  { %v3042_v0 = vpack.i.bf16 %v1408_v7, %v1252_v50 }
 0xb18   :  { %3043 = vrot.lane.b32.xlu2 %v3042_v0, %s3335_s23 }
 0xb19   :  { %v1392_v41 = vpop.permute.xlu0 %1391 }
 0xb1a   :  { %v1397_v37 = vmul.f32 %v1392_v41, %v1387_v16 }
 0xb20   :  { %1629 = vperm.xlu2 %3041, %v1432_v40  }
 0xb21   :  { %v1236_v31 = vpop.permute.xlu1 %1235 }
 0xb22   :  { %v1241_v35 = vmul.f32 %v1236_v31, %v1231_v3 }
 0xb24   :  { %v1251_v39 = vadd.f32 %v1249_v9, %v1241_v35 }
 0xb28   :  { %3065 = vset.pattern.permute.xlu2 %v3331_v12 }
 0xb29   :  { %v1400_v36 = vpop.permute.xlu1 %1399 }
 0xb2a   :  { %v1405_v57 = vmul.f32 %v1400_v36, %v1348_v52 }
 0xb2c   :  { %v1407_v43 = vadd.f32 %v1405_v57, %v1397_v37 }
 0xb2e   :  { %v3047_v8 = vpack.i.bf16 %v1407_v43, %v1251_v39 }
 0xb30   :  { %3048 = vrot.lane.b32.xlu0 %v3047_v8, %s3335_s23 }
 0xb31   :  { %v1474_v56 = vpop.permute.xlu1 %1473 }
 0xb32   :  { %v1477_v28 = vmul.f32 %v3866_v24, %v1474_v56 }
 0xb34   :  { %v3980_v2 = vadd.f32 %v3872_v45, %v1477_v28 }
 0xb38   :  { %1468 = vperm.xlu0 %3052, %v1429_v5  }
 0xb3a   :  { %v1626_v44 = vpop.permute.xlu1 %1625 }
 0xb3b   :  { %v1632_v29 = vmul.f32 %v3866_v24, %v1626_v44 }
 0xb3d   :  { %v3990_v40 = vadd.f32 %v3872_v45, %v1632_v29 }
 0xb40   :  { %3064 = vset.pattern.permute.xlu0 %v3332_v13 }
 0xb72   :  { %v3044_v10 = vpop.permute.xlu2 %3043 }
 0xb73   :  { %v3046_v1 = vunpack.i.h.bf16 %v3044_v10  ;;  %v3045_v26 = vunpack.i.l.bf16 %v3044_v10 }
 0xb75   :  { %1457 = vmatpush.msrb.mxu1 %v3045_v26  ;;  %1615 = vmatpush.msrb.mxu2 %v3046_v1 }
 0xb7a   :  { %v1630_v34 = vpop.permute.xlu2 %1629 }
 0xb7b   :  { %v1633_v32 = vmul.f32 %v3866_v24, %v1630_v34 }
 0xb7d   :  { %v3995_v23 = vadd.f32 %v3872_v45, %v1633_v32 }
 0xba2   :  { %v3049_v46 = vpop.permute.xlu0 %3048 }
 0xba3   :  { %v3051_v42 = vunpack.i.h.bf16 %v3049_v46  ;;  %v3050_v47 = vunpack.i.l.bf16 %v3049_v46 }
 0xba5   :  { %1458 = vmatpush.msrb.mxu1 %v3050_v47  ;;  %1616 = vmatpush.msrb.mxu2 %v3051_v42 }
 0xba6   :  { %2927 = vmatmul.msk.f32.vlgmr.msrb.gmra.mxu1 %vm60_vm0, %v3742_v59  ;;  %2933 = vmatmul.msk.f32.vlgmr.msrb.gmra.mxu2 %vm60_vm0, %v3742_v59 }
 0xba7   :  { %1838 = vmatpush.msra.mxu2 %v3750_v19 }
 0xba9   :  { %1839 = vmatpush.msra.mxu2 %v3757_v33 }
 0xbaa   :  { %v1469_v21 = vpop.permute.xlu0 %1468 }
 0xbab   :  { %1840 = vmatpush.msra.mxu2 %v3819_v58  ;;  %v1476_v20 = vmul.f32 %v3866_v24, %v1469_v21 }
 0xbad   :  { %1841 = vmatpush.msra.mxu2 %v3825_v60  ;;  %v3985_v62 = vadd.f32 %v3872_v45, %v1476_v20 }
 0xbae   :  { %2928 = vmatmul.msk.f32.gmra.mxu1 %vm60_vm0, %v3772_v18  ;;  %2934 = vmatmul.msk.f32.gmra.mxu2 %vm60_vm0, %v3772_v18 }
 0xc23   :  { %v3954_v14 = vpop.f32.mrf.mxu1 }
 0xc24   :  { %2929 = vmatmul.msk.f32.vlgmr.msrb.gmra.mxu3 %vm127_vm1, %v3954_v14 }
 0xc29   :  { %v3958_v59 = vpop.f32.mrf.mxu2 }
 0xc2a   :  { %2935 = vmatmul.msk.f32.vlgmr.msra.gmra.mxu0 %vm127_vm1, %v3958_v59 }
 0xc2b   :  { %v3962_v19 = vpop.f32.mrf.mxu1 }
 0xc2c   :  { %2930 = vmatmul.msk.f32.gmra.mxu3 %vm127_vm1, %v3962_v19 }
 0xc31   :  { %v3966_v33 = vpop.f32.mrf.mxu2 }
 0xc32   :  { %2936 = vmatmul.msk.f32.gmra.mxu0 %vm127_vm1, %v3966_v33 }
 0xca7   :  { %v1503_v48 = vpop.f32.mrf.mxu3  ;;  %v1659_v61 = vpop.f32.mrf.mxu0 }
 0xca8   :  { %v1660_v49 = vadd.f32 %v3853_v6, %v1659_v61  ;;  %v1504_v55 = vadd.f32 %v3853_v6, %v1503_v48 }
 0xcaa   :  { %1707 = vrot.lane.b32.xlu0 %v1660_v49, %s3333_s13  ;;  %v1509_v5 = vadd.f32 %v1504_v55, %v3985_v62  ;;  %v1665_v11 = vadd.f32 %v1660_v49, %v3990_v40 }
 0xcac   :  { %v2931_v30 = vmul.f32 -1.442695, %v1509_v5  ;;  %v2937_v17 = vmul.f32 -1.442695, %v1665_v11 }
 0xcaf   :  { %v1506_v51 = vpop.f32.mrf.mxu3  ;;  %v1662_v52 = vpop.f32.mrf.mxu0 }
 0xcb0   :  { %v1507_v53 = vadd.f32 %v3853_v6, %v1506_v51  ;;  %v1663_v54 = vadd.f32 %v3853_v6, %v1662_v52 }
 0xcb2   :  { %1709 = vrot.lane.b32.xlu1 %v1663_v54, %s3333_s13  ;;  %1553 = vrot.lane.b32.xlu2 %v1507_v53, %s3333_s13  ;;  %v1510_v63 = vadd.f32 %v1507_v53, %v3980_v2  ;;  %v1666_v27 = vadd.f32 %v1663_v54, %v3995_v23 }
 0xcb4   :  { %v2932_v15 = vmul.f32 -1.442695, %v1510_v63  ;;  %v2938_v0 = vmul.f32 -1.442695, %v1666_v27 }
 0xcb6   :  { %3191 = vpow2.f32 %v2932_v15 }
 0xcb7   :  { %3193 = vpow2.f32 %v2931_v30 }
 0xcba   :  { %1551 = vrot.lane.b32.xlu2 %v1504_v55, %s3333_s13 }
 0xcbc   :  { %v3192_v4 = vpop.eup %3191 }
 0xcbd   :  { %v1518_v38 = vadd.f32 1.0, %v3192_v4  ;;  %v3194_v22 = vpop.eup %3193 }
 0xcbe   :  { %v1517_v7 = vadd.f32 1.0, %v3194_v22 }
 0xcbf   :  { %3195 = vrcp.f32 %v1518_v38  ;;  %v1545_v8 = vand.u32 2147483648, %v1518_v38  ;;  %vm1539_vm11 = vweird.f32 %v1518_v38  ;;  %v1543_v10 = vand.u32 2147483647, %v1518_v38 }
 0xcc0   :  { %3197 = vpow2.f32 %v2937_v17  ;;  %vm1524_vm14 = vweird.f32 %v1517_v7  ;;  %v1530_v53 = vand.u32 2147483648, %v1517_v7  ;;  %v1528_v54 = vand.u32 2147483647, %v1517_v7 }
 0xcc1   :  { %3199 = vrcp.f32 %v1517_v7  ;;  %v1546_v42 = vor.u32 1.1754944e-38, %v1545_v8  ;;  %vm1544_vm13 = vcmp.eq.f32.partialorder %v1543_v10, 8.507059e+37 }
 0xcc2   :  { %3201 = vpow2.f32 %v2938_v0  ;;  %v1531_v21 = vor.u32 1.1754944e-38, %v1530_v53  ;;  %vm1529_vm3 = vcmp.eq.f32.partialorder %v1528_v54, 8.507059e+37 }
 0xcc5   :  { %v3196_v50 = vpop.eup %3195 }
 0xcc6   :  { %v3198_v31 = vpop.eup %3197  ;;  %v1535_v3 = vmul.f32 %v3196_v50, %v1518_v38  ;;  %vm1540_vm10 = vweird.f32 %v3196_v50 }
 0xcc7   :  { %v1673_v25 = vadd.f32 1.0, %v3198_v31  ;;  %v3200_v16 = vpop.eup %3199  ;;  %vm1541_vm12 = vmor %vm1539_vm11, %vm1540_vm10 }
 0xcc8   :  { %v1536_v41 = vsub.f32 1.0, %v1535_v3  ;;  %v3202_v35 = vpop.eup %3201  ;;  %v1520_v9 = vmul.f32 %v3200_v16, %v1517_v7  ;;  %vm1525_vm15 = vweird.f32 %v3200_v16 }
 0xcc9   :  { %3203 = vrcp.f32 %v1673_v25  ;;  %v1674_v37 = vadd.f32 1.0, %v3202_v35  ;;  %vm1526_vm2 = vmor %vm1524_vm14, %vm1525_vm15  ;;  %v1686_v5 = vand.u32 2147483648, %v1673_v25  ;;  %vm1680_vm5 = vweird.f32 %v1673_v25  ;;  %v4037_v35 = vld [vmem:[%s4421_s4 + $0x10] sm:$0xff] }
 0xcca   :  { %v1537_v36 = vmul.f32 %v3196_v50, %v1536_v41  ;;  %v1521_v39 = vsub.f32 1.0, %v1520_v9  ;;  %v1684_v30 = vand.u32 2147483647, %v1673_v25  ;;  %v2939_v41 = vld [vmem:[%s4418_s1 + $0x50] sm:$0xff] }
 0xccb   :  { %3205 = vrcp.f32 %v1674_v37  ;;  %v1687_v11 = vor.u32 1.1754944e-38, %v1686_v5  ;;  %v1701_v27 = vand.u32 2147483648, %v1674_v37  ;;  %vm1695_vm9 = vweird.f32 %v1674_v37 }
 0xccc   :  { %v1538_v57 = vadd.f32 %v3196_v50, %v1537_v36  ;;  %v1522_v26 = vmul.f32 %v3200_v16, %v1521_v39  ;;  %vm1685_vm7 = vcmp.eq.f32.partialorder %v1684_v30, 8.507059e+37  ;;  %v1699_v7 = vand.u32 2147483647, %v1674_v37 }
 0xccd   :  { %v1702_v0 = vor.u32 1.1754944e-38, %v1701_v27 }
 0xcce   :  { %v1542_v1 = vsel %vm1541_vm12, %v3196_v50, %v1538_v57  ;;  %v1523_v49 = vadd.f32 %v3200_v16, %v1522_v26  ;;  %vm1700_vm11 = vcmp.eq.f32.partialorder %v1699_v7, 8.507059e+37 }
 0xccf   :  { %v3204_v43 = vpop.eup %3203  ;;  %v3998_v48 = vsel %vm1544_vm13, %v1546_v42, %v1542_v1 }
 0xcd0   :  { %v1676_v46 = vmul.f32 %v3204_v43, %v1673_v25  ;;  %v1527_v55 = vsel %vm1526_vm2, %v3200_v16, %v1523_v49  ;;  %vm1681_vm4 = vweird.f32 %v3204_v43  ;;  %v4024_v16 = vld [vmem:[%s4417_s0] sm:$0xff] }
 0xcd1   :  { %v3206_v52 = vpop.eup %3205  ;;  %v4002_v20 = vsel %vm1529_vm3, %v1531_v21, %v1527_v55  ;;  %vm1682_vm6 = vmor %vm1680_vm5, %vm1681_vm4 }
 0xcd2   :  { %v1677_v51 = vsub.f32 1.0, %v1676_v46  ;;  %v1691_v28 = vmul.f32 %v3206_v52, %v1674_v37  ;;  %vm1696_vm8 = vweird.f32 %v3206_v52  ;;  %v1572_v46 = vsub.f32 1.0, %v3998_v48 }
 0xcd3   :  { %vm1697_vm10 = vmor %vm1695_vm9, %vm1696_vm8 }
 0xcd4   :  { %v1678_v56 = vmul.f32 %v3204_v43, %v1677_v51  ;;  %v1692_v29 = vsub.f32 1.0, %v1691_v28  ;;  %v1571_v28 = vsub.f32 1.0, %v4002_v20 }
 0xcd6   :  { %v1679_v44 = vadd.f32 %v3204_v43, %v1678_v56  ;;  %v1693_v34 = vmul.f32 %v3206_v52, %v1692_v29 }
 0xcd8   :  { %v1683_v4 = vsel %vm1682_vm6, %v3204_v43, %v1679_v44  ;;  %v1694_v22 = vadd.f32 %v3206_v52, %v1693_v34 }
 0xcd9   :  { %v4006_v32 = vsel %vm1685_vm7, %v1687_v11, %v1683_v4 }
 0xcda   :  { %v1698_v50 = vsel %vm1697_vm10, %v3206_v52, %v1694_v22 }
 0xcdb   :  { %v1703_v3 = vsel %vm1700_vm11, %v1702_v0, %v1698_v50 }
 0xd0c   :  { %v1554_v47 = vpop.permute.xlu2 %1553 }
 0xd0d   :  { %v1558_v61 = vmul.f32 %v1554_v47, %v3998_v48 }
 0xd0f   :  { %1563 = vrot.lane.b32.xlu1 %v1558_v61, %s3333_s13  ;;  %v1728_v61 = vsub.f32 1.0, %v1703_v3 }
 0xd14   :  { %v1552_v63 = vpop.permute.xlu2 %1551 }
 0xd15   :  { %v1557_v15 = vmul.f32 %v1552_v63, %v4002_v20  ;;  %v1727_v63 = vsub.f32 1.0, %v4006_v32 }
 0xd17   :  { %1561 = vrot.lane.b32.xlu0 %v1557_v15, %s3333_s13 }
 0xd1c   :  { %v1708_v38 = vpop.permute.xlu0 %1707 }
 0xd1d   :  { %v1713_v17 = vmul.f32 %v1708_v38, %v4006_v32 }
 0xd1f   :  { %1585 = vrot.lane.b32.xlu0 %v3962_v19, %s3334_s18  ;;  %1717 = vrot.lane.b32.xlu1 %v1713_v17, %s3333_s13  ;;  %v2940_v19 = vld [vmem:[%s4418_s1 + $0x58] sm:$0xff] }
 0xd20   :  { %1766 = vmatpush.msra.mxu1 %v2940_v19 }
 0xd22   :  { %1767 = vmatpush.msra.mxu1 %v2939_v41 }
 0xd23   :  { %2941 = vmatmul.msk.f32.vlgmr.msra.gmra.mxu1 %vm60_vm0, %v4024_v16 }
 0xd24   :  { %v1710_v31 = vpop.permute.xlu1 %1709 }
 0xd25   :  { %v1714_v25 = vmul.f32 %v1710_v31, %v1703_v3 }
 0xd27   :  { %1719 = vrot.lane.b32.xlu2 %v1714_v25, %s3333_s13 }
 0xd2b   :  { %2942 = vmatmul.msk.f32.gmra.mxu1 %vm60_vm0, %v3772_v18 }
 0xd2f   :  { %1741 = vrot.lane.b32.xlu2 %v3966_v33, %s3334_s18  ;;  %v4031_v33 = vld [vmem:[%s4421_s4 + $0x18] sm:$0xff] }
 0xd30   :  { %1994 = vmatpush.msrb.mxu1 %v4031_v33 }
 0xd32   :  { %1995 = vmatpush.msrb.mxu1 %v4037_v35 }
 0xd34   :  { %1996 = vmatpush.msrb.mxu1 %v3819_v58 }
 0xd36   :  { %1997 = vmatpush.msrb.mxu1 %v3825_v60 }
 0xd81   :  { %v1720_v36 = vpop.permute.xlu2 %1719  ;;  %v1564_v9 = vpop.permute.xlu1 %1563 }
 0xd82   :  { %v1724_v37 = vadd.f32 %v1720_v36, %v3995_v23  ;;  %v1568_v57 = vadd.f32 %v1564_v9, %v3980_v2 }
 0xd84   :  { %3207 = vtanh.f32 %v1724_v37 }
 0xd85   :  { %3209 = vtanh.f32 %v1568_v57 }
 0xd89   :  { %v1562_v39 = vpop.permute.xlu0 %1561 }
 0xd8a   :  { %v3208_v43 = vpop.eup %3207  ;;  %v1567_v8 = vadd.f32 %v1562_v39, %v3985_v62  ;;  %v1742_v62 = vpop.permute.xlu2 %1741 }
 0xd8b   :  { %v3210_v10 = vpop.eup %3209  ;;  %1733 = vrot.lane.b32.xlu1 %v3208_v43, %s3335_s23  ;;  %v1746_v49 = vmul.f32 %v1742_v62, %v1703_v3 }
 0xd8c   :  { %3211 = vtanh.f32 %v1567_v8  ;;  %1577 = vrot.lane.b32.xlu2 %v3210_v10, %s3335_s23 }
 0xd91   :  { %v1718_v1 = vpop.permute.xlu1 %1717  ;;  %v1586_v42 = vpop.permute.xlu0 %1585 }
 0xd92   :  { %v3212_v18 = vpop.eup %3211  ;;  %v1723_v26 = vadd.f32 %v1718_v1, %v3990_v40  ;;  %v1590_v51 = vmul.f32 %v1586_v42, %v3998_v48 }
 0xd93   :  { %1575 = vrot.lane.b32.xlu0 %v3212_v18, %s3335_s23  ;;  %1583 = vrot.lane.b32.xlu1 %v3954_v14, %s3334_s18 }
 0xd94   :  { %3213 = vtanh.f32 %v1723_v26 }
 0xd9a   :  { %v3214_v2 = vpop.eup %3213 }
 0xd9b   :  { %1739 = vrot.lane.b32.xlu0 %v3958_v59, %s3334_s18  ;;  %1731 = vrot.lane.b32.xlu2 %v3214_v2, %s3335_s23 }
 0xda0   :  { %v1769_v56 = vpop.f32.mrf.mxu1 }
 0xde6   :  { %v1578_v23 = vpop.permute.xlu2 %1577 }
 0xde7   :  { %v1582_v47 = vmul.f32 %v1578_v23, %v1572_v46 }
 0xde9   :  { %v1592_v14 = vadd.f32 %v1590_v51, %v1582_v47 }
 0xdf5   :  { %v1732_v21 = vpop.permute.xlu2 %1731 }
 0xdf6   :  { %v1737_v48 = vmul.f32 %v1732_v21, %v1727_v63 }
 0xdfd   :  { %v1734_v40 = vpop.permute.xlu1 %1733 }
 0xdfe   :  { %v1738_v52 = vmul.f32 %v1734_v40, %v1728_v61 }
 0xe00   :  { %v1748_v53 = vadd.f32 %v1746_v49, %v1738_v52 }
 0xe02   :  { %v3054_v54 = vpack.i.bf16 %v1748_v53, %v1592_v14 }
 0xe04   :  { %3055 = vrot.lane.b32.xlu1 %v3054_v54, %s3335_s23 }
 0xe05   :  { %v1576_v59 = vpop.permute.xlu0 %1575  ;;  %v1584_v55 = vpop.permute.xlu1 %1583 }
 0xe06   :  { %v1581_v15 = vmul.f32 %v1576_v59, %v1571_v28  ;;  %v1589_v44 = vmul.f32 %v1584_v55, %v4002_v20  ;;  %v4076_v20 = vld [vmem:[%s4417_s0 + $0x8] sm:$0xff] }
 0xe08   :  { %v1591_v30 = vadd.f32 %v1589_v44, %v1581_v15 }
 0xe0c   :  { %1965 = vperm.xlu1 %3053, %v1769_v56  }
 0xe0d   :  { %v1740_v29 = vpop.permute.xlu0 %1739 }
 0xe0e   :  { %v1745_v5 = vmul.f32 %v1740_v29, %v4006_v32  ;;  %v1772_v32 = vpop.f32.mrf.mxu1 }
 0xe0f   :  { %1969 = vperm.xlu0 %3064, %v1772_v32  }
 0xe10   :  { %v1747_v4 = vadd.f32 %v1745_v5, %v1737_v48 }
 0xe12   :  { %v3059_v34 = vpack.i.bf16 %v1747_v4, %v1591_v30 }
 0xe14   :  { %3060 = vrot.lane.b32.xlu2 %v3059_v34, %s3335_s23  ;;  %3066 = vset.pattern.permute.xlu1 %v3331_v12 }
 0xe15   :  { %1808 = vperm.xlu1 %3066, %v1769_v56  }
 0xe1c   :  { %1813 = vperm.xlu2 %3065, %v1772_v32  }
 0xe24   :  { %3077 = vset.pattern.permute.xlu2 %v3332_v13 }
 0xe6e   :  { %v3061_v11 = vpop.permute.xlu2 %3060 }
 0xe6f   :  { %v3063_v27 = vunpack.i.h.bf16 %v3061_v11  ;;  %v3062_v7 = vunpack.i.l.bf16 %v3061_v11 }
 0xe76   :  { %v3056_v38 = vpop.permute.xlu1 %3055  ;;  %v1814_v51 = vpop.permute.xlu2 %1813 }
 0xe77   :  { %v3058_v17 = vunpack.i.h.bf16 %v3056_v38  ;;  %v3057_v22 = vunpack.i.l.bf16 %v3056_v38  ;;  %v1817_v53 = vmul.f32 %v3866_v24, %v1814_v51 }
 0xe79   :  { %1797 = vmatpush.msra.mxu3 %v3057_v22  ;;  %1955 = vmatpush.msrb.mxu0 %v3058_v17  ;;  %v4124_v55 = vadd.f32 %v3872_v45, %v1817_v53 }
 0xe7b   :  { %1798 = vmatpush.msra.mxu3 %v3062_v7  ;;  %1956 = vmatpush.msrb.mxu0 %v3063_v27 }
 0xe7c   :  { %2943 = vmatmul.msk.f32.vlgmr.msra.gmra.mxu3 %vm60_vm0, %v4024_v16  ;;  %2949 = vmatmul.msk.f32.vlgmr.msrb.gmra.mxu0 %vm60_vm0, %v4024_v16 }
 0xe7d   :  { %2178 = vmatpush.msra.mxu0 %v4031_v33 }
 0xe7e   :  { %v1966_v57 = vpop.permute.xlu1 %1965 }
 0xe7f   :  { %2179 = vmatpush.msra.mxu0 %v4037_v35  ;;  %v1972_v62 = vmul.f32 %v3866_v24, %v1966_v57 }
 0xe81   :  { %2180 = vmatpush.msra.mxu0 %v3819_v58  ;;  %v1970_v39 = vpop.permute.xlu0 %1969  ;;  %v4119_v42 = vadd.f32 %v3872_v45, %v1972_v62 }
 0xe82   :  { %v1973_v43 = vmul.f32 %v3866_v24, %v1970_v39 }
 0xe83   :  { %2181 = vmatpush.msra.mxu0 %v3825_v60 }
 0xe84   :  { %2944 = vmatmul.msk.f32.gmra.mxu3 %vm60_vm0, %v4076_v20  ;;  %2950 = vmatmul.msk.f32.gmra.mxu0 %vm60_vm0, %v4076_v20  ;;  %v4109_v8 = vadd.f32 %v3872_v45, %v1973_v43 }
 0xe87   :  { %v1809_v10 = vpop.permute.xlu1 %1808 }
 0xe88   :  { %v1816_v18 = vmul.f32 %v3866_v24, %v1809_v10 }
 0xe8a   :  { %v4114_v2 = vadd.f32 %v3872_v45, %v1816_v18 }
 0xef9   :  { %v4083_v50 = vpop.f32.mrf.mxu0 }
 0xefa   :  { %2951 = vmatmul.msk.f32.vlgmr.msrb.gmra.mxu1 %vm127_vm1, %v4083_v50 }
 0xeff   :  { %v4087_v58 = vpop.f32.mrf.mxu3 }
 0xf00   :  { %2945 = vmatmul.msk.f32.vlgmr.msra.gmra.mxu2 %vm127_vm1, %v4087_v58 }
 0xf01   :  { %v4091_v60 = vpop.f32.mrf.mxu0 }
 0xf02   :  { %2952 = vmatmul.msk.f32.gmra.mxu1 %vm127_vm1, %v4091_v60 }
 0xf07   :  { %v4095_v0 = vpop.f32.mrf.mxu3 }
 0xf08   :  { %2946 = vmatmul.msk.f32.gmra.mxu2 %vm127_vm1, %v4095_v0 }
 0xf77   :  { %v1999_v31 = vpop.f32.mrf.mxu1 }
 0xf78   :  { %v2000_v3 = vadd.f32 %v3853_v6, %v1999_v31 }
 0xf7a   :  { %2047 = vrot.lane.b32.xlu0 %v2000_v3, %s3333_s13  ;;  %v2005_v47 = vadd.f32 %v2000_v3, %v4119_v42 }
 0xf7c   :  { %v2953_v40 = vmul.f32 -1.442695, %v2005_v47 }
 0xf7f   :  { %v2002_v25 = vpop.f32.mrf.mxu1 }
 0xf80   :  { %v2003_v19 = vadd.f32 %v3853_v6, %v2002_v25 }
 0xf82   :  { %2049 = vrot.lane.b32.xlu2 %v2003_v19, %s3333_s13  ;;  %v2006_v1 = vadd.f32 %v2003_v19, %v4109_v8 }
 0xf83   :  { %v1843_v41 = vpop.f32.mrf.mxu2 }
 0xf84   :  { %v1844_v36 = vadd.f32 %v3853_v6, %v1843_v41  ;;  %v2954_v26 = vmul.f32 -1.442695, %v2006_v1 }
 0xf86   :  { %3215 = vpow2.f32 %v2954_v26 }
 0xf8a   :  { %1891 = vrot.lane.b32.xlu2 %v1844_v36, %s3333_s13 }
 0xf8b   :  { %v1846_v9 = vpop.f32.mrf.mxu2 }
 0xf8c   :  { %v1847_v37 = vadd.f32 %v3853_v6, %v1846_v9  ;;  %v1849_v6 = vadd.f32 %v1844_v36, %v4114_v2  ;;  %v3216_v46 = vpop.eup %3215 }
 0xf8d   :  { %v2014_v61 = vadd.f32 1.0, %v3216_v46 }
 0xf8e   :  { %1893 = vrot.lane.b32.xlu1 %v1847_v37, %s3333_s13  ;;  %v2947_v23 = vmul.f32 -1.442695, %v1849_v6  ;;  %v1850_v63 = vadd.f32 %v1847_v37, %v4124_v55 }
 0xf8f   :  { %vm2035_vm12 = vweird.f32 %v2014_v61  ;;  %v2041_v30 = vand.u32 2147483648, %v2014_v61  ;;  %v2039_v4 = vand.u32 2147483647, %v2014_v61 }
 0xf90   :  { %3217 = vpow2.f32 %v2947_v23  ;;  %v2948_v29 = vmul.f32 -1.442695, %v1850_v63  ;;  %v4164_v63 = vld [vmem:[%s4421_s4] sm:$0xff] }
 0xf91   :  { %3219 = vrcp.f32 %v2014_v61  ;;  %v2042_v38 = vor.u32 1.1754944e-38, %v2041_v30  ;;  %vm2040_vm15 = vcmp.eq.f32.partialorder %v2039_v4, 8.507059e+37 }
 0xf92   :  { %3221 = vpow2.f32 %v2953_v40 }
 0xf96   :  { %v3218_v49 = vpop.eup %3217 }
 0xf97   :  { %v1857_v52 = vadd.f32 1.0, %v3218_v49  ;;  %v3220_v14 = vpop.eup %3219 }
 0xf98   :  { %v3222_v54 = vpop.eup %3221  ;;  %v2031_v59 = vmul.f32 %v3220_v14, %v2014_v61  ;;  %vm2036_vm13 = vweird.f32 %v3220_v14 }
 0xf99   :  { %3223 = vrcp.f32 %v1857_v52  ;;  %v2013_v56 = vadd.f32 1.0, %v3222_v54  ;;  %vm2037_vm14 = vmor %vm2035_vm12, %vm2036_vm13  ;;  %vm1864_vm2 = vweird.f32 %v1857_v52  ;;  %v1870_v27 = vand.u32 2147483648, %v1857_v52 }
 0xf9a   :  { %v2032_v28 = vsub.f32 1.0, %v2031_v59  ;;  %v1868_v3 = vand.u32 2147483647, %v1857_v52 }
 0xf9b   :  { %3225 = vrcp.f32 %v2013_v56  ;;  %v1871_v41 = vor.u32 1.1754944e-38, %v1870_v27  ;;  %v2026_v10 = vand.u32 2147483648, %v2013_v56  ;;  %vm2020_vm7 = vweird.f32 %v2013_v56 }
 0xf9c   :  { %v2033_v15 = vmul.f32 %v3220_v14, %v2032_v28  ;;  %3227 = vpow2.f32 %v2948_v29  ;;  %vm1869_vm5 = vcmp.eq.f32.partialorder %v1868_v3, 8.507059e+37  ;;  %v2024_v1 = vand.u32 2147483647, %v2013_v56  ;;  %v2956_v28 = vld [vmem:[%s4418_s1 + $0x68] sm:$0xff] }
 0xf9d   :  { %v2027_v6 = vor.u32 1.1754944e-38, %v2026_v10  ;;  %2106 = vmatpush.msrb.mxu3 %v2956_v28 }
 0xf9e   :  { %v2034_v48 = vadd.f32 %v3220_v14, %v2033_v15  ;;  %vm2025_vm9 = vcmp.eq.f32.partialorder %v2024_v1, 8.507059e+37 }
 0xf9f   :  { %v3224_v21 = vpop.eup %3223 }
 0xfa0   :  { %v1860_v44 = vmul.f32 %v3224_v21, %v1857_v52  ;;  %v2038_v45 = vsel %vm2037_vm14, %v3220_v14, %v2034_v48  ;;  %vm1865_vm3 = vweird.f32 %v3224_v21 }
 0xfa1   :  { %v3226_v24 = vpop.eup %3225  ;;  %v4127_v22 = vsel %vm2040_vm15, %v2042_v38, %v2038_v45  ;;  %vm1866_vm4 = vmor %vm1864_vm2, %vm1865_vm3 }
 0xfa2   :  { %v1861_v5 = vsub.f32 1.0, %v1860_v44  ;;  %v2016_v11 = vmul.f32 %v3226_v24, %v2013_v56  ;;  %v3228_v7 = vpop.eup %3227  ;;  %vm2021_vm6 = vweird.f32 %v3226_v24  ;;  %v2068_v27 = vsub.f32 1.0, %v4127_v22 }
 0xfa3   :  { %v1858_v19 = vadd.f32 1.0, %v3228_v7  ;;  %vm2022_vm8 = vmor %vm2020_vm7, %vm2021_vm6 }
 0xfa4   :  { %v1862_v34 = vmul.f32 %v3224_v21, %v1861_v5  ;;  %v2017_v25 = vsub.f32 1.0, %v2016_v11 }
 0xfa5   :  { %3229 = vrcp.f32 %v1858_v19  ;;  %vm1879_vm10 = vweird.f32 %v1858_v19  ;;  %v1885_v49 = vand.u32 2147483648, %v1858_v19  ;;  %v1883_v52 = vand.u32 2147483647, %v1858_v19 }
 0xfa6   :  { %v1863_v31 = vadd.f32 %v3224_v21, %v1862_v34  ;;  %v2018_v9 = vmul.f32 %v3226_v24, %v2017_v25 }
 0xfa7   :  { %v1886_v14 = vor.u32 1.1754944e-38, %v1885_v49  ;;  %vm1884_vm13 = vcmp.eq.f32.partialorder %v1883_v52, 8.507059e+37 }
 0xfa8   :  { %v1867_v36 = vsel %vm1866_vm4, %v3224_v21, %v1863_v31  ;;  %v2019_v43 = vadd.f32 %v3226_v24, %v2018_v9  ;;  %v2955_v21 = vld [vmem:[%s4418_s1 + $0x60] sm:$0xff] }
 0xfa9   :  { %v4131_v57 = vsel %vm1869_vm5, %v1871_v41, %v1867_v36  ;;  %2107 = vmatpush.msrb.mxu3 %v2955_v21 }
 0xfaa   :  { %v2023_v18 = vsel %vm2022_vm8, %v3226_v24, %v2019_v43  ;;  %2957 = vmatmul.msk.f32.vlgmr.msrb.gmra.mxu3 %vm60_vm0, %v4024_v16  ;;  %v1911_v36 = vsub.f32 1.0, %v4131_v57 }
 0xfab   :  { %v3230_v26 = vpop.eup %3229  ;;  %v4135_v23 = vsel %vm2025_vm9, %v2027_v6, %v2023_v18  ;;  %2334 = vmatpush.msra.mxu3 %v4031_v33 }
 0xfac   :  { %v1875_v47 = vmul.f32 %v3230_v26, %v1858_v19  ;;  %vm1880_vm11 = vweird.f32 %v3230_v26 }
 0xfad   :  { %vm1881_vm12 = vmor %vm1879_vm10, %vm1880_vm11  ;;  %2335 = vmatpush.msra.mxu3 %v4037_v35 }
 0xfae   :  { %v1876_v61 = vsub.f32 1.0, %v1875_v47 }
 0xfb0   :  { %v1877_v40 = vmul.f32 %v3230_v26, %v1876_v61 }
 0xfb2   :  { %v1878_v51 = vadd.f32 %v3230_v26, %v1877_v40  ;;  %2958 = vmatmul.msk.f32.gmra.mxu3 %vm60_vm0, %v4076_v20 }
 0xfb4   :  { %v1882_v53 = vsel %vm1881_vm12, %v3230_v26, %v1878_v51 }
 0xfb5   :  { %v4139_v59 = vsel %vm1884_vm13, %v1886_v14, %v1882_v53  ;;  %v4227_v53 = vld [vmem:[%s4423_s6] ss:$0 sm:$0xff] }
 0xfdc   :  { %v2050_v17 = vpop.permute.xlu2 %2049 }
 0xfdd   :  { %v2054_v32 = vmul.f32 %v2050_v17, %v4127_v22 }
 0xfdf   :  { %2059 = vrot.lane.b32.xlu0 %v2054_v32, %s3333_s13  ;;  %v2067_v32 = vsub.f32 1.0, %v4135_v23 }
 0xfe4   :  { %v1892_v37 = vpop.permute.xlu2 %1891 }
 0xfe5   :  { %v1897_v39 = vmul.f32 %v1892_v37, %v4131_v57 }
 0xfe7   :  { %1901 = vrot.lane.b32.xlu0 %v1897_v39, %s3333_s13  ;;  %v1912_v39 = vsub.f32 1.0, %v4139_v59 }
 0xfec   :  { %v2048_v62 = vpop.permute.xlu0 %2047 }
 0xfed   :  { %v2053_v46 = vmul.f32 %v2048_v62, %v4135_v23 }
 0xfef   :  { %2057 = vrot.lane.b32.xlu1 %v2053_v46, %s3333_s13 }
0x1000   :  { %v1894_v54 = vpop.permute.xlu1 %1893 }
0x1001   :  { %v1898_v56 = vmul.f32 %v1894_v54, %v4139_v59 }
0x1003   :  { %1903 = vrot.lane.b32.xlu2 %v1898_v56, %s3333_s13 }
0x100b   :  { %2081 = vrot.lane.b32.xlu2 %v4091_v60, %s3334_s18  ;;  %v4158_v60 = vld [vmem:[%s4421_s4 + $0x8] sm:$0xff] }
0x100c   :  { %2336 = vmatpush.msra.mxu3 %v4158_v60 }
0x100e   :  { %2337 = vmatpush.msra.mxu3 %v4164_v63 }
0x1051   :  { %v2060_v15 = vpop.permute.xlu0 %2059 }
0x1052   :  { %v2064_v44 = vadd.f32 %v2060_v15, %v4109_v8 }
0x1054   :  { %3231 = vtanh.f32 %v2064_v44 }
0x1059   :  { %v1902_v48 = vpop.permute.xlu0 %1901 }
0x105a   :  { %v3232_v29 = vpop.eup %3231  ;;  %v1907_v30 = vadd.f32 %v1902_v48, %v4114_v2  ;;  %v2109_v2 = vpop.f32.mrf.mxu3  ;;  %v4240_v48 = vld [vmem:[%s4420_s3] ss:$0 sm:$0xff] }
0x105b   :  { %2073 = vrot.lane.b32.xlu1 %v3232_v29, %s3335_s23 }
0x105d   :  { %v1904_v5 = vpop.permute.xlu2 %1903 }
0x105e   :  { %v1908_v24 = vadd.f32 %v1904_v5, %v4124_v55 }
0x1060   :  { %3233 = vtanh.f32 %v1908_v24  ;;  %v4246_v24 = vld [vmem:[%s4422_s5] ss:$0 sm:$0xff] }
0x1061   :  { %v2058_v4 = vpop.permute.xlu1 %2057  ;;  %3235 = vtanh.f32 %v1907_v30 }
0x1062   :  { %v2063_v45 = vadd.f32 %v2058_v4, %v4119_v42 }
0x1063   :  { %2079 = vrot.lane.b32.xlu1 %v4083_v50, %s3334_s18  ;;  %v2112_v50 = vpop.f32.mrf.mxu3 }
0x1064   :  { %3237 = vtanh.f32 %v2063_v45 }
0x1065   :  { %v2082_v55 = vpop.permute.xlu2 %2081 }
0x1066   :  { %v3234_v8 = vpop.eup %3233 }
0x1067   :  { %1917 = vrot.lane.b32.xlu2 %v3234_v8, %s3335_s23  ;;  %v3236_v34 = vpop.eup %3235 }
0x106a   :  { %v3238_v11 = vpop.eup %3237 }
0x106b   :  { %1915 = vrot.lane.b32.xlu1 %v3236_v34, %s3335_s23  ;;  %2071 = vrot.lane.b32.xlu0 %v3238_v11, %s3335_s23 }
0x106f   :  { %1923 = vrot.lane.b32.xlu2 %v4087_v58, %s3334_s18  ;;  %v2086_v58 = vmul.f32 %v2082_v55, %v4127_v22 }
0x1073   :  { %1925 = vrot.lane.b32.xlu0 %v4095_v0, %s3334_s18 }
0x1077   :  { %2309 = vperm.xlu2 %3077, %v2112_v50  }
0x107f   :  { %3078 = vset.pattern.permute.xlu2 %v3331_v12 }
0x1080   :  { %2148 = vperm.xlu2 %3078, %v2109_v2  }
0x10c1   :  { %v1918_v17 = vpop.permute.xlu2 %1917 }
0x10c2   :  { %v1922_v1 = vmul.f32 %v1918_v17, %v1912_v39 }
0x10c9   :  { %v1924_v37 = vpop.permute.xlu2 %1923 }
0x10ca   :  { %v1929_v18 = vmul.f32 %v1924_v37, %v4131_v57 }
0x10cd   :  { %v2074_v42 = vpop.permute.xlu1 %2073 }
0x10ce   :  { %v2078_v7 = vmul.f32 %v2074_v42, %v2068_v27 }
0x10d0   :  { %v2088_v25 = vadd.f32 %v2086_v58, %v2078_v7 }
0x10d1   :  { %v2310_v11 = vpop.permute.xlu2 %2309 }
0x10d2   :  { %v2313_v55 = vmul.f32 %v4240_v48, %v2310_v11 }
0x10d5   :  { %v2080_v38 = vpop.permute.xlu1 %2079 }
0x10d6   :  { %v2085_v0 = vmul.f32 %v2080_v38, %v4135_v23  ;;  %v4259_v38 = vadd.f32 %v4246_v24, %v2313_v55 }
0x10da   :  { %v2149_v17 = vpop.permute.xlu2 %2148 }
0x10dd   :  { %v2072_v31 = vpop.permute.xlu0 %2071  ;;  %v1916_v41 = vpop.permute.xlu1 %1915 }
0x10de   :  { %v2077_v3 = vmul.f32 %v2072_v31, %v2067_v32  ;;  %v1921_v43 = vmul.f32 %v1916_v41, %v1911_v36  ;;  %v2156_v32 = vmul.f32 %v4240_v48, %v2149_v17 }
0x10e0   :  { %v2087_v19 = vadd.f32 %v2085_v0, %v2077_v3  ;;  %v1931_v26 = vadd.f32 %v1929_v18, %v1921_v43  ;;  %v4264_v0 = vadd.f32 %v4246_v24, %v2156_v32 }
0x10e2   :  { %v3067_v9 = vpack.i.bf16 %v2087_v19, %v2088_v25 }
0x10e4   :  { %3068 = vrot.lane.b32.xlu0 %v3067_v9, %s3335_s23 }
0x10e5   :  { %v1926_v10 = vpop.permute.xlu0 %1925 }
0x10e6   :  { %v1930_v22 = vmul.f32 %v1926_v10, %v4139_v59 }
0x10e8   :  { %v1932_v6 = vadd.f32 %v1930_v22, %v1922_v1 }
0x10ea   :  { %v3072_v62 = vpack.i.bf16 %v1931_v26, %v1932_v6 }
0x10ec   :  { %2305 = vperm.xlu0 %3064, %v2109_v2   ;;  %3073 = vrot.lane.b32.xlu1 %v3072_v62, %s3335_s23 }
0x10f4   :  { %2153 = vperm.xlu1 %3066, %v2112_v50   ;;  %3089 = vset.pattern.permute.xlu0 %v3331_v12 }
0x10fc   :  { %3090 = vset.pattern.permute.xlu1 %v3332_v13 }
0x1156   :  { %v3069_v23 = vpop.permute.xlu0 %3068 }
0x1157   :  { %v3070_v46 = vunpack.i.l.bf16 %v3069_v23  ;;  %v3071_v47 = vunpack.i.h.bf16 %v3069_v23 }
0x1159   :  { %2295 = vmatpush.msra.mxu1 %v3070_v46 }
0x115b   :  { %2296 = vmatpush.msra.mxu1 %v3071_v47 }
0x115c   :  { %2965 = vmatmul.msk.f32.vlgmr.msra.gmra.mxu1 %vm60_vm0, %v4024_v16 }
0x115d   :  { %2518 = vmatpush.msrb.mxu1 %v4031_v33 }
0x115e   :  { %v3074_v57 = vpop.permute.xlu1 %3073  ;;  %v2306_v4 = vpop.permute.xlu0 %2305 }
0x115f   :  { %v3075_v61 = vunpack.i.l.bf16 %v3074_v57  ;;  %2519 = vmatpush.msrb.mxu1 %v4037_v35  ;;  %v3076_v40 = vunpack.i.h.bf16 %v3074_v57  ;;  %v2312_v8 = vmul.f32 %v4240_v48, %v2306_v4 }
0x1161   :  { %2137 = vmatpush.msrb.mxu2 %v3075_v61  ;;  %2520 = vmatpush.msrb.mxu1 %v4158_v60  ;;  %v4254_v2 = vadd.f32 %v4246_v24, %v2312_v8 }
0x1163   :  { %2138 = vmatpush.msrb.mxu2 %v3076_v40  ;;  %2521 = vmatpush.msrb.mxu1 %v4164_v63 }
0x1164   :  { %2959 = vmatmul.msk.f32.vlgmr.msrb.gmra.mxu2 %vm60_vm0, %v4024_v16  ;;  %2966 = vmatmul.msk.f32.gmra.mxu1 %vm60_vm0, %v4076_v20 }
0x1166   :  { %v2154_v29 = vpop.permute.xlu1 %2153 }
0x1167   :  { %v2157_v5 = vmul.f32 %v4240_v48, %v2154_v29 }
0x1169   :  { %v4249_v30 = vadd.f32 %v4246_v24, %v2157_v5 }
0x116c   :  { %2960 = vmatmul.msk.f32.gmra.mxu2 %vm60_vm0, %v4076_v20 }
0x11d9   :  { %v4208_v13 = vpop.f32.mrf.mxu1 }
0x11da   :  { %2967 = vmatmul.msk.f32.vlgmr.msra.gmra.mxu3 %vm127_vm1, %v4208_v13 }
0x11e1   :  { %v4212_v49 = vpop.f32.mrf.mxu1 }
0x11e2   :  { %2968 = vmatmul.msk.f32.gmra.mxu3 %vm127_vm1, %v4212_v49 }
0x11e7   :  { %v4216_v51 = vpop.f32.mrf.mxu2 }
0x11e8   :  { %2961 = vmatmul.msk.f32.vlgmr.msra.gmra.mxu0 %vm127_vm1, %v4216_v51 }
0x11ef   :  { %v4220_v52 = vpop.f32.mrf.mxu2 }
0x11f0   :  { %2962 = vmatmul.msk.f32.gmra.mxu0 %vm127_vm1, %v4220_v52 }
0x125d   :  { %v2339_v14 = vpop.f32.mrf.mxu3 }
0x125e   :  { %v2340_v54 = vadd.f32 %v4227_v53, %v2339_v14 }
0x1260   :  { %2387 = vrot.lane.b32.xlu1 %v2340_v54, %s3333_s13  ;;  %v2345_v42 = vadd.f32 %v2340_v54, %v4254_v2 }
0x1262   :  { %v2969_v50 = vmul.f32 -1.442695, %v2345_v42 }
0x1265   :  { %v2183_v59 = vpop.f32.mrf.mxu0  ;;  %v2342_v56 = vpop.f32.mrf.mxu3 }
0x1266   :  { %v2343_v28 = vadd.f32 %v4227_v53, %v2342_v56  ;;  %v2184_v21 = vadd.f32 %v4227_v53, %v2183_v59 }
0x1268   :  { %2389 = vrot.lane.b32.xlu0 %v2343_v28, %s3333_s13  ;;  %v2346_v7 = vadd.f32 %v2343_v28, %v4259_v38  ;;  %v2189_v25 = vadd.f32 %v2184_v21, %v4264_v0 }
0x126a   :  { %v2970_v58 = vmul.f32 -1.442695, %v2346_v7  ;;  %v2963_v36 = vmul.f32 -1.442695, %v2189_v25 }
0x126d   :  { %v2186_v15 = vpop.f32.mrf.mxu0 }
0x126e   :  { %v2187_v44 = vadd.f32 %v4227_v53, %v2186_v15 }
0x1270   :  { %2231 = vrot.lane.b32.xlu0 %v2184_v21, %s3333_s13  ;;  %2233 = vrot.lane.b32.xlu2 %v2187_v44, %s3333_s13  ;;  %v2190_v45 = vadd.f32 %v2187_v44, %v4249_v30 }
0x1272   :  { %v2964_v34 = vmul.f32 -1.442695, %v2190_v45 }
0x1274   :  { %3239 = vpow2.f32 %v2964_v34 }
0x1275   :  { %3241 = vpow2.f32 %v2969_v50 }
0x127a   :  { %v3240_v27 = vpop.eup %3239 }
0x127b   :  { %v2198_v31 = vadd.f32 1.0, %v3240_v27  ;;  %v3242_v3 = vpop.eup %3241 }
0x127c   :  { %v2353_v19 = vadd.f32 1.0, %v3242_v3 }
0x127d   :  { %3243 = vrcp.f32 %v2198_v31  ;;  %v2225_v46 = vand.u32 2147483648, %v2198_v31  ;;  %vm2219_vm15 = vweird.f32 %v2198_v31  ;;  %v2223_v47 = vand.u32 2147483647, %v2198_v31 }
0x127e   :  { %3245 = vpow2.f32 %v2970_v58  ;;  %v2366_v44 = vand.u32 2147483648, %v2353_v19  ;;  %vm2360_vm5 = vweird.f32 %v2353_v19  ;;  %v2364_v29 = vand.u32 2147483647, %v2353_v19 }
0x127f   :  { %3247 = vrcp.f32 %v2353_v19  ;;  %v2226_v14 = vor.u32 1.1754944e-38, %v2225_v46  ;;  %vm2224_vm3 = vcmp.eq.f32.partialorder %v2223_v47, 8.507059e+37 }
0x1280   :  { %3249 = vpow2.f32 %v2963_v36  ;;  %v2367_v8 = vor.u32 1.1754944e-38, %v2366_v44  ;;  %vm2365_vm7 = vcmp.eq.f32.partialorder %v2364_v29, 8.507059e+37 }
0x1283   :  { %v3244_v41 = vpop.eup %3243 }
0x1284   :  { %v3246_v9 = vpop.eup %3245  ;;  %v2215_v37 = vmul.f32 %v3244_v41, %v2198_v31  ;;  %vm2220_vm14 = vweird.f32 %v3244_v41 }
0x1285   :  { %v2354_v39 = vadd.f32 1.0, %v3246_v9  ;;  %v3248_v10 = vpop.eup %3247  ;;  %vm2221_vm2 = vmor %vm2219_vm15, %vm2220_vm14 }
0x1286   :  { %v2216_v43 = vsub.f32 1.0, %v2215_v37  ;;  %v3250_v1 = vpop.eup %3249  ;;  %v2356_v22 = vmul.f32 %v3248_v10, %v2353_v19  ;;  %vm2361_vm4 = vweird.f32 %v3248_v10 }
0x1287   :  { %3251 = vrcp.f32 %v2354_v39  ;;  %v2197_v26 = vadd.f32 1.0, %v3250_v1  ;;  %vm2362_vm6 = vmor %vm2360_vm5, %vm2361_vm4  ;;  %v2381_v17 = vand.u32 2147483648, %v2354_v39  ;;  %vm2375_vm9 = vweird.f32 %v2354_v39  ;;  %v2971_v1 = vld [vmem:[%s4418_s1 + $0x70] sm:$0xff] }
0x1288   :  { %v2217_v18 = vmul.f32 %v3244_v41, %v2216_v43  ;;  %v2357_v62 = vsub.f32 1.0, %v2356_v22  ;;  %v2379_v27 = vand.u32 2147483647, %v2354_v39 }
0x1289   :  { %3253 = vrcp.f32 %v2197_v26  ;;  %v2382_v31 = vor.u32 1.1754944e-38, %v2381_v17  ;;  %vm2204_vm12 = vweird.f32 %v2197_v26  ;;  %v2210_v25 = vand.u32 2147483648, %v2197_v26 }
0x128a   :  { %v2218_v6 = vadd.f32 %v3244_v41, %v2217_v18  ;;  %v2358_v61 = vmul.f32 %v3248_v10, %v2357_v62  ;;  %vm2380_vm11 = vcmp.eq.f32.partialorder %v2379_v27, 8.507059e+37  ;;  %v2208_v36 = vand.u32 2147483647, %v2197_v26 }
0x128b   :  { %v2211_v9 = vor.u32 1.1754944e-38, %v2210_v25 }
0x128c   :  { %v2222_v57 = vsel %vm2221_vm2, %v3244_v41, %v2218_v6  ;;  %v2359_v28 = vadd.f32 %v3248_v10, %v2358_v61  ;;  %vm2209_vm15 = vcmp.eq.f32.partialorder %v2208_v36, 8.507059e+37 }
0x128d   :  { %v3252_v23 = vpop.eup %3251  ;;  %v4267_v54 = vsel %vm2224_vm3, %v2226_v14, %v2222_v57 }
0x128e   :  { %v2371_v40 = vmul.f32 %v3252_v23, %v2354_v39  ;;  %v2363_v5 = vsel %vm2362_vm6, %v3248_v10, %v2359_v28  ;;  %vm2376_vm8 = vweird.f32 %v3252_v23  ;;  %v2972_v10 = vld [vmem:[%s4418_s1 + $0x78] sm:$0xff] }
0x128f   :  { %v3254_v15 = vpop.eup %3253  ;;  %v4271_v34 = vsel %vm2365_vm7, %v2367_v8, %v2363_v5  ;;  %vm2377_vm10 = vmor %vm2375_vm9, %vm2376_vm8  ;;  %2446 = vmatpush.msra.mxu2 %v2972_v10 }
0x1290   :  { %v2372_v21 = vsub.f32 1.0, %v2371_v40  ;;  %v2200_v45 = vmul.f32 %v3254_v15, %v2197_v26  ;;  %vm2205_vm13 = vweird.f32 %v3254_v15 }
0x1291   :  { %vm2206_vm14 = vmor %vm2204_vm12, %vm2205_vm13  ;;  %2447 = vmatpush.msra.mxu2 %v2971_v1 }
0x1292   :  { %v2373_v4 = vmul.f32 %v3252_v23, %v2372_v21  ;;  %v2201_v50 = vsub.f32 1.0, %v2200_v45  ;;  %2973 = vmatmul.msk.f32.vlgmr.msra.gmra.mxu2 %vm60_vm0, %v4024_v16 }
0x1293   :  { %2674 = vmatpush.msrb.mxu2 %v4031_v33 }
0x1294   :  { %v2374_v55 = vadd.f32 %v3252_v23, %v2373_v4  ;;  %v2202_v32 = vmul.f32 %v3254_v15, %v2201_v50 }
0x1295   :  { %2675 = vmatpush.msrb.mxu2 %v4037_v35 }
0x1296   :  { %v2378_v7 = vsel %vm2377_vm10, %v3252_v23, %v2374_v55  ;;  %v2203_v41 = vadd.f32 %v3254_v15, %v2202_v32 }
0x1297   :  { %v2383_v3 = vsel %vm2380_vm11, %v2382_v31, %v2378_v7  ;;  %2676 = vmatpush.msrb.mxu2 %v4158_v60 }
0x1298   :  { %v2408_v47 = vsub.f32 1.0, %v2383_v3 }
0x1299   :  { %2677 = vmatpush.msrb.mxu2 %v4164_v63 }
0x129a   :  { %2974 = vmatmul.msk.f32.gmra.mxu2 %vm60_vm0, %v4076_v20 }
0x12ca   :  { %v2234_v59 = vpop.permute.xlu2 %2233 }
0x12cb   :  { %v2238_v56 = vmul.f32 %v2234_v59, %v4267_v54 }
0x12cd   :  { %2243 = vrot.lane.b32.xlu0 %v2238_v56, %s3333_s13 }
0x12d2   :  { %v2388_v11 = vpop.permute.xlu1 %2387 }
0x12d3   :  { %v2393_v42 = vmul.f32 %v2388_v11, %v4271_v34 }
0x12d5   :  { %2397 = vrot.lane.b32.xlu2 %v2393_v42, %s3333_s13  ;;  %2421 = vrot.lane.b32.xlu0 %v4212_v49, %s3334_s18  ;;  %v2207_v49 = vsel %vm2206_vm14, %v3254_v15, %v2203_v41 }
0x12d6   :  { %v2212_v39 = vsel %vm2209_vm15, %v2211_v9, %v2207_v49 }
0x12d7   :  { %v2251_v29 = vsub.f32 1.0, %v2212_v39 }
0x12da   :  { %v2390_v58 = vpop.permute.xlu0 %2389 }
0x12db   :  { %v2394_v19 = vmul.f32 %v2390_v58, %v2383_v3 }
0x12dd   :  { %2399 = vrot.lane.b32.xlu1 %v2394_v19, %s3333_s13 }
0x12e2   :  { %v2232_v37 = vpop.permute.xlu0 %2231 }
0x12e3   :  { %v2237_v43 = vmul.f32 %v2232_v37, %v2212_v39 }
0x12e5   :  { %2241 = vrot.lane.b32.xlu1 %v2237_v43, %s3333_s13 }
0x132f   :  { %v2398_v18 = vpop.permute.xlu2 %2397 }
0x1330   :  { %v2403_v22 = vadd.f32 %v2398_v18, %v4254_v2 }
0x1332   :  { %3255 = vtanh.f32 %v2403_v22 }
0x1338   :  { %v3256_v26 = vpop.eup %3255 }
0x1339   :  { %2411 = vrot.lane.b32.xlu1 %v3256_v26, %s3335_s23 }
0x133f   :  { %v2244_v6 = vpop.permute.xlu0 %2243 }
0x1340   :  { %v2248_v62 = vadd.f32 %v2244_v6, %v4249_v30 }
0x1341   :  { %2265 = vrot.lane.b32.xlu1 %v4220_v52, %s3334_s18 }
0x1342   :  { %3257 = vtanh.f32 %v2248_v62 }
0x1347   :  { %v2422_v23 = vpop.permute.xlu0 %2421 }
0x1348   :  { %v3258_v33 = vpop.eup %3257  ;;  %v2426_v14 = vmul.f32 %v2422_v23, %v2383_v3 }
0x1349   :  { %2257 = vrot.lane.b32.xlu0 %v3258_v33, %s3335_s23 }
0x134f   :  { %v2400_v35 = vpop.permute.xlu1 %2399 }
0x1350   :  { %v2404_v60 = vadd.f32 %v2400_v35, %v4259_v38 }
0x1351   :  { %2263 = vrot.lane.b32.xlu0 %v4216_v51, %s3334_s18  ;;  %v2407_v51 = vsub.f32 1.0, %v4271_v34 }
0x1352   :  { %3259 = vtanh.f32 %v2404_v60 }
0x1357   :  { %v2242_v2 = vpop.permute.xlu1 %2241 }
0x1358   :  { %v3260_v63 = vpop.eup %3259  ;;  %v2247_v30 = vadd.f32 %v2242_v2, %v4264_v0 }
0x1359   :  { %2413 = vrot.lane.b32.xlu2 %v3260_v63, %s3335_s23 }
0x135a   :  { %3261 = vtanh.f32 %v2247_v30 }
0x1360   :  { %v3262_v52 = vpop.eup %3261 }
0x1361   :  { %2419 = vrot.lane.b32.xlu2 %v4208_v13, %s3334_s18  ;;  %v2252_v13 = vsub.f32 1.0, %v4267_v54 }
0x1369   :  { %2255 = vrot.lane.b32.xlu2 %v3262_v52, %s3335_s23 }
0x13ab   :  { %v2412_v38 = vpop.permute.xlu1 %2411 }
0x13ac   :  { %v2417_v59 = vmul.f32 %v2412_v38, %v2407_v51 }
0x13b3   :  { %v2414_v46 = vpop.permute.xlu2 %2413  ;;  %v2266_v15 = vpop.permute.xlu1 %2265 }
0x13b4   :  { %v2418_v57 = vmul.f32 %v2414_v46, %v2408_v47  ;;  %v2270_v45 = vmul.f32 %v2266_v15, %v4267_v54 }
0x13b6   :  { %v2428_v56 = vadd.f32 %v2426_v14, %v2418_v57 }
0x13bb   :  { %v2258_v61 = vpop.permute.xlu0 %2257  ;;  %v2420_v40 = vpop.permute.xlu2 %2419 }
0x13bc   :  { %v2425_v0 = vmul.f32 %v2420_v40, %v4271_v34  ;;  %v2262_v44 = vmul.f32 %v2258_v61, %v2252_v13  ;;  %v2449_v34 = vpop.f32.mrf.mxu2 }
0x13be   :  { %v2427_v28 = vadd.f32 %v2425_v0, %v2417_v59  ;;  %v2272_v42 = vadd.f32 %v2270_v45, %v2262_v44 }
0x13c0   :  { %v3079_v21 = vpack.i.bf16 %v2427_v28, %v2428_v56 }
0x13c2   :  { %3080 = vrot.lane.b32.xlu1 %v3079_v21, %s3335_s23 }
0x13c3   :  { %v2264_v5 = vpop.permute.xlu0 %2263  ;;  %v2256_v4 = vpop.permute.xlu2 %2255 }
0x13c4   :  { %v2269_v8 = vmul.f32 %v2264_v5, %v2212_v39  ;;  %v2261_v11 = vmul.f32 %v2256_v4, %v2251_v29  ;;  %v2452_v58 = vpop.f32.mrf.mxu2 }
0x13c5   :  { %2493 = vperm.xlu0 %3089, %v2452_v58  }
0x13c6   :  { %v2271_v55 = vadd.f32 %v2269_v8, %v2261_v11 }
0x13c8   :  { %v3084_v50 = vpack.i.bf16 %v2271_v55, %v2272_v42 }
0x13ca   :  { %3085 = vrot.lane.b32.xlu2 %v3084_v50, %s3335_s23  ;;  %2649 = vperm.xlu1 %3090, %v2452_v58  }
0x13d2   :  { %2488 = vperm.xlu2 %3078, %v2449_v34   ;;  %2645 = vperm.xlu1 %3090, %v2449_v34  }
0x13da   :  { %3091 = vset.pattern.permute.xlu1 %v3331_v12 }
0x1424   :  { %v3086_v17 = vpop.permute.xlu2 %3085 }
0x1425   :  { %v3087_v27 = vunpack.i.l.bf16 %v3086_v17  ;;  %v3088_v7 = vunpack.i.h.bf16 %v3086_v17 }
0x1427   :  { %2477 = vmatpush.msrb.mxu0 %v3087_v27 }
0x1429   :  { %2478 = vmatpush.msrb.mxu0 %v3088_v7 }
0x142a   :  { %2975 = vmatmul.msk.f32.vlgmr.msrb.gmra.mxu0 %vm60_vm0, %v4024_v16 }
0x142c   :  { %v2489_v6 = vpop.permute.xlu2 %2488 }
0x142d   :  { %v2496_v33 = vmul.f32 %v4240_v48, %v2489_v6 }
0x142f   :  { %v4354_v60 = vadd.f32 %v4246_v24, %v2496_v33 }
0x1432   :  { %2976 = vmatmul.msk.f32.gmra.mxu0 %vm60_vm0, %v4076_v20 }
0x1434   :  { %v3081_v54 = vpop.permute.xlu1 %3080 }
0x1435   :  { %v3082_v32 = vunpack.i.l.bf16 %v3081_v54  ;;  %v3083_v31 = vunpack.i.h.bf16 %v3081_v54 }
0x1437   :  { %2635 = vmatpush.msrb.mxu3 %v3082_v32  ;;  %v2494_v43 = vpop.permute.xlu0 %2493 }
0x1438   :  { %v2497_v10 = vmul.f32 %v4240_v48, %v2494_v43 }
0x1439   :  { %2636 = vmatpush.msrb.mxu3 %v3083_v31 }
0x143a   :  { %2981 = vmatmul.msk.f32.vlgmr.msrb.gmra.mxu3 %vm60_vm0, %v4024_v16  ;;  %v4348_v1 = vadd.f32 %v4246_v24, %v2497_v10 }
0x143c   :  { %v2650_v18 = vpop.permute.xlu1 %2649 }
0x143d   :  { %v2653_v21 = vmul.f32 %v4240_v48, %v2650_v18 }
0x143f   :  { %v4363_v4 = vadd.f32 %v4246_v24, %v2653_v21 }
0x1442   :  { %2982 = vmatmul.msk.f32.gmra.mxu3 %vm60_vm0, %v4076_v20 }
0x1444   :  { %v2646_v62 = vpop.permute.xlu1 %2645 }
0x1445   :  { %v2652_v35 = vmul.f32 %v4240_v48, %v2646_v62 }
0x1447   :  { %v4358_v2 = vadd.f32 %v4246_v24, %v2652_v35 }
0x14a7   :  { %v4321_v3 = vpop.f32.mrf.mxu0 }
0x14a8   :  { %2977 = vmatmul.msk.f32.vlgmr.msrb.gmra.mxu1 %vm127_vm1, %v4321_v3 }
0x14af   :  { %v4325_v25 = vpop.f32.mrf.mxu0 }
0x14b0   :  { %2978 = vmatmul.msk.f32.gmra.mxu1 %vm127_vm1, %v4325_v25 }
0x14bd   :  { %v4330_v16 = vpop.f32.mrf.mxu3 }
0x14be   :  { %2983 = vmatmul.msk.f32.vlgmr.msrb.gmra.mxu2 %vm127_vm1, %v4330_v16 }
0x14c5   :  { %v4334_v20 = vpop.f32.mrf.mxu3 }
0x14c6   :  { %2984 = vmatmul.msk.f32.gmra.mxu2 %vm127_vm1, %v4334_v20 }
0x1525   :  { %v2523_v19 = vpop.f32.mrf.mxu1 }
0x1526   :  { %v2524_v41 = vadd.f32 %v4227_v53, %v2523_v19 }
0x1528   :  { %2571 = vrot.lane.b32.xlu1 %v2524_v41, %s3333_s13  ;;  %v2529_v63 = vadd.f32 %v2524_v41, %v4354_v60 }
0x152a   :  { %v2979_v52 = vmul.f32 -1.442695, %v2529_v63 }
0x152d   :  { %v2526_v36 = vpop.f32.mrf.mxu1 }
0x152e   :  { %v2527_v12 = vadd.f32 %v4227_v53, %v2526_v36 }
0x1530   :  { %2573 = vrot.lane.b32.xlu2 %v2527_v12, %s3333_s13  ;;  %v2530_v22 = vadd.f32 %v2527_v12, %v4348_v1 }
0x1532   :  { %v2980_v26 = vmul.f32 -1.442695, %v2530_v22 }
0x1534   :  { %3263 = vpow2.f32 %v2980_v26 }
0x1541   :  { %v2679_v9 = vpop.f32.mrf.mxu2 }
0x1542   :  { %v2680_v49 = vadd.f32 %v4227_v53, %v2679_v9 }
0x1544   :  { %2727 = vrot.lane.b32.xlu2 %v2680_v49, %s3333_s13  ;;  %v2685_v23 = vadd.f32 %v2680_v49, %v4358_v2 }
0x1546   :  { %v2985_v46 = vmul.f32 -1.442695, %v2685_v23 }
0x1549   :  { %v2682_v37 = vpop.f32.mrf.mxu2 }
0x154a   :  { %v2683_v39 = vadd.f32 %v4227_v53, %v2682_v37  ;;  %v3264_v53 = vpop.eup %3263 }
0x154b   :  { %v2538_v30 = vadd.f32 1.0, %v3264_v53 }
0x154c   :  { %2729 = vrot.lane.b32.xlu0 %v2683_v39, %s3333_s13  ;;  %v2686_v50 = vadd.f32 %v2683_v39, %v4363_v4 }
0x154d   :  { %3265 = vrcp.f32 %v2538_v30  ;;  %vm2559_vm0 = vweird.f32 %v2538_v30  ;;  %v2565_v0 = vand.u32 2147483648, %v2538_v30  ;;  %v2563_v28 = vand.u32 2147483647, %v2538_v30 }
0x154e   :  { %3267 = vpow2.f32 %v2979_v52  ;;  %v2986_v17 = vmul.f32 -1.442695, %v2686_v50 }
0x154f   :  { %3269 = vpow2.f32 %v2985_v46  ;;  %v2566_v15 = vor.u32 1.1754944e-38, %v2565_v0  ;;  %vm2564_vm4 = vcmp.eq.f32.partialorder %v2563_v28, 8.507059e+37 }
0x1553   :  { %v3266_v38 = vpop.eup %3265 }
0x1554   :  { %v3268_v47 = vpop.eup %3267  ;;  %v2555_v51 = vmul.f32 %v3266_v38, %v2538_v30  ;;  %vm2560_vm2 = vweird.f32 %v3266_v38 }
0x1555   :  { %v2537_v57 = vadd.f32 1.0, %v3268_v47  ;;  %v3270_v61 = vpop.eup %3269  ;;  %vm2561_vm3 = vmor %vm2559_vm0, %vm2560_vm2  ;;  %vm2807_vm2 = vcmask 125952  }
0x1556   :  { %v2556_v40 = vsub.f32 1.0, %v2555_v51  ;;  %v2693_v14 = vadd.f32 1.0, %v3270_v61 }
0x1557   :  { %3271 = vrcp.f32 %v2537_v57  ;;  %v2550_v54 = vand.u32 2147483648, %v2537_v57  ;;  %vm2544_vm6 = vweird.f32 %v2537_v57  ;;  %v2548_v24 = vand.u32 2147483647, %v2537_v57 }
0x1558   :  { %v2557_v59 = vmul.f32 %v3266_v38, %v2556_v40  ;;  %3273 = vrcp.f32 %v2693_v14  ;;  %v2706_v19 = vand.u32 2147483648, %v2693_v14  ;;  %vm2700_vm10 = vweird.f32 %v2693_v14 }
0x1559   :  { %3275 = vpow2.f32 %v2986_v17  ;;  %v2551_v58 = vor.u32 1.1754944e-38, %v2550_v54  ;;  %vm2549_vm9 = vcmp.eq.f32.partialorder %v2548_v24, 8.507059e+37  ;;  %v2704_v41 = vand.u32 2147483647, %v2693_v14 }
0x155a   :  { %v2558_v56 = vadd.f32 %v3266_v38, %v2557_v59  ;;  %v2707_v39 = vor.u32 1.1754944e-38, %v2706_v19 }
0x155b   :  { %vm2705_vm12 = vcmp.eq.f32.partialorder %v2704_v41, 8.507059e+37 }
0x155c   :  { %v2562_v44 = vsel %vm2561_vm3, %v3266_v38, %v2558_v56 }
0x155d   :  { %v3272_v13 = vpop.eup %3271  ;;  %v4365_v8 = vsel %vm2564_vm4, %v2566_v15, %v2562_v44 }
0x155e   :  { %v2540_v29 = vmul.f32 %v3272_v13, %v2537_v57  ;;  %v3274_v5 = vpop.eup %3273  ;;  %vm2545_vm5 = vweird.f32 %v3272_v13  ;;  %v2592_v28 = vsub.f32 1.0, %v4365_v8 }
0x155f   :  { %v2696_v55 = vmul.f32 %v3274_v5, %v2693_v14  ;;  %vm2546_vm7 = vmor %vm2544_vm6, %vm2545_vm5  ;;  %vm2701_vm8 = vweird.f32 %v3274_v5  ;;  %v3276_v9 = vpop.eup %3275 }
0x1560   :  { %v2541_v42 = vsub.f32 1.0, %v2540_v29  ;;  %vm2702_vm11 = vmor %vm2700_vm10, %vm2701_vm8  ;;  %v2694_v43 = vadd.f32 1.0, %v3276_v9 }
0x1561   :  { %v2697_v34 = vsub.f32 1.0, %v2696_v55 }
0x1562   :  { %v2542_v48 = vmul.f32 %v3272_v13, %v2541_v42  ;;  %3277 = vrcp.f32 %v2694_v43  ;;  %v2721_v53 = vand.u32 2147483648, %v2694_v43  ;;  %vm2715_vm14 = vweird.f32 %v2694_v43 }
0x1563   :  { %v2698_v7 = vmul.f32 %v3274_v5, %v2697_v34  ;;  %v2719_v63 = vand.u32 2147483647, %v2694_v43 }
0x1564   :  { %v2543_v27 = vadd.f32 %v3272_v13, %v2542_v48  ;;  %v2722_v52 = vor.u32 1.1754944e-38, %v2721_v53 }
0x1565   :  { %v2699_v31 = vadd.f32 %v3274_v5, %v2698_v7  ;;  %vm2720_vm0 = vcmp.eq.f32.partialorder %v2719_v63, 8.507059e+37 }
0x1566   :  { %v2547_v32 = vsel %vm2546_vm7, %v3272_v13, %v2543_v27 }
0x1567   :  { %v4370_v12 = vsel %vm2549_vm9, %v2551_v58, %v2547_v32  ;;  %v2703_v37 = vsel %vm2702_vm11, %v3274_v5, %v2699_v31  ;;  %v40_v32 = vld [vmem:[%s4425_s8] sm:$0xf] }
0x1568   :  { %v2708_v10 = vsel %vm2705_vm12, %v2707_v39, %v2703_v37  ;;  %v3278_v26 = vpop.eup %3277  ;;  %v39_v58 = vld [vmem:[%s4424_s7] sm:$0xf]  ;;  %s3336_s7 = smov [#allocation2]  }
0x1569   :  { %v2711_v6 = vmul.f32 %v3278_v26, %v2694_v43  ;;  %vm2716_vm13 = vweird.f32 %v3278_v26  ;;  %v2747_v5 = vsub.f32 1.0, %v2708_v10  ;;  %s2845_s2 = sshll.u32 %s3336_s7, 4  ;;  %s2846_s2 = int_to_ptr.vmem [resolvable:$true] %s2845_s2 }
0x156a   :  { %vm2717_vm15 = vmor %vm2715_vm14, %vm2716_vm13 }
0x156b   :  { %v2712_v62 = vsub.f32 1.0, %v2711_v6 }
0x156d   :  { %v2713_v33 = vmul.f32 %v3278_v26, %v2712_v62 }
0x156f   :  { %v2714_v35 = vadd.f32 %v3278_v26, %v2713_v33 }
0x1571   :  { %v2718_v30 = vsel %vm2717_vm15, %v3278_v26, %v2714_v35 }
0x1572   :  { %v2723_v46 = vsel %vm2720_vm0, %v2722_v52, %v2718_v30 }
0x158a   :  { %v2574_v45 = vpop.permute.xlu2 %2573 }
0x158b   :  { %v2578_v11 = vmul.f32 %v2574_v45, %v4365_v8 }
0x158d   :  { %2583 = vrot.lane.b32.xlu0 %v2578_v11, %s3333_s13 }
0x159a   :  { %v2572_v36 = vpop.permute.xlu1 %2571 }
0x159b   :  { %v2577_v49 = vmul.f32 %v2572_v36, %v4370_v12 }
0x159d   :  { %2581 = vrot.lane.b32.xlu2 %v2577_v49, %s3333_s13 }
0x159e   :  { %v2728_v18 = vpop.permute.xlu2 %2727 }
0x159f   :  { %v2733_v22 = vmul.f32 %v2728_v18, %v2708_v10 }
0x15a1   :  { %2737 = vrot.lane.b32.xlu0 %v2733_v22, %s3333_s13 }
0x15a5   :  { %2605 = vrot.lane.b32.xlu2 %v4325_v25, %s3334_s18 }
0x15be   :  { %v2730_v23 = vpop.permute.xlu0 %2729 }
0x15bf   :  { %v2734_v38 = vmul.f32 %v2730_v23, %v2723_v46 }
0x15c1   :  { %2739 = vrot.lane.b32.xlu1 %v2734_v38, %s3333_s13 }
0x15c9   :  { %2761 = vrot.lane.b32.xlu1 %v4334_v20, %s3334_s18 }
0x15f7   :  { %v2582_v25 = vpop.permute.xlu2 %2581 }
0x15f8   :  { %v2587_v47 = vadd.f32 %v2582_v25, %v4354_v60 }
0x15fa   :  { %3279 = vtanh.f32 %v2587_v47 }
0x15ff   :  { %v2584_v51 = vpop.permute.xlu0 %2583  ;;  %v2606_v56 = vpop.permute.xlu2 %2605 }
0x1600   :  { %v3280_v57 = vpop.eup %3279  ;;  %v2588_v61 = vadd.f32 %v2584_v51, %v4348_v1 }
0x1601   :  { %2595 = vrot.lane.b32.xlu2 %v3280_v57, %s3335_s23 }
0x1602   :  { %3281 = vtanh.f32 %v2588_v61 }
0x1608   :  { %v3282_v40 = vpop.eup %3281 }
0x1609   :  { %2759 = vrot.lane.b32.xlu2 %v4330_v16, %s3334_s18  ;;  %2597 = vrot.lane.b32.xlu1 %v3282_v40, %s3335_s23 }
0x1613   :  { %v2738_v14 = vpop.permute.xlu0 %2737 }
0x1614   :  { %v2743_v20 = vadd.f32 %v2738_v14, %v4358_v2  ;;  %v2610_v2 = vmul.f32 %v2606_v56, %v4365_v8  ;;  %v2591_v8 = vsub.f32 1.0, %v4370_v12 }
0x1616   :  { %3283 = vtanh.f32 %v2743_v20 }
0x161c   :  { %v3284_v59 = vpop.eup %3283 }
0x161d   :  { %2751 = vrot.lane.b32.xlu1 %v3284_v59, %s3335_s23 }
0x1633   :  { %v2740_v60 = vpop.permute.xlu1 %2739 }
0x1634   :  { %v2744_v0 = vadd.f32 %v2740_v60, %v4363_v4 }
0x1636   :  { %3285 = vtanh.f32 %v2744_v0 }
0x163b   :  { %v2762_v16 = vpop.permute.xlu1 %2761 }
0x163c   :  { %v3286_v1 = vpop.eup %3285  ;;  %v2766_v50 = vmul.f32 %v2762_v16, %v2723_v46 }
0x163d   :  { %2753 = vrot.lane.b32.xlu0 %v3286_v1, %s3335_s23 }
0x1645   :  { %2603 = vrot.lane.b32.xlu0 %v4321_v3, %s3334_s18  ;;  %v2748_v3 = vsub.f32 1.0, %v2723_v46 }
0x165b   :  { %v2596_v44 = vpop.permute.xlu2 %2595 }
0x165c   :  { %v2601_v27 = vmul.f32 %v2596_v44, %v2591_v8 }
0x1663   :  { %v2760_v29 = vpop.permute.xlu2 %2759 }
0x1664   :  { %v2765_v45 = vmul.f32 %v2760_v29, %v2708_v10 }
0x167b   :  { %v2598_v13 = vpop.permute.xlu1 %2597 }
0x167c   :  { %v2602_v21 = vmul.f32 %v2598_v13, %v2592_v28 }
0x167e   :  { %v2612_v15 = vadd.f32 %v2610_v2, %v2602_v21 }
0x1680   :  { %2778 = vrot.lane.b32.xlu0 %v2612_v15, %s3335_s23 }
0x168f   :  { %v2752_v4 = vpop.permute.xlu1 %2751 }
0x1690   :  { %v2757_v11 = vmul.f32 %v2752_v4, %v2747_v5 }
0x1692   :  { %v2767_v42 = vadd.f32 %v2765_v45, %v2757_v11 }
0x1694   :  { %2811 = vrot.lane.b32.xlu0 %v2767_v42, %s3335_s23 }
0x16af   :  { %v2754_v55 = vpop.permute.xlu0 %2753 }
0x16b0   :  { %v2758_v48 = vmul.f32 %v2754_v55, %v2748_v3 }
0x16b2   :  { %v2768_v34 = vadd.f32 %v2766_v50, %v2758_v48 }
0x16b4   :  { %2813 = vrot.lane.b32.xlu1 %v2768_v34, %s3335_s23 }
0x16b7   :  { %v2604_v17 = vpop.permute.xlu0 %2603 }
0x16b8   :  { %v2609_v7 = vmul.f32 %v2604_v17, %v4370_v12 }
0x16ba   :  { %v2611_v54 = vadd.f32 %v2609_v7, %v2601_v27 }
0x16bc   :  { %2776 = vrot.lane.b32.xlu2 %v2611_v54, %s3335_s23  ;;  %2771 = vperm.xlu1 %3091, %v40_v32  }
0x16f2   :  { %v2779_v24 = vpop.permute.xlu0 %2778 }
0x16f3   :  { %2987 = vmatpush.xpose.msk.msra.mxu0 %vm127_vm1, %v2779_v24 }
0x1706   :  { %v2812_v41 = vpop.permute.xlu0 %2811 }
0x1716   :  { %v2777_v31 = vpop.permute.xlu2 %2776 }
0x1717   :  { %2988 = vmatpush.xpose.msk.msra.mxu0 %vm127_vm1, %v2777_v31 }
0x171a   :  { %2989 = vmatmul.msk.f32.vlgmr.msra.gmra.mxu0 %vm127_vm1, %v39_v58 }
0x1726   :  { %v2814_v19 = vpop.permute.xlu1 %2813 }
0x1727   :  { %2990 = vmatpush.xpose.msk.msra.mxu1 %vm127_vm1, %v2814_v19 }
0x172b   :  { %2991 = vmatpush.xpose.msk.msra.mxu1 %vm127_vm1, %v2812_v41 }
0x172e   :  { %2992 = vmatmul.msk.f32.vlgmr.msra.gmra.mxu1 %vm127_vm1, %v39_v58  ;;  %v2772_v36 = vpop.permute.xlu1 %2771 }
0x1797   :  { %v2804_v12 = vpop.f32.mrf.mxu0 }
0x1798   :  { %v2805_v9 = vadd.f32 %v2804_v12, %v2772_v36 }
0x179a   :  { %2808 = vst.msk [vmem:[#allocation2] sm:$0xf] %vm2807_vm2, %v2805_v9 }
0x17ab   :  { %v2836_v49 = vpop.f32.mrf.mxu1 }
0x17ac   :  { %v2837_v37 = vadd.f32 %v2836_v49, %v2772_v36 }
0x17ae   :  { %2840 = vst.msk [vmem:[#allocation2 + $0x4] sm:$0xf] %vm2807_vm2, %v2837_v37 }
0x17af   :  { %2853 = dma.vmem_to_hbm [thread:$0]  %s2846_s2, 128, %s2848_s24, [#allocation3], %s3333_s13, %s3333_s13, %s3337_s25  }
0x17b0   :  { %3329 = dma.done.wait [#allocation3], 128  }
0x17b1   :  { %3330 = vsyncadd [#allocation3], 4294967168 }
0x17b2   :  { %2858 = vsyncpa [#allocation3], 1 }

</bundles_post_ra>
